<compile_context>
chip_gen: v7x
topology: tpu7x:2x2x1
jax: 0.10.0
libtpu: 0.0.40
codegen_flags: <defaults>
</compile_context>

<pallas_src>
import numpy as np
import jax
import jax.numpy as jnp
from jax import lax
from jax.experimental import pallas as pl
from jax.experimental.pallas import tpu as pltpu


def bilstm_kernel(xf_ref, xb_ref,                       # [TT, BB, E] streamed blocks
                  wih_f_ref, whh_f_ref, b_f_ref,        # forward-direction params
                  wih_b_ref, whh_b_ref, b_b_ref,        # backward-direction params
                  wfc_f_ref, wfc_b_ref, bfc_ref,        # split FC params
                  out_ref,                              # [BB, O]
                  hf_ref, cf_ref, hb_ref, cb_ref):      # VMEM carries [BB, Hp]
    t_blk = pl.program_id(1)
    n_blk = pl.num_programs(1)
    TT, BB, E = xf_ref.shape
    Hp = whh_f_ref.shape[0]

    @pl.when(t_blk == 0)
    def _init():
        z = jnp.zeros((BB, Hp), jnp.float32)
        hf_ref[...] = z
        cf_ref[...] = z
        hb_ref[...] = z
        cb_ref[...] = z

    # Hoisted input projection: one big MXU matmul per direction for the whole
    # time block, bias folded in (removed from the serial recurrence).
    xf = xf_ref[...].reshape(TT * BB, E)
    xb = xb_ref[...].reshape(TT * BB, E)
    gin_f = (jnp.dot(xf, wih_f_ref[...], preferred_element_type=jnp.float32)
             + b_f_ref[...]).reshape(TT, BB, 4 * Hp)
    gin_b = (jnp.dot(xb, wih_b_ref[...], preferred_element_type=jnp.float32)
             + b_b_ref[...]).reshape(TT, BB, 4 * Hp)

    whh_f = whh_f_ref[...]
    whh_b = whh_b_ref[...]
    mm_dtype = whh_f.dtype

    def half_cell(g, c):
        # Lane-aligned gate slices (Hp is a multiple of 128). PyTorch order [i,f,g,o].
        i = jax.nn.sigmoid(g[:, 0 * Hp:1 * Hp])
        f = jax.nn.sigmoid(g[:, 1 * Hp:2 * Hp])
        gg = jnp.tanh(g[:, 2 * Hp:3 * Hp])
        o = jax.nn.sigmoid(g[:, 3 * Hp:4 * Hp])
        c_new = f * c + i * gg
        return o * jnp.tanh(c_new), c_new

    h_f, c_f = hf_ref[...], cf_ref[...]
    h_b, c_b = hb_ref[...], cb_ref[...]

    # Fused fwd/bwd recurrence, fully unrolled (TT is a small static constant)
    # so MXU/EUP ops from the two independent directions can co-issue.
    for s in range(TT):
        g_f = gin_f[s] + jnp.dot(h_f.astype(mm_dtype), whh_f,
                                 preferred_element_type=jnp.float32)
        g_b = gin_b[TT - 1 - s] + jnp.dot(h_b.astype(mm_dtype), whh_b,
                                          preferred_element_type=jnp.float32)
        h_f, c_f = half_cell(g_f, c_f)
        h_b, c_b = half_cell(g_b, c_b)

    hf_ref[...] = h_f
    cf_ref[...] = c_f
    hb_ref[...] = h_b
    cb_ref[...] = c_b

    @pl.when(t_blk == n_blk - 1)
    def _finalize():
        # TODO(synk): nn.Dropout is identity in eval mode; no dropout mask applied.
        # Split-FC epilogue avoids a cross-lane concat of [h_f, h_b].
        out_ref[...] = (
            jnp.dot(h_f.astype(mm_dtype), wfc_f_ref[...],
                    preferred_element_type=jnp.float32)
            + jnp.dot(h_b.astype(mm_dtype), wfc_b_ref[...],
                      preferred_element_type=jnp.float32)
            + bfc_ref[...])


def _round_up(x, m):
    return (x + m - 1) // m * m


def _pad_gate_cols(w, h, hp):
    """Zero-pad each of the 4 gate blocks of the last dim from h to hp."""
    if hp == h:
        return w
    lead = w.shape[:-1]
    w4 = w.reshape(lead + (4, h))
    w4 = jnp.pad(w4, [(0, 0)] * len(lead) + [(0, 0), (0, hp - h)])
    return w4.reshape(lead + (4 * hp,))


def bilstm_classifier_forward(text, lengths, params, *,
                              matmul_dtype=jnp.float32, time_block=None):
    """Matches BiLSTMClassifier.forward(text, lengths). `lengths` is unused
    (the reference module never packs the sequence). Pass
    matmul_dtype=jnp.bfloat16 on v6e/v7x to halve HBM/VMEM traffic of x and the
    weights (f32 accumulation and f32 cell/hidden state are always kept)."""
    del lengths
    B, T = text.shape
    E = params["embedding"].shape[1]
    H = params["w_hh_f"].shape[0]
    O = params["w_fc"].shape[1]

    # TODO(synk): the embedding gather + transpose stay in JAX glue; an in-kernel
    # DMA row gather from the table (scalar-prefetched token ids) would remove
    # one full HBM round trip of the [B, T, E] activations.
    x = jnp.transpose(params["embedding"][text], (1, 0, 2))      # [T, B, E]

    # Sublane-align batch (8) and lane-align hidden per-gate (128).  Padding is
    # mathematically inert: padded weight columns/rows are zero, so padded
    # hidden/cell lanes stay exactly 0 and contribute nothing to real lanes.
    Bp = _round_up(max(B, 8), 8)
    Hp = _round_up(H, 128)
    x = jnp.pad(x, ((0, 0), (0, Bp - B), (0, 0))).astype(matmul_dtype)

    pad_rows = lambda w: jnp.pad(w, ((0, Hp - H), (0, 0)))
    wih_f = _pad_gate_cols(params["w_ih_f"], H, Hp).astype(matmul_dtype)
    whh_f = pad_rows(_pad_gate_cols(params["w_hh_f"], H, Hp)).astype(matmul_dtype)
    b_f = _pad_gate_cols(params["b_f"], H, Hp).astype(jnp.float32)
    wih_b = _pad_gate_cols(params["w_ih_b"], H, Hp).astype(matmul_dtype)
    whh_b = pad_rows(_pad_gate_cols(params["w_hh_b"], H, Hp)).astype(matmul_dtype)
    b_b = _pad_gate_cols(params["b_b"], H, Hp).astype(jnp.float32)
    wfc_f = pad_rows(params["w_fc"][:H]).astype(matmul_dtype)
    wfc_b = pad_rows(params["w_fc"][H:]).astype(matmul_dtype)
    bfc = params["b_fc"].astype(jnp.float32)

    # Time-block size: the inner recurrence is fully unrolled, so keep it small.
    if time_block is None:
        time_block = T if T <= 32 else max(d for d in range(1, 33) if T % d == 0)
    assert T % time_block == 0, "time_block must divide T"
    nt = T // time_block

    # Batch blocks: batch grid axis is 'parallel' (megacore split on v7x).
    bb = Bp if (Bp <= 128 or Bp % 128 != 0) else 128
    nb = Bp // bb

    def full_block(arr):
        nd = arr.ndim
        return pl.BlockSpec(arr.shape, lambda b, t: (0,) * nd)

    grid_spec = pltpu.PrefetchScalarGridSpec(
        num_scalar_prefetch=0,
        grid=(nb, nt),
        in_specs=[
            # x streamed twice: forward block order and reversed block order.
            pl.BlockSpec((time_block, bb, E), lambda b, t: (t, b, 0)),
            pl.BlockSpec((time_block, bb, E), lambda b, t: (nt - 1 - t, b, 0)),
            full_block(wih_f), full_block(whh_f), full_block(b_f),
            full_block(wih_b), full_block(whh_b), full_block(b_b),
            full_block(wfc_f), full_block(wfc_b), full_block(bfc),
        ],
        out_specs=pl.BlockSpec((bb, O), lambda b, t: (b, 0)),
        scratch_shapes=[pltpu.VMEM((bb, Hp), jnp.float32) for _ in range(4)],
    )

    out = pl.pallas_call(
        bilstm_kernel,
        out_shape=jax.ShapeDtypeStruct((Bp, O), jnp.float32),
        grid_spec=grid_spec,
        compiler_params=pltpu.CompilerParams(
            dimension_semantics=("parallel", "arbitrary")),
    )(x, x, wih_f, whh_f, b_f, wih_b, whh_b, b_b, wfc_f, wfc_b, bfc)

    return jnp.squeeze(out[:B])


def _reference_forward(text, params):
    """Pure-JAX reference (same math) for a correctness check."""
    emb = params["embedding"][text].astype(jnp.float32)          # [B, T, E]
    B, T, E = emb.shape
    H = params["w_hh_f"].shape[0]

    def cell(x_t, h, c, wih, whh, b):
        g = x_t @ wih + h @ whh + b
        i = jax.nn.sigmoid(g[:, 0 * H:1 * H])
        f = jax.nn.sigmoid(g[:, 1 * H:2 * H])
        gg = jnp.tanh(g[:, 2 * H:3 * H])
        o = jax.nn.sigmoid(g[:, 3 * H:4 * H])
        c = f * c + i * gg
        return o * jnp.tanh(c), c

    h = c = jnp.zeros((B, H), jnp.float32)
    for t in range(T):
        h, c = cell(emb[:, t], h, c, params["w_ih_f"], params["w_hh_f"], params["b_f"])
    h_fwd = h
    h = c = jnp.zeros((B, H), jnp.float32)
    for t in range(T - 1, -1, -1):
        h, c = cell(emb[:, t], h, c, params["w_ih_b"], params["w_hh_b"], params["b_b"])
    h_bwd = h
    hc = jnp.concatenate([h_fwd, h_bwd], axis=1)
    return jnp.squeeze(hc @ params["w_fc"] + params["b_fc"])


def make_params(key, vocab_size, embedding_dim, hidden_dim, output_dim):
    ks = jax.random.split(key, 10)
    s = 1.0 / np.sqrt(hidden_dim)
    u = lambda k, shape, scale: jax.random.uniform(k, shape, jnp.float32, -scale, scale)
    return {
        "embedding": jax.random.normal(ks[0], (vocab_size, embedding_dim), jnp.float32),
        # forward direction (weights pre-transposed: x @ W, gate order [i,f,g,o])
        "w_ih_f": u(ks[1], (embedding_dim, 4 * hidden_dim), s),
        "w_hh_f": u(ks[2], (hidden_dim, 4 * hidden_dim), s),
        "b_f":    u(ks[3], (1, 4 * hidden_dim), s),   # b_ih + b_hh combined
        # backward direction
        "w_ih_b": u(ks[4], (embedding_dim, 4 * hidden_dim), s),
        "w_hh_b": u(ks[5], (hidden_dim, 4 * hidden_dim), s),
        "b_b":    u(ks[6], (1, 4 * hidden_dim), s),
        # fc: Linear(2H -> output_dim)
        "w_fc":   u(ks[7], (2 * hidden_dim, output_dim), 1.0 / np.sqrt(2 * hidden_dim)),
        "b_fc":   u(ks[8], (1, output_dim), 1.0 / np.sqrt(2 * hidden_dim)),
    }


if __name__ == "__main__":
    VOCAB, EMB, HID, OUT = 50, 32, 32, 1
    B, T = 2, 8

    key = jax.random.PRNGKey(0)
    k_params, k_text = jax.random.split(key)
    params = make_params(k_params, VOCAB, EMB, HID, OUT)

    text = jax.random.randint(k_text, (B, T), 0, VOCAB, dtype=jnp.int32)
    lengths = jnp.full((B,), T, dtype=jnp.int32)   # unused, matches torch signature

    out = jax.block_until_ready(bilstm_classifier_forward(text, lengths, params))
    ref = jax.block_until_ready(_reference_forward(text, params))

    np.testing.assert_allclose(np.asarray(out), np.asarray(ref), rtol=2e-5, atol=2e-5)
    print("KERNEL_OK")
</pallas_src>

<mosaic_0001>
module attributes {stable_mosaic.version = 11 : i64} {
  func.func @bilstm_kernel(%arg0: i32, %arg1: i32, %arg2: memref<8x8x32xf32, #tpu.memory_space<vmem>>, %arg3: memref<8x8x32xf32, #tpu.memory_space<vmem>>, %arg4: memref<32x512xf32, #tpu.memory_space<vmem>>, %arg5: memref<128x512xf32, #tpu.memory_space<vmem>>, %arg6: memref<1x512xf32, #tpu.memory_space<vmem>>, %arg7: memref<32x512xf32, #tpu.memory_space<vmem>>, %arg8: memref<128x512xf32, #tpu.memory_space<vmem>>, %arg9: memref<1x512xf32, #tpu.memory_space<vmem>>, %arg10: memref<128x1xf32, #tpu.memory_space<vmem>>, %arg11: memref<128x1xf32, #tpu.memory_space<vmem>>, %arg12: memref<1x1xf32, #tpu.memory_space<vmem>>, %arg13: memref<8x1xf32, #tpu.memory_space<vmem>>, %arg14: memref<8x128xf32, #tpu.memory_space<vmem>>, %arg15: memref<8x128xf32, #tpu.memory_space<vmem>>, %arg16: memref<8x128xf32, #tpu.memory_space<vmem>>, %arg17: memref<8x128xf32, #tpu.memory_space<vmem>>) attributes {dimension_semantics = [#tpu.dimension_semantics<parallel>, #tpu.dimension_semantics<arbitrary>], iteration_bounds = array<i64: 1, 1>, scalar_prefetch = 0 : i64, scratch_operands = 4 : i64, tpu.core_type = #tpu.core_type<tc>, window_params = [{transform_indices = @transform_0, window_bounds = array<i64: 8, 8, 32>}, {transform_indices = @transform_1, window_bounds = array<i64: 8, 8, 32>}, {pipeline_mode = #tpu.pipeline_mode<synchronous>, transform_indices = @transform_2, window_bounds = array<i64: 32, 512>}, {pipeline_mode = #tpu.pipeline_mode<synchronous>, transform_indices = @transform_3, window_bounds = array<i64: 128, 512>}, {pipeline_mode = #tpu.pipeline_mode<synchronous>, transform_indices = @transform_4, window_bounds = array<i64: 1, 512>}, {pipeline_mode = #tpu.pipeline_mode<synchronous>, transform_indices = @transform_5, window_bounds = array<i64: 32, 512>}, {pipeline_mode = #tpu.pipeline_mode<synchronous>, transform_indices = @transform_6, window_bounds = array<i64: 128, 512>}, {pipeline_mode = #tpu.pipeline_mode<synchronous>, transform_indices = @transform_7, window_bounds = array<i64: 1, 512>}, {pipeline_mode = #tpu.pipeline_mode<synchronous>, transform_indices = @transform_8, window_bounds = array<i64: 128, 1>}, {pipeline_mode = #tpu.pipeline_mode<synchronous>, transform_indices = @transform_9, window_bounds = array<i64: 128, 1>}, {pipeline_mode = #tpu.pipeline_mode<synchronous>, transform_indices = @transform_10, window_bounds = array<i64: 1, 1>}, {transform_indices = @transform_11, window_bounds = array<i64: 8, 1>}]} {
    %c0_i32 = arith.constant 0 : i32
    %0 = arith.cmpi eq, %arg1, %c0_i32 : i32
    %1 = arith.extui %0 : i1 to i32
    %c0_i32_0 = arith.constant 0 : i32
    %2 = arith.cmpi ne, %1, %c0_i32_0 : i32
    scf.if %2 {
      %cst_101 = arith.constant 0.000000e+00 : f32
      %496 = vector.broadcast %cst_101 : f32 to vector<8x128xf32>
      %c0_102 = arith.constant 0 : index
      %c0_103 = arith.constant 0 : index
      %497 = vector.load %arg14[%c0_102, %c0_103] : memref<8x128xf32, #tpu.memory_space<vmem>>, vector<8x128xf32>
      tpu.vector_store %arg14[%c0_102, %c0_103], %496 {strides = array<i32>} : memref<8x128xf32, #tpu.memory_space<vmem>>, vector<8x128xf32>,
      %c0_104 = arith.constant 0 : index
      %c0_105 = arith.constant 0 : index
      %498 = vector.load %arg15[%c0_104, %c0_105] : memref<8x128xf32, #tpu.memory_space<vmem>>, vector<8x128xf32>
      tpu.vector_store %arg15[%c0_104, %c0_105], %496 {strides = array<i32>} : memref<8x128xf32, #tpu.memory_space<vmem>>, vector<8x128xf32>,
      %c0_106 = arith.constant 0 : index
      %c0_107 = arith.constant 0 : index
      %499 = vector.load %arg16[%c0_106, %c0_107] : memref<8x128xf32, #tpu.memory_space<vmem>>, vector<8x128xf32>
      tpu.vector_store %arg16[%c0_106, %c0_107], %496 {strides = array<i32>} : memref<8x128xf32, #tpu.memory_space<vmem>>, vector<8x128xf32>,
      %c0_108 = arith.constant 0 : index
      %c0_109 = arith.constant 0 : index
      %500 = vector.load %arg17[%c0_108, %c0_109] : memref<8x128xf32, #tpu.memory_space<vmem>>, vector<8x128xf32>
      tpu.vector_store %arg17[%c0_108, %c0_109], %496 {strides = array<i32>} : memref<8x128xf32, #tpu.memory_space<vmem>>, vector<8x128xf32>,
    } else {
    }
    %c0 = arith.constant 0 : index
    %c0_1 = arith.constant 0 : index
    %c0_2 = arith.constant 0 : index
    %3 = vector.load %arg2[%c0, %c0_1, %c0_2] : memref<8x8x32xf32, #tpu.memory_space<vmem>>, vector<8x8x32xf32>
    %4 = vector.shape_cast %3 : vector<8x8x32xf32> to vector<64x32xf32>
    %c0_3 = arith.constant 0 : index
    %c0_4 = arith.constant 0 : index
    %c0_5 = arith.constant 0 : index
    %5 = vector.load %arg3[%c0_3, %c0_4, %c0_5] : memref<8x8x32xf32, #tpu.memory_space<vmem>>, vector<8x8x32xf32>
    %6 = vector.shape_cast %5 : vector<8x8x32xf32> to vector<64x32xf32>
    %c0_6 = arith.constant 0 : index
    %c0_7 = arith.constant 0 : index
    %7 = vector.load %arg4[%c0_6, %c0_7] : memref<32x512xf32, #tpu.memory_space<vmem>>, vector<32x512xf32>
    %cst = arith.constant dense<0.000000e+00> : vector<64x512xf32>
    %8 = tpu.matmul %4, %7, %cst {dimension_numbers = #tpu.dot_dimension_numbers<[1], [0], [0], [1], [0, 0, 1, 1], [], []>} : vector<64x32xf32>, vector<32x512xf32>, vector<64x512xf32> -> vector<64x512xf32>
    %c0_8 = arith.constant 0 : index
    %c0_9 = arith.constant 0 : index
    %9 = vector.load %arg6[%c0_8, %c0_9] : memref<1x512xf32, #tpu.memory_space<vmem>>, vector<1x512xf32>
    %10 = vector.broadcast %9 : vector<1x512xf32> to vector<64x512xf32>
    %11 = arith.addf %8, %10 : vector<64x512xf32>
    %12 = vector.shape_cast %11 : vector<64x512xf32> to vector<8x8x512xf32>
    %c0_10 = arith.constant 0 : index
    %c0_11 = arith.constant 0 : index
    %13 = vector.load %arg7[%c0_10, %c0_11] : memref<32x512xf32, #tpu.memory_space<vmem>>, vector<32x512xf32>
    %cst_12 = arith.constant dense<0.000000e+00> : vector<64x512xf32>
    %14 = tpu.matmul %6, %13, %cst_12 {dimension_numbers = #tpu.dot_dimension_numbers<[1], [0], [0], [1], [0, 0, 1, 1], [], []>} : vector<64x32xf32>, vector<32x512xf32>, vector<64x512xf32> -> vector<64x512xf32>
    %c0_13 = arith.constant 0 : index
    %c0_14 = arith.constant 0 : index
    %15 = vector.load %arg9[%c0_13, %c0_14] : memref<1x512xf32, #tpu.memory_space<vmem>>, vector<1x512xf32>
    %16 = vector.broadcast %15 : vector<1x512xf32> to vector<64x512xf32>
    %17 = arith.addf %14, %16 : vector<64x512xf32>
    %18 = vector.shape_cast %17 : vector<64x512xf32> to vector<8x8x512xf32>
    %c0_15 = arith.constant 0 : index
    %c0_16 = arith.constant 0 : index
    %19 = vector.load %arg5[%c0_15, %c0_16] : memref<128x512xf32, #tpu.memory_space<vmem>>, vector<128x512xf32>
    %c0_17 = arith.constant 0 : index
    %c0_18 = arith.constant 0 : index
    %20 = vector.load %arg8[%c0_17, %c0_18] : memref<128x512xf32, #tpu.memory_space<vmem>>, vector<128x512xf32>
    %c0_19 = arith.constant 0 : index
    %c0_20 = arith.constant 0 : index
    %21 = vector.load %arg14[%c0_19, %c0_20] : memref<8x128xf32, #tpu.memory_space<vmem>>, vector<8x128xf32>
    %c0_21 = arith.constant 0 : index
    %c0_22 = arith.constant 0 : index
    %22 = vector.load %arg15[%c0_21, %c0_22] : memref<8x128xf32, #tpu.memory_space<vmem>>, vector<8x128xf32>
    %c0_23 = arith.constant 0 : index
    %c0_24 = arith.constant 0 : index
    %23 = vector.load %arg16[%c0_23, %c0_24] : memref<8x128xf32, #tpu.memory_space<vmem>>, vector<8x128xf32>
    %c0_25 = arith.constant 0 : index
    %c0_26 = arith.constant 0 : index
    %24 = vector.load %arg17[%c0_25, %c0_26] : memref<8x128xf32, #tpu.memory_space<vmem>>, vector<8x128xf32>
    %25 = vector.extract_strided_slice %12 {offsets = [0, 0, 0], sizes = [1, 8, 512], strides = [1, 1, 1]} : vector<8x8x512xf32> to vector<1x8x512xf32>
    %26 = vector.shape_cast %25 : vector<1x8x512xf32> to vector<8x512xf32>
    %cst_27 = arith.constant dense<0.000000e+00> : vector<8x512xf32>
    %27 = tpu.matmul %21, %19, %cst_27 {dimension_numbers = #tpu.dot_dimension_numbers<[1], [0], [0], [1], [0, 0, 1, 1], [], []>} : vector<8x128xf32>, vector<128x512xf32>, vector<8x512xf32> -> vector<8x512xf32>
    %28 = arith.addf %26, %27 : vector<8x512xf32>
    %29 = vector.extract_strided_slice %18 {offsets = [7, 0, 0], sizes = [1, 8, 512], strides = [1, 1, 1]} : vector<8x8x512xf32> to vector<1x8x512xf32>
    %30 = vector.shape_cast %29 : vector<1x8x512xf32> to vector<8x512xf32>
    %cst_28 = arith.constant dense<0.000000e+00> : vector<8x512xf32>
    %31 = tpu.matmul %23, %20, %cst_28 {dimension_numbers = #tpu.dot_dimension_numbers<[1], [0], [0], [1], [0, 0, 1, 1], [], []>} : vector<8x128xf32>, vector<128x512xf32>, vector<8x512xf32> -> vector<8x512xf32>
    %32 = arith.addf %30, %31 : vector<8x512xf32>
    %33 = vector.extract_strided_slice %28 {offsets = [0, 0], sizes = [8, 128], strides = [1, 1]} : vector<8x512xf32> to vector<8x128xf32>
    %34 = arith.negf %33 : vector<8x128xf32>
    %35 = math.exp %34 : vector<8x128xf32>
    %cst_29 = arith.constant 1.000000e+00 : f32
    %36 = vector.broadcast %cst_29 : f32 to vector<8x128xf32>
    %37 = arith.addf %36, %35 : vector<8x128xf32>
    %38 = arith.divf %36, %37 : vector<8x128xf32>
    %39 = vector.extract_strided_slice %28 {offsets = [0, 128], sizes = [8, 128], strides = [1, 1]} : vector<8x512xf32> to vector<8x128xf32>
    %40 = arith.negf %39 : vector<8x128xf32>
    %41 = math.exp %40 : vector<8x128xf32>
    %cst_30 = arith.constant 1.000000e+00 : f32
    %42 = vector.broadcast %cst_30 : f32 to vector<8x128xf32>
    %43 = arith.addf %42, %41 : vector<8x128xf32>
    %44 = arith.divf %42, %43 : vector<8x128xf32>
    %45 = vector.extract_strided_slice %28 {offsets = [0, 256], sizes = [8, 128], strides = [1, 1]} : vector<8x512xf32> to vector<8x128xf32>
    %46 = math.tanh %45 : vector<8x128xf32>
    %47 = vector.extract_strided_slice %28 {offsets = [0, 384], sizes = [8, 128], strides = [1, 1]} : vector<8x512xf32> to vector<8x128xf32>
    %48 = arith.negf %47 : vector<8x128xf32>
    %49 = math.exp %48 : vector<8x128xf32>
    %cst_31 = arith.constant 1.000000e+00 : f32
    %50 = vector.broadcast %cst_31 : f32 to vector<8x128xf32>
    %51 = arith.addf %50, %49 : vector<8x128xf32>
    %52 = arith.divf %50, %51 : vector<8x128xf32>
    %53 = arith.mulf %44, %22 : vector<8x128xf32>
    %54 = arith.mulf %38, %46 : vector<8x128xf32>
    %55 = arith.addf %53, %54 : vector<8x128xf32>
    %56 = math.tanh %55 : vector<8x128xf32>
    %57 = arith.mulf %52, %56 : vector<8x128xf32>
    %58 = vector.extract_strided_slice %32 {offsets = [0, 0], sizes = [8, 128], strides = [1, 1]} : vector<8x512xf32> to vector<8x128xf32>
    %59 = arith.negf %58 : vector<8x128xf32>
    %60 = math.exp %59 : vector<8x128xf32>
    %cst_32 = arith.constant 1.000000e+00 : f32
    %61 = vector.broadcast %cst_32 : f32 to vector<8x128xf32>
    %62 = arith.addf %61, %60 : vector<8x128xf32>
    %63 = arith.divf %61, %62 : vector<8x128xf32>
    %64 = vector.extract_strided_slice %32 {offsets = [0, 128], sizes = [8, 128], strides = [1, 1]} : vector<8x512xf32> to vector<8x128xf32>
    %65 = arith.negf %64 : vector<8x128xf32>
    %66 = math.exp %65 : vector<8x128xf32>
    %cst_33 = arith.constant 1.000000e+00 : f32
    %67 = vector.broadcast %cst_33 : f32 to vector<8x128xf32>
    %68 = arith.addf %67, %66 : vector<8x128xf32>
    %69 = arith.divf %67, %68 : vector<8x128xf32>
    %70 = vector.extract_strided_slice %32 {offsets = [0, 256], sizes = [8, 128], strides = [1, 1]} : vector<8x512xf32> to vector<8x128xf32>
    %71 = math.tanh %70 : vector<8x128xf32>
    %72 = vector.extract_strided_slice %32 {offsets = [0, 384], sizes = [8, 128], strides = [1, 1]} : vector<8x512xf32> to vector<8x128xf32>
    %73 = arith.negf %72 : vector<8x128xf32>
    %74 = math.exp %73 : vector<8x128xf32>
    %cst_34 = arith.constant 1.000000e+00 : f32
    %75 = vector.broadcast %cst_34 : f32 to vector<8x128xf32>
    %76 = arith.addf %75, %74 : vector<8x128xf32>
    %77 = arith.divf %75, %76 : vector<8x128xf32>
    %78 = arith.mulf %69, %24 : vector<8x128xf32>
    %79 = arith.mulf %63, %71 : vector<8x128xf32>
    %80 = arith.addf %78, %79 : vector<8x128xf32>
    %81 = math.tanh %80 : vector<8x128xf32>
    %82 = arith.mulf %77, %81 : vector<8x128xf32>
    %83 = vector.extract_strided_slice %12 {offsets = [1, 0, 0], sizes = [1, 8, 512], strides = [1, 1, 1]} : vector<8x8x512xf32> to vector<1x8x512xf32>
    %84 = vector.shape_cast %83 : vector<1x8x512xf32> to vector<8x512xf32>
    %cst_35 = arith.constant dense<0.000000e+00> : vector<8x512xf32>
    %85 = tpu.matmul %57, %19, %cst_35 {dimension_numbers = #tpu.dot_dimension_numbers<[1], [0], [0], [1], [0, 0, 1, 1], [], []>} : vector<8x128xf32>, vector<128x512xf32>, vector<8x512xf32> -> vector<8x512xf32>
    %86 = arith.addf %84, %85 : vector<8x512xf32>
    %87 = vector.extract_strided_slice %18 {offsets = [6, 0, 0], sizes = [1, 8, 512], strides = [1, 1, 1]} : vector<8x8x512xf32> to vector<1x8x512xf32>
    %88 = vector.shape_cast %87 : vector<1x8x512xf32> to vector<8x512xf32>
    %cst_36 = arith.constant dense<0.000000e+00> : vector<8x512xf32>
    %89 = tpu.matmul %82, %20, %cst_36 {dimension_numbers = #tpu.dot_dimension_numbers<[1], [0], [0], [1], [0, 0, 1, 1], [], []>} : vector<8x128xf32>, vector<128x512xf32>, vector<8x512xf32> -> vector<8x512xf32>
    %90 = arith.addf %88, %89 : vector<8x512xf32>
    %91 = vector.extract_strided_slice %86 {offsets = [0, 0], sizes = [8, 128], strides = [1, 1]} : vector<8x512xf32> to vector<8x128xf32>
    %92 = arith.negf %91 : vector<8x128xf32>
    %93 = math.exp %92 : vector<8x128xf32>
    %cst_37 = arith.constant 1.000000e+00 : f32
    %94 = vector.broadcast %cst_37 : f32 to vector<8x128xf32>
    %95 = arith.addf %94, %93 : vector<8x128xf32>
    %96 = arith.divf %94, %95 : vector<8x128xf32>
    %97 = vector.extract_strided_slice %86 {offsets = [0, 128], sizes = [8, 128], strides = [1, 1]} : vector<8x512xf32> to vector<8x128xf32>
    %98 = arith.negf %97 : vector<8x128xf32>
    %99 = math.exp %98 : vector<8x128xf32>
    %cst_38 = arith.constant 1.000000e+00 : f32
    %100 = vector.broadcast %cst_38 : f32 to vector<8x128xf32>
    %101 = arith.addf %100, %99 : vector<8x128xf32>
    %102 = arith.divf %100, %101 : vector<8x128xf32>
    %103 = vector.extract_strided_slice %86 {offsets = [0, 256], sizes = [8, 128], strides = [1, 1]} : vector<8x512xf32> to vector<8x128xf32>
    %104 = math.tanh %103 : vector<8x128xf32>
    %105 = vector.extract_strided_slice %86 {offsets = [0, 384], sizes = [8, 128], strides = [1, 1]} : vector<8x512xf32> to vector<8x128xf32>
    %106 = arith.negf %105 : vector<8x128xf32>
    %107 = math.exp %106 : vector<8x128xf32>
    %cst_39 = arith.constant 1.000000e+00 : f32
    %108 = vector.broadcast %cst_39 : f32 to vector<8x128xf32>
    %109 = arith.addf %108, %107 : vector<8x128xf32>
    %110 = arith.divf %108, %109 : vector<8x128xf32>
    %111 = arith.mulf %102, %55 : vector<8x128xf32>
    %112 = arith.mulf %96, %104 : vector<8x128xf32>
    %113 = arith.addf %111, %112 : vector<8x128xf32>
    %114 = math.tanh %113 : vector<8x128xf32>
    %115 = arith.mulf %110, %114 : vector<8x128xf32>
    %116 = vector.extract_strided_slice %90 {offsets = [0, 0], sizes = [8, 128], strides = [1, 1]} : vector<8x512xf32> to vector<8x128xf32>
    %117 = arith.negf %116 : vector<8x128xf32>
    %118 = math.exp %117 : vector<8x128xf32>
    %cst_40 = arith.constant 1.000000e+00 : f32
    %119 = vector.broadcast %cst_40 : f32 to vector<8x128xf32>
    %120 = arith.addf %119, %118 : vector<8x128xf32>
    %121 = arith.divf %119, %120 : vector<8x128xf32>
    %122 = vector.extract_strided_slice %90 {offsets = [0, 128], sizes = [8, 128], strides = [1, 1]} : vector<8x512xf32> to vector<8x128xf32>
    %123 = arith.negf %122 : vector<8x128xf32>
    %124 = math.exp %123 : vector<8x128xf32>
    %cst_41 = arith.constant 1.000000e+00 : f32
    %125 = vector.broadcast %cst_41 : f32 to vector<8x128xf32>
    %126 = arith.addf %125, %124 : vector<8x128xf32>
    %127 = arith.divf %125, %126 : vector<8x128xf32>
    %128 = vector.extract_strided_slice %90 {offsets = [0, 256], sizes = [8, 128], strides = [1, 1]} : vector<8x512xf32> to vector<8x128xf32>
    %129 = math.tanh %128 : vector<8x128xf32>
    %130 = vector.extract_strided_slice %90 {offsets = [0, 384], sizes = [8, 128], strides = [1, 1]} : vector<8x512xf32> to vector<8x128xf32>
    %131 = arith.negf %130 : vector<8x128xf32>
    %132 = math.exp %131 : vector<8x128xf32>
    %cst_42 = arith.constant 1.000000e+00 : f32
    %133 = vector.broadcast %cst_42 : f32 to vector<8x128xf32>
    %134 = arith.addf %133, %132 : vector<8x128xf32>
    %135 = arith.divf %133, %134 : vector<8x128xf32>
    %136 = arith.mulf %127, %80 : vector<8x128xf32>
    %137 = arith.mulf %121, %129 : vector<8x128xf32>
    %138 = arith.addf %136, %137 : vector<8x128xf32>
    %139 = math.tanh %138 : vector<8x128xf32>
    %140 = arith.mulf %135, %139 : vector<8x128xf32>
    %141 = vector.extract_strided_slice %12 {offsets = [2, 0, 0], sizes = [1, 8, 512], strides = [1, 1, 1]} : vector<8x8x512xf32> to vector<1x8x512xf32>
    %142 = vector.shape_cast %141 : vector<1x8x512xf32> to vector<8x512xf32>
    %cst_43 = arith.constant dense<0.000000e+00> : vector<8x512xf32>
    %143 = tpu.matmul %115, %19, %cst_43 {dimension_numbers = #tpu.dot_dimension_numbers<[1], [0], [0], [1], [0, 0, 1, 1], [], []>} : vector<8x128xf32>, vector<128x512xf32>, vector<8x512xf32> -> vector<8x512xf32>
    %144 = arith.addf %142, %143 : vector<8x512xf32>
    %145 = vector.extract_strided_slice %18 {offsets = [5, 0, 0], sizes = [1, 8, 512], strides = [1, 1, 1]} : vector<8x8x512xf32> to vector<1x8x512xf32>
    %146 = vector.shape_cast %145 : vector<1x8x512xf32> to vector<8x512xf32>
    %cst_44 = arith.constant dense<0.000000e+00> : vector<8x512xf32>
    %147 = tpu.matmul %140, %20, %cst_44 {dimension_numbers = #tpu.dot_dimension_numbers<[1], [0], [0], [1], [0, 0, 1, 1], [], []>} : vector<8x128xf32>, vector<128x512xf32>, vector<8x512xf32> -> vector<8x512xf32>
    %148 = arith.addf %146, %147 : vector<8x512xf32>
    %149 = vector.extract_strided_slice %144 {offsets = [0, 0], sizes = [8, 128], strides = [1, 1]} : vector<8x512xf32> to vector<8x128xf32>
    %150 = arith.negf %149 : vector<8x128xf32>
    %151 = math.exp %150 : vector<8x128xf32>
    %cst_45 = arith.constant 1.000000e+00 : f32
    %152 = vector.broadcast %cst_45 : f32 to vector<8x128xf32>
    %153 = arith.addf %152, %151 : vector<8x128xf32>
    %154 = arith.divf %152, %153 : vector<8x128xf32>
    %155 = vector.extract_strided_slice %144 {offsets = [0, 128], sizes = [8, 128], strides = [1, 1]} : vector<8x512xf32> to vector<8x128xf32>
    %156 = arith.negf %155 : vector<8x128xf32>
    %157 = math.exp %156 : vector<8x128xf32>
    %cst_46 = arith.constant 1.000000e+00 : f32
    %158 = vector.broadcast %cst_46 : f32 to vector<8x128xf32>
    %159 = arith.addf %158, %157 : vector<8x128xf32>
    %160 = arith.divf %158, %159 : vector<8x128xf32>
    %161 = vector.extract_strided_slice %144 {offsets = [0, 256], sizes = [8, 128], strides = [1, 1]} : vector<8x512xf32> to vector<8x128xf32>
    %162 = math.tanh %161 : vector<8x128xf32>
    %163 = vector.extract_strided_slice %144 {offsets = [0, 384], sizes = [8, 128], strides = [1, 1]} : vector<8x512xf32> to vector<8x128xf32>
    %164 = arith.negf %163 : vector<8x128xf32>
    %165 = math.exp %164 : vector<8x128xf32>
    %cst_47 = arith.constant 1.000000e+00 : f32
    %166 = vector.broadcast %cst_47 : f32 to vector<8x128xf32>
    %167 = arith.addf %166, %165 : vector<8x128xf32>
    %168 = arith.divf %166, %167 : vector<8x128xf32>
    %169 = arith.mulf %160, %113 : vector<8x128xf32>
    %170 = arith.mulf %154, %162 : vector<8x128xf32>
    %171 = arith.addf %169, %170 : vector<8x128xf32>
    %172 = math.tanh %171 : vector<8x128xf32>
    %173 = arith.mulf %168, %172 : vector<8x128xf32>
    %174 = vector.extract_strided_slice %148 {offsets = [0, 0], sizes = [8, 128], strides = [1, 1]} : vector<8x512xf32> to vector<8x128xf32>
    %175 = arith.negf %174 : vector<8x128xf32>
    %176 = math.exp %175 : vector<8x128xf32>
    %cst_48 = arith.constant 1.000000e+00 : f32
    %177 = vector.broadcast %cst_48 : f32 to vector<8x128xf32>
    %178 = arith.addf %177, %176 : vector<8x128xf32>
    %179 = arith.divf %177, %178 : vector<8x128xf32>
    %180 = vector.extract_strided_slice %148 {offsets = [0, 128], sizes = [8, 128], strides = [1, 1]} : vector<8x512xf32> to vector<8x128xf32>
    %181 = arith.negf %180 : vector<8x128xf32>
    %182 = math.exp %181 : vector<8x128xf32>
    %cst_49 = arith.constant 1.000000e+00 : f32
    %183 = vector.broadcast %cst_49 : f32 to vector<8x128xf32>
    %184 = arith.addf %183, %182 : vector<8x128xf32>
    %185 = arith.divf %183, %184 : vector<8x128xf32>
    %186 = vector.extract_strided_slice %148 {offsets = [0, 256], sizes = [8, 128], strides = [1, 1]} : vector<8x512xf32> to vector<8x128xf32>
    %187 = math.tanh %186 : vector<8x128xf32>
    %188 = vector.extract_strided_slice %148 {offsets = [0, 384], sizes = [8, 128], strides = [1, 1]} : vector<8x512xf32> to vector<8x128xf32>
    %189 = arith.negf %188 : vector<8x128xf32>
    %190 = math.exp %189 : vector<8x128xf32>
    %cst_50 = arith.constant 1.000000e+00 : f32
    %191 = vector.broadcast %cst_50 : f32 to vector<8x128xf32>
    %192 = arith.addf %191, %190 : vector<8x128xf32>
    %193 = arith.divf %191, %192 : vector<8x128xf32>
    %194 = arith.mulf %185, %138 : vector<8x128xf32>
    %195 = arith.mulf %179, %187 : vector<8x128xf32>
    %196 = arith.addf %194, %195 : vector<8x128xf32>
    %197 = math.tanh %196 : vector<8x128xf32>
    %198 = arith.mulf %193, %197 : vector<8x128xf32>
    %199 = vector.extract_strided_slice %12 {offsets = [3, 0, 0], sizes = [1, 8, 512], strides = [1, 1, 1]} : vector<8x8x512xf32> to vector<1x8x512xf32>
    %200 = vector.shape_cast %199 : vector<1x8x512xf32> to vector<8x512xf32>
    %cst_51 = arith.constant dense<0.000000e+00> : vector<8x512xf32>
    %201 = tpu.matmul %173, %19, %cst_51 {dimension_numbers = #tpu.dot_dimension_numbers<[1], [0], [0], [1], [0, 0, 1, 1], [], []>} : vector<8x128xf32>, vector<128x512xf32>, vector<8x512xf32> -> vector<8x512xf32>
    %202 = arith.addf %200, %201 : vector<8x512xf32>
    %203 = vector.extract_strided_slice %18 {offsets = [4, 0, 0], sizes = [1, 8, 512], strides = [1, 1, 1]} : vector<8x8x512xf32> to vector<1x8x512xf32>
    %204 = vector.shape_cast %203 : vector<1x8x512xf32> to vector<8x512xf32>
    %cst_52 = arith.constant dense<0.000000e+00> : vector<8x512xf32>
    %205 = tpu.matmul %198, %20, %cst_52 {dimension_numbers = #tpu.dot_dimension_numbers<[1], [0], [0], [1], [0, 0, 1, 1], [], []>} : vector<8x128xf32>, vector<128x512xf32>, vector<8x512xf32> -> vector<8x512xf32>
    %206 = arith.addf %204, %205 : vector<8x512xf32>
    %207 = vector.extract_strided_slice %202 {offsets = [0, 0], sizes = [8, 128], strides = [1, 1]} : vector<8x512xf32> to vector<8x128xf32>
    %208 = arith.negf %207 : vector<8x128xf32>
    %209 = math.exp %208 : vector<8x128xf32>
    %cst_53 = arith.constant 1.000000e+00 : f32
    %210 = vector.broadcast %cst_53 : f32 to vector<8x128xf32>
    %211 = arith.addf %210, %209 : vector<8x128xf32>
    %212 = arith.divf %210, %211 : vector<8x128xf32>
    %213 = vector.extract_strided_slice %202 {offsets = [0, 128], sizes = [8, 128], strides = [1, 1]} : vector<8x512xf32> to vector<8x128xf32>
    %214 = arith.negf %213 : vector<8x128xf32>
    %215 = math.exp %214 : vector<8x128xf32>
    %cst_54 = arith.constant 1.000000e+00 : f32
    %216 = vector.broadcast %cst_54 : f32 to vector<8x128xf32>
    %217 = arith.addf %216, %215 : vector<8x128xf32>
    %218 = arith.divf %216, %217 : vector<8x128xf32>
    %219 = vector.extract_strided_slice %202 {offsets = [0, 256], sizes = [8, 128], strides = [1, 1]} : vector<8x512xf32> to vector<8x128xf32>
    %220 = math.tanh %219 : vector<8x128xf32>
    %221 = vector.extract_strided_slice %202 {offsets = [0, 384], sizes = [8, 128], strides = [1, 1]} : vector<8x512xf32> to vector<8x128xf32>
    %222 = arith.negf %221 : vector<8x128xf32>
    %223 = math.exp %222 : vector<8x128xf32>
    %cst_55 = arith.constant 1.000000e+00 : f32
    %224 = vector.broadcast %cst_55 : f32 to vector<8x128xf32>
    %225 = arith.addf %224, %223 : vector<8x128xf32>
    %226 = arith.divf %224, %225 : vector<8x128xf32>
    %227 = arith.mulf %218, %171 : vector<8x128xf32>
    %228 = arith.mulf %212, %220 : vector<8x128xf32>
    %229 = arith.addf %227, %228 : vector<8x128xf32>
    %230 = math.tanh %229 : vector<8x128xf32>
    %231 = arith.mulf %226, %230 : vector<8x128xf32>
    %232 = vector.extract_strided_slice %206 {offsets = [0, 0], sizes = [8, 128], strides = [1, 1]} : vector<8x512xf32> to vector<8x128xf32>
    %233 = arith.negf %232 : vector<8x128xf32>
    %234 = math.exp %233 : vector<8x128xf32>
    %cst_56 = arith.constant 1.000000e+00 : f32
    %235 = vector.broadcast %cst_56 : f32 to vector<8x128xf32>
    %236 = arith.addf %235, %234 : vector<8x128xf32>
    %237 = arith.divf %235, %236 : vector<8x128xf32>
    %238 = vector.extract_strided_slice %206 {offsets = [0, 128], sizes = [8, 128], strides = [1, 1]} : vector<8x512xf32> to vector<8x128xf32>
    %239 = arith.negf %238 : vector<8x128xf32>
    %240 = math.exp %239 : vector<8x128xf32>
    %cst_57 = arith.constant 1.000000e+00 : f32
    %241 = vector.broadcast %cst_57 : f32 to vector<8x128xf32>
    %242 = arith.addf %241, %240 : vector<8x128xf32>
    %243 = arith.divf %241, %242 : vector<8x128xf32>
    %244 = vector.extract_strided_slice %206 {offsets = [0, 256], sizes = [8, 128], strides = [1, 1]} : vector<8x512xf32> to vector<8x128xf32>
    %245 = math.tanh %244 : vector<8x128xf32>
    %246 = vector.extract_strided_slice %206 {offsets = [0, 384], sizes = [8, 128], strides = [1, 1]} : vector<8x512xf32> to vector<8x128xf32>
    %247 = arith.negf %246 : vector<8x128xf32>
    %248 = math.exp %247 : vector<8x128xf32>
    %cst_58 = arith.constant 1.000000e+00 : f32
    %249 = vector.broadcast %cst_58 : f32 to vector<8x128xf32>
    %250 = arith.addf %249, %248 : vector<8x128xf32>
    %251 = arith.divf %249, %250 : vector<8x128xf32>
    %252 = arith.mulf %243, %196 : vector<8x128xf32>
    %253 = arith.mulf %237, %245 : vector<8x128xf32>
    %254 = arith.addf %252, %253 : vector<8x128xf32>
    %255 = math.tanh %254 : vector<8x128xf32>
    %256 = arith.mulf %251, %255 : vector<8x128xf32>
    %257 = vector.extract_strided_slice %12 {offsets = [4, 0, 0], sizes = [1, 8, 512], strides = [1, 1, 1]} : vector<8x8x512xf32> to vector<1x8x512xf32>
    %258 = vector.shape_cast %257 : vector<1x8x512xf32> to vector<8x512xf32>
    %cst_59 = arith.constant dense<0.000000e+00> : vector<8x512xf32>
    %259 = tpu.matmul %231, %19, %cst_59 {dimension_numbers = #tpu.dot_dimension_numbers<[1], [0], [0], [1], [0, 0, 1, 1], [], []>} : vector<8x128xf32>, vector<128x512xf32>, vector<8x512xf32> -> vector<8x512xf32>
    %260 = arith.addf %258, %259 : vector<8x512xf32>
    %261 = vector.extract_strided_slice %18 {offsets = [3, 0, 0], sizes = [1, 8, 512], strides = [1, 1, 1]} : vector<8x8x512xf32> to vector<1x8x512xf32>
    %262 = vector.shape_cast %261 : vector<1x8x512xf32> to vector<8x512xf32>
    %cst_60 = arith.constant dense<0.000000e+00> : vector<8x512xf32>
    %263 = tpu.matmul %256, %20, %cst_60 {dimension_numbers = #tpu.dot_dimension_numbers<[1], [0], [0], [1], [0, 0, 1, 1], [], []>} : vector<8x128xf32>, vector<128x512xf32>, vector<8x512xf32> -> vector<8x512xf32>
    %264 = arith.addf %262, %263 : vector<8x512xf32>
    %265 = vector.extract_strided_slice %260 {offsets = [0, 0], sizes = [8, 128], strides = [1, 1]} : vector<8x512xf32> to vector<8x128xf32>
    %266 = arith.negf %265 : vector<8x128xf32>
    %267 = math.exp %266 : vector<8x128xf32>
    %cst_61 = arith.constant 1.000000e+00 : f32
    %268 = vector.broadcast %cst_61 : f32 to vector<8x128xf32>
    %269 = arith.addf %268, %267 : vector<8x128xf32>
    %270 = arith.divf %268, %269 : vector<8x128xf32>
    %271 = vector.extract_strided_slice %260 {offsets = [0, 128], sizes = [8, 128], strides = [1, 1]} : vector<8x512xf32> to vector<8x128xf32>
    %272 = arith.negf %271 : vector<8x128xf32>
    %273 = math.exp %272 : vector<8x128xf32>
    %cst_62 = arith.constant 1.000000e+00 : f32
    %274 = vector.broadcast %cst_62 : f32 to vector<8x128xf32>
    %275 = arith.addf %274, %273 : vector<8x128xf32>
    %276 = arith.divf %274, %275 : vector<8x128xf32>
    %277 = vector.extract_strided_slice %260 {offsets = [0, 256], sizes = [8, 128], strides = [1, 1]} : vector<8x512xf32> to vector<8x128xf32>
    %278 = math.tanh %277 : vector<8x128xf32>
    %279 = vector.extract_strided_slice %260 {offsets = [0, 384], sizes = [8, 128], strides = [1, 1]} : vector<8x512xf32> to vector<8x128xf32>
    %280 = arith.negf %279 : vector<8x128xf32>
    %281 = math.exp %280 : vector<8x128xf32>
    %cst_63 = arith.constant 1.000000e+00 : f32
    %282 = vector.broadcast %cst_63 : f32 to vector<8x128xf32>
    %283 = arith.addf %282, %281 : vector<8x128xf32>
    %284 = arith.divf %282, %283 : vector<8x128xf32>
    %285 = arith.mulf %276, %229 : vector<8x128xf32>
    %286 = arith.mulf %270, %278 : vector<8x128xf32>
    %287 = arith.addf %285, %286 : vector<8x128xf32>
    %288 = math.tanh %287 : vector<8x128xf32>
    %289 = arith.mulf %284, %288 : vector<8x128xf32>
    %290 = vector.extract_strided_slice %264 {offsets = [0, 0], sizes = [8, 128], strides = [1, 1]} : vector<8x512xf32> to vector<8x128xf32>
    %291 = arith.negf %290 : vector<8x128xf32>
    %292 = math.exp %291 : vector<8x128xf32>
    %cst_64 = arith.constant 1.000000e+00 : f32
    %293 = vector.broadcast %cst_64 : f32 to vector<8x128xf32>
    %294 = arith.addf %293, %292 : vector<8x128xf32>
    %295 = arith.divf %293, %294 : vector<8x128xf32>
    %296 = vector.extract_strided_slice %264 {offsets = [0, 128], sizes = [8, 128], strides = [1, 1]} : vector<8x512xf32> to vector<8x128xf32>
    %297 = arith.negf %296 : vector<8x128xf32>
    %298 = math.exp %297 : vector<8x128xf32>
    %cst_65 = arith.constant 1.000000e+00 : f32
    %299 = vector.broadcast %cst_65 : f32 to vector<8x128xf32>
    %300 = arith.addf %299, %298 : vector<8x128xf32>
    %301 = arith.divf %299, %300 : vector<8x128xf32>
    %302 = vector.extract_strided_slice %264 {offsets = [0, 256], sizes = [8, 128], strides = [1, 1]} : vector<8x512xf32> to vector<8x128xf32>
    %303 = math.tanh %302 : vector<8x128xf32>
    %304 = vector.extract_strided_slice %264 {offsets = [0, 384], sizes = [8, 128], strides = [1, 1]} : vector<8x512xf32> to vector<8x128xf32>
    %305 = arith.negf %304 : vector<8x128xf32>
    %306 = math.exp %305 : vector<8x128xf32>
    %cst_66 = arith.constant 1.000000e+00 : f32
    %307 = vector.broadcast %cst_66 : f32 to vector<8x128xf32>
    %308 = arith.addf %307, %306 : vector<8x128xf32>
    %309 = arith.divf %307, %308 : vector<8x128xf32>
    %310 = arith.mulf %301, %254 : vector<8x128xf32>
    %311 = arith.mulf %295, %303 : vector<8x128xf32>
    %312 = arith.addf %310, %311 : vector<8x128xf32>
    %313 = math.tanh %312 : vector<8x128xf32>
    %314 = arith.mulf %309, %313 : vector<8x128xf32>
    %315 = vector.extract_strided_slice %12 {offsets = [5, 0, 0], sizes = [1, 8, 512], strides = [1, 1, 1]} : vector<8x8x512xf32> to vector<1x8x512xf32>
    %316 = vector.shape_cast %315 : vector<1x8x512xf32> to vector<8x512xf32>
    %cst_67 = arith.constant dense<0.000000e+00> : vector<8x512xf32>
    %317 = tpu.matmul %289, %19, %cst_67 {dimension_numbers = #tpu.dot_dimension_numbers<[1], [0], [0], [1], [0, 0, 1, 1], [], []>} : vector<8x128xf32>, vector<128x512xf32>, vector<8x512xf32> -> vector<8x512xf32>
    %318 = arith.addf %316, %317 : vector<8x512xf32>
    %319 = vector.extract_strided_slice %18 {offsets = [2, 0, 0], sizes = [1, 8, 512], strides = [1, 1, 1]} : vector<8x8x512xf32> to vector<1x8x512xf32>
    %320 = vector.shape_cast %319 : vector<1x8x512xf32> to vector<8x512xf32>
    %cst_68 = arith.constant dense<0.000000e+00> : vector<8x512xf32>
    %321 = tpu.matmul %314, %20, %cst_68 {dimension_numbers = #tpu.dot_dimension_numbers<[1], [0], [0], [1], [0, 0, 1, 1], [], []>} : vector<8x128xf32>, vector<128x512xf32>, vector<8x512xf32> -> vector<8x512xf32>
    %322 = arith.addf %320, %321 : vector<8x512xf32>
    %323 = vector.extract_strided_slice %318 {offsets = [0, 0], sizes = [8, 128], strides = [1, 1]} : vector<8x512xf32> to vector<8x128xf32>
    %324 = arith.negf %323 : vector<8x128xf32>
    %325 = math.exp %324 : vector<8x128xf32>
    %cst_69 = arith.constant 1.000000e+00 : f32
    %326 = vector.broadcast %cst_69 : f32 to vector<8x128xf32>
    %327 = arith.addf %326, %325 : vector<8x128xf32>
    %328 = arith.divf %326, %327 : vector<8x128xf32>
    %329 = vector.extract_strided_slice %318 {offsets = [0, 128], sizes = [8, 128], strides = [1, 1]} : vector<8x512xf32> to vector<8x128xf32>
    %330 = arith.negf %329 : vector<8x128xf32>
    %331 = math.exp %330 : vector<8x128xf32>
    %cst_70 = arith.constant 1.000000e+00 : f32
    %332 = vector.broadcast %cst_70 : f32 to vector<8x128xf32>
    %333 = arith.addf %332, %331 : vector<8x128xf32>
    %334 = arith.divf %332, %333 : vector<8x128xf32>
    %335 = vector.extract_strided_slice %318 {offsets = [0, 256], sizes = [8, 128], strides = [1, 1]} : vector<8x512xf32> to vector<8x128xf32>
    %336 = math.tanh %335 : vector<8x128xf32>
    %337 = vector.extract_strided_slice %318 {offsets = [0, 384], sizes = [8, 128], strides = [1, 1]} : vector<8x512xf32> to vector<8x128xf32>
    %338 = arith.negf %337 : vector<8x128xf32>
    %339 = math.exp %338 : vector<8x128xf32>
    %cst_71 = arith.constant 1.000000e+00 : f32
    %340 = vector.broadcast %cst_71 : f32 to vector<8x128xf32>
    %341 = arith.addf %340, %339 : vector<8x128xf32>
    %342 = arith.divf %340, %341 : vector<8x128xf32>
    %343 = arith.mulf %334, %287 : vector<8x128xf32>
    %344 = arith.mulf %328, %336 : vector<8x128xf32>
    %345 = arith.addf %343, %344 : vector<8x128xf32>
    %346 = math.tanh %345 : vector<8x128xf32>
    %347 = arith.mulf %342, %346 : vector<8x128xf32>
    %348 = vector.extract_strided_slice %322 {offsets = [0, 0], sizes = [8, 128], strides = [1, 1]} : vector<8x512xf32> to vector<8x128xf32>
    %349 = arith.negf %348 : vector<8x128xf32>
    %350 = math.exp %349 : vector<8x128xf32>
    %cst_72 = arith.constant 1.000000e+00 : f32
    %351 = vector.broadcast %cst_72 : f32 to vector<8x128xf32>
    %352 = arith.addf %351, %350 : vector<8x128xf32>
    %353 = arith.divf %351, %352 : vector<8x128xf32>
    %354 = vector.extract_strided_slice %322 {offsets = [0, 128], sizes = [8, 128], strides = [1, 1]} : vector<8x512xf32> to vector<8x128xf32>
    %355 = arith.negf %354 : vector<8x128xf32>
    %356 = math.exp %355 : vector<8x128xf32>
    %cst_73 = arith.constant 1.000000e+00 : f32
    %357 = vector.broadcast %cst_73 : f32 to vector<8x128xf32>
    %358 = arith.addf %357, %356 : vector<8x128xf32>
    %359 = arith.divf %357, %358 : vector<8x128xf32>
    %360 = vector.extract_strided_slice %322 {offsets = [0, 256], sizes = [8, 128], strides = [1, 1]} : vector<8x512xf32> to vector<8x128xf32>
    %361 = math.tanh %360 : vector<8x128xf32>
    %362 = vector.extract_strided_slice %322 {offsets = [0, 384], sizes = [8, 128], strides = [1, 1]} : vector<8x512xf32> to vector<8x128xf32>
    %363 = arith.negf %362 : vector<8x128xf32>
    %364 = math.exp %363 : vector<8x128xf32>
    %cst_74 = arith.constant 1.000000e+00 : f32
    %365 = vector.broadcast %cst_74 : f32 to vector<8x128xf32>
    %366 = arith.addf %365, %364 : vector<8x128xf32>
    %367 = arith.divf %365, %366 : vector<8x128xf32>
    %368 = arith.mulf %359, %312 : vector<8x128xf32>
    %369 = arith.mulf %353, %361 : vector<8x128xf32>
    %370 = arith.addf %368, %369 : vector<8x128xf32>
    %371 = math.tanh %370 : vector<8x128xf32>
    %372 = arith.mulf %367, %371 : vector<8x128xf32>
    %373 = vector.extract_strided_slice %12 {offsets = [6, 0, 0], sizes = [1, 8, 512], strides = [1, 1, 1]} : vector<8x8x512xf32> to vector<1x8x512xf32>
    %374 = vector.shape_cast %373 : vector<1x8x512xf32> to vector<8x512xf32>
    %cst_75 = arith.constant dense<0.000000e+00> : vector<8x512xf32>
    %375 = tpu.matmul %347, %19, %cst_75 {dimension_numbers = #tpu.dot_dimension_numbers<[1], [0], [0], [1], [0, 0, 1, 1], [], []>} : vector<8x128xf32>, vector<128x512xf32>, vector<8x512xf32> -> vector<8x512xf32>
    %376 = arith.addf %374, %375 : vector<8x512xf32>
    %377 = vector.extract_strided_slice %18 {offsets = [1, 0, 0], sizes = [1, 8, 512], strides = [1, 1, 1]} : vector<8x8x512xf32> to vector<1x8x512xf32>
    %378 = vector.shape_cast %377 : vector<1x8x512xf32> to vector<8x512xf32>
    %cst_76 = arith.constant dense<0.000000e+00> : vector<8x512xf32>
    %379 = tpu.matmul %372, %20, %cst_76 {dimension_numbers = #tpu.dot_dimension_numbers<[1], [0], [0], [1], [0, 0, 1, 1], [], []>} : vector<8x128xf32>, vector<128x512xf32>, vector<8x512xf32> -> vector<8x512xf32>
    %380 = arith.addf %378, %379 : vector<8x512xf32>
    %381 = vector.extract_strided_slice %376 {offsets = [0, 0], sizes = [8, 128], strides = [1, 1]} : vector<8x512xf32> to vector<8x128xf32>
    %382 = arith.negf %381 : vector<8x128xf32>
    %383 = math.exp %382 : vector<8x128xf32>
    %cst_77 = arith.constant 1.000000e+00 : f32
    %384 = vector.broadcast %cst_77 : f32 to vector<8x128xf32>
    %385 = arith.addf %384, %383 : vector<8x128xf32>
    %386 = arith.divf %384, %385 : vector<8x128xf32>
    %387 = vector.extract_strided_slice %376 {offsets = [0, 128], sizes = [8, 128], strides = [1, 1]} : vector<8x512xf32> to vector<8x128xf32>
    %388 = arith.negf %387 : vector<8x128xf32>
    %389 = math.exp %388 : vector<8x128xf32>
    %cst_78 = arith.constant 1.000000e+00 : f32
    %390 = vector.broadcast %cst_78 : f32 to vector<8x128xf32>
    %391 = arith.addf %390, %389 : vector<8x128xf32>
    %392 = arith.divf %390, %391 : vector<8x128xf32>
    %393 = vector.extract_strided_slice %376 {offsets = [0, 256], sizes = [8, 128], strides = [1, 1]} : vector<8x512xf32> to vector<8x128xf32>
    %394 = math.tanh %393 : vector<8x128xf32>
    %395 = vector.extract_strided_slice %376 {offsets = [0, 384], sizes = [8, 128], strides = [1, 1]} : vector<8x512xf32> to vector<8x128xf32>
    %396 = arith.negf %395 : vector<8x128xf32>
    %397 = math.exp %396 : vector<8x128xf32>
    %cst_79 = arith.constant 1.000000e+00 : f32
    %398 = vector.broadcast %cst_79 : f32 to vector<8x128xf32>
    %399 = arith.addf %398, %397 : vector<8x128xf32>
    %400 = arith.divf %398, %399 : vector<8x128xf32>
    %401 = arith.mulf %392, %345 : vector<8x128xf32>
    %402 = arith.mulf %386, %394 : vector<8x128xf32>
    %403 = arith.addf %401, %402 : vector<8x128xf32>
    %404 = math.tanh %403 : vector<8x128xf32>
    %405 = arith.mulf %400, %404 : vector<8x128xf32>
    %406 = vector.extract_strided_slice %380 {offsets = [0, 0], sizes = [8, 128], strides = [1, 1]} : vector<8x512xf32> to vector<8x128xf32>
    %407 = arith.negf %406 : vector<8x128xf32>
    %408 = math.exp %407 : vector<8x128xf32>
    %cst_80 = arith.constant 1.000000e+00 : f32
    %409 = vector.broadcast %cst_80 : f32 to vector<8x128xf32>
    %410 = arith.addf %409, %408 : vector<8x128xf32>
    %411 = arith.divf %409, %410 : vector<8x128xf32>
    %412 = vector.extract_strided_slice %380 {offsets = [0, 128], sizes = [8, 128], strides = [1, 1]} : vector<8x512xf32> to vector<8x128xf32>
    %413 = arith.negf %412 : vector<8x128xf32>
    %414 = math.exp %413 : vector<8x128xf32>
    %cst_81 = arith.constant 1.000000e+00 : f32
    %415 = vector.broadcast %cst_81 : f32 to vector<8x128xf32>
    %416 = arith.addf %415, %414 : vector<8x128xf32>
    %417 = arith.divf %415, %416 : vector<8x128xf32>
    %418 = vector.extract_strided_slice %380 {offsets = [0, 256], sizes = [8, 128], strides = [1, 1]} : vector<8x512xf32> to vector<8x128xf32>
    %419 = math.tanh %418 : vector<8x128xf32>
    %420 = vector.extract_strided_slice %380 {offsets = [0, 384], sizes = [8, 128], strides = [1, 1]} : vector<8x512xf32> to vector<8x128xf32>
    %421 = arith.negf %420 : vector<8x128xf32>
    %422 = math.exp %421 : vector<8x128xf32>
    %cst_82 = arith.constant 1.000000e+00 : f32
    %423 = vector.broadcast %cst_82 : f32 to vector<8x128xf32>
    %424 = arith.addf %423, %422 : vector<8x128xf32>
    %425 = arith.divf %423, %424 : vector<8x128xf32>
    %426 = arith.mulf %417, %370 : vector<8x128xf32>
    %427 = arith.mulf %411, %419 : vector<8x128xf32>
    %428 = arith.addf %426, %427 : vector<8x128xf32>
    %429 = math.tanh %428 : vector<8x128xf32>
    %430 = arith.mulf %425, %429 : vector<8x128xf32>
    %431 = vector.extract_strided_slice %12 {offsets = [7, 0, 0], sizes = [1, 8, 512], strides = [1, 1, 1]} : vector<8x8x512xf32> to vector<1x8x512xf32>
    %432 = vector.shape_cast %431 : vector<1x8x512xf32> to vector<8x512xf32>
    %cst_83 = arith.constant dense<0.000000e+00> : vector<8x512xf32>
    %433 = tpu.matmul %405, %19, %cst_83 {dimension_numbers = #tpu.dot_dimension_numbers<[1], [0], [0], [1], [0, 0, 1, 1], [], []>} : vector<8x128xf32>, vector<128x512xf32>, vector<8x512xf32> -> vector<8x512xf32>
    %434 = arith.addf %432, %433 : vector<8x512xf32>
    %435 = vector.extract_strided_slice %18 {offsets = [0, 0, 0], sizes = [1, 8, 512], strides = [1, 1, 1]} : vector<8x8x512xf32> to vector<1x8x512xf32>
    %436 = vector.shape_cast %435 : vector<1x8x512xf32> to vector<8x512xf32>
    %cst_84 = arith.constant dense<0.000000e+00> : vector<8x512xf32>
    %437 = tpu.matmul %430, %20, %cst_84 {dimension_numbers = #tpu.dot_dimension_numbers<[1], [0], [0], [1], [0, 0, 1, 1], [], []>} : vector<8x128xf32>, vector<128x512xf32>, vector<8x512xf32> -> vector<8x512xf32>
    %438 = arith.addf %436, %437 : vector<8x512xf32>
    %439 = vector.extract_strided_slice %434 {offsets = [0, 0], sizes = [8, 128], strides = [1, 1]} : vector<8x512xf32> to vector<8x128xf32>
    %440 = arith.negf %439 : vector<8x128xf32>
    %441 = math.exp %440 : vector<8x128xf32>
    %cst_85 = arith.constant 1.000000e+00 : f32
    %442 = vector.broadcast %cst_85 : f32 to vector<8x128xf32>
    %443 = arith.addf %442, %441 : vector<8x128xf32>
    %444 = arith.divf %442, %443 : vector<8x128xf32>
    %445 = vector.extract_strided_slice %434 {offsets = [0, 128], sizes = [8, 128], strides = [1, 1]} : vector<8x512xf32> to vector<8x128xf32>
    %446 = arith.negf %445 : vector<8x128xf32>
    %447 = math.exp %446 : vector<8x128xf32>
    %cst_86 = arith.constant 1.000000e+00 : f32
    %448 = vector.broadcast %cst_86 : f32 to vector<8x128xf32>
    %449 = arith.addf %448, %447 : vector<8x128xf32>
    %450 = arith.divf %448, %449 : vector<8x128xf32>
    %451 = vector.extract_strided_slice %434 {offsets = [0, 256], sizes = [8, 128], strides = [1, 1]} : vector<8x512xf32> to vector<8x128xf32>
    %452 = math.tanh %451 : vector<8x128xf32>
    %453 = vector.extract_strided_slice %434 {offsets = [0, 384], sizes = [8, 128], strides = [1, 1]} : vector<8x512xf32> to vector<8x128xf32>
    %454 = arith.negf %453 : vector<8x128xf32>
    %455 = math.exp %454 : vector<8x128xf32>
    %cst_87 = arith.constant 1.000000e+00 : f32
    %456 = vector.broadcast %cst_87 : f32 to vector<8x128xf32>
    %457 = arith.addf %456, %455 : vector<8x128xf32>
    %458 = arith.divf %456, %457 : vector<8x128xf32>
    %459 = arith.mulf %450, %403 : vector<8x128xf32>
    %460 = arith.mulf %444, %452 : vector<8x128xf32>
    %461 = arith.addf %459, %460 : vector<8x128xf32>
    %462 = math.tanh %461 : vector<8x128xf32>
    %463 = arith.mulf %458, %462 : vector<8x128xf32>
    %464 = vector.extract_strided_slice %438 {offsets = [0, 0], sizes = [8, 128], strides = [1, 1]} : vector<8x512xf32> to vector<8x128xf32>
    %465 = arith.negf %464 : vector<8x128xf32>
    %466 = math.exp %465 : vector<8x128xf32>
    %cst_88 = arith.constant 1.000000e+00 : f32
    %467 = vector.broadcast %cst_88 : f32 to vector<8x128xf32>
    %468 = arith.addf %467, %466 : vector<8x128xf32>
    %469 = arith.divf %467, %468 : vector<8x128xf32>
    %470 = vector.extract_strided_slice %438 {offsets = [0, 128], sizes = [8, 128], strides = [1, 1]} : vector<8x512xf32> to vector<8x128xf32>
    %471 = arith.negf %470 : vector<8x128xf32>
    %472 = math.exp %471 : vector<8x128xf32>
    %cst_89 = arith.constant 1.000000e+00 : f32
    %473 = vector.broadcast %cst_89 : f32 to vector<8x128xf32>
    %474 = arith.addf %473, %472 : vector<8x128xf32>
    %475 = arith.divf %473, %474 : vector<8x128xf32>
    %476 = vector.extract_strided_slice %438 {offsets = [0, 256], sizes = [8, 128], strides = [1, 1]} : vector<8x512xf32> to vector<8x128xf32>
    %477 = math.tanh %476 : vector<8x128xf32>
    %478 = vector.extract_strided_slice %438 {offsets = [0, 384], sizes = [8, 128], strides = [1, 1]} : vector<8x512xf32> to vector<8x128xf32>
    %479 = arith.negf %478 : vector<8x128xf32>
    %480 = math.exp %479 : vector<8x128xf32>
    %cst_90 = arith.constant 1.000000e+00 : f32
    %481 = vector.broadcast %cst_90 : f32 to vector<8x128xf32>
    %482 = arith.addf %481, %480 : vector<8x128xf32>
    %483 = arith.divf %481, %482 : vector<8x128xf32>
    %484 = arith.mulf %475, %428 : vector<8x128xf32>
    %485 = arith.mulf %469, %477 : vector<8x128xf32>
    %486 = arith.addf %484, %485 : vector<8x128xf32>
    %487 = math.tanh %486 : vector<8x128xf32>
    %488 = arith.mulf %483, %487 : vector<8x128xf32>
    %c0_91 = arith.constant 0 : index
    %c0_92 = arith.constant 0 : index
    %489 = vector.load %arg14[%c0_91, %c0_92] : memref<8x128xf32, #tpu.memory_space<vmem>>, vector<8x128xf32>
    tpu.vector_store %arg14[%c0_91, %c0_92], %463 {strides = array<i32>} : memref<8x128xf32, #tpu.memory_space<vmem>>, vector<8x128xf32>,
    %c0_93 = arith.constant 0 : index
    %c0_94 = arith.constant 0 : index
    %490 = vector.load %arg15[%c0_93, %c0_94] : memref<8x128xf32, #tpu.memory_space<vmem>>, vector<8x128xf32>
    tpu.vector_store %arg15[%c0_93, %c0_94], %461 {strides = array<i32>} : memref<8x128xf32, #tpu.memory_space<vmem>>, vector<8x128xf32>,
    %c0_95 = arith.constant 0 : index
    %c0_96 = arith.constant 0 : index
    %491 = vector.load %arg16[%c0_95, %c0_96] : memref<8x128xf32, #tpu.memory_space<vmem>>, vector<8x128xf32>
    tpu.vector_store %arg16[%c0_95, %c0_96], %488 {strides = array<i32>} : memref<8x128xf32, #tpu.memory_space<vmem>>, vector<8x128xf32>,
    %c0_97 = arith.constant 0 : index
    %c0_98 = arith.constant 0 : index
    %492 = vector.load %arg17[%c0_97, %c0_98] : memref<8x128xf32, #tpu.memory_space<vmem>>, vector<8x128xf32>
    tpu.vector_store %arg17[%c0_97, %c0_98], %486 {strides = array<i32>} : memref<8x128xf32, #tpu.memory_space<vmem>>, vector<8x128xf32>,
    %c0_i32_99 = arith.constant 0 : i32
    %493 = arith.cmpi eq, %arg1, %c0_i32_99 : i32
    %494 = arith.extui %493 : i1 to i32
    %c0_i32_100 = arith.constant 0 : i32
    %495 = arith.cmpi ne, %494, %c0_i32_100 : i32
    scf.if %495 {
      %c0_101 = arith.constant 0 : index
      %c0_102 = arith.constant 0 : index
      %496 = vector.load %arg10[%c0_101, %c0_102] : memref<128x1xf32, #tpu.memory_space<vmem>>, vector<128x1xf32>
      %cst_103 = arith.constant dense<0.000000e+00> : vector<8x1xf32>
      %497 = tpu.matmul %463, %496, %cst_103 {dimension_numbers = #tpu.dot_dimension_numbers<[1], [0], [0], [1], [0, 0, 1, 1], [], []>} : vector<8x128xf32>, vector<128x1xf32>, vector<8x1xf32> -> vector<8x1xf32>
      %c0_104 = arith.constant 0 : index
      %c0_105 = arith.constant 0 : index
      %498 = vector.load %arg11[%c0_104, %c0_105] : memref<128x1xf32, #tpu.memory_space<vmem>>, vector<128x1xf32>
      %cst_106 = arith.constant dense<0.000000e+00> : vector<8x1xf32>
      %499 = tpu.matmul %488, %498, %cst_106 {dimension_numbers = #tpu.dot_dimension_numbers<[1], [0], [0], [1], [0, 0, 1, 1], [], []>} : vector<8x128xf32>, vector<128x1xf32>, vector<8x1xf32> -> vector<8x1xf32>
      %500 = arith.addf %497, %499 : vector<8x1xf32>
      %c0_107 = arith.constant 0 : index
      %c0_108 = arith.constant 0 : index
      %501 = vector.load %arg12[%c0_107, %c0_108] : memref<1x1xf32, #tpu.memory_space<vmem>>, vector<1x1xf32>
      %502 = vector.broadcast %501 : vector<1x1xf32> to vector<8x1xf32>
      %503 = arith.addf %500, %502 : vector<8x1xf32>
      %c0_109 = arith.constant 0 : index
      %c0_110 = arith.constant 0 : index
      %504 = vector.load %arg13[%c0_109, %c0_110] : memref<8x1xf32, #tpu.memory_space<vmem>>, vector<8x1xf32>
      tpu.vector_store %arg13[%c0_109, %c0_110], %503 {strides = array<i32>} : memref<8x1xf32, #tpu.memory_space<vmem>>, vector<8x1xf32>,
    } else {
    }
    return
  }
  func.func @transform_0(%arg0: i32, %arg1: i32) -> (i32, i32, i32) {
    %c0_i32 = arith.constant 0 : i32
    %c0_i32_0 = arith.constant 0 : i32
    return %arg1, %arg0, %c0_i32 : i32, i32, i32
  }
  func.func @transform_1(%arg0: i32, %arg1: i32) -> (i32, i32, i32) {
    %c0_i32 = arith.constant 0 : i32
    %0 = arith.subi %c0_i32, %arg1 : i32
    %c0_i32_0 = arith.constant 0 : i32
    %c0_i32_1 = arith.constant 0 : i32
    return %0, %arg0, %c0_i32_0 : i32, i32, i32
  }
  func.func @transform_2(%arg0: i32, %arg1: i32) -> (i32, i32) {
    %c0_i32 = arith.constant 0 : i32
    %c0_i32_0 = arith.constant 0 : i32
    %c0_i32_1 = arith.constant 0 : i32
    return %c0_i32, %c0_i32_0 : i32, i32
  }
  func.func @transform_3(%arg0: i32, %arg1: i32) -> (i32, i32) {
    %c0_i32 = arith.constant 0 : i32
    %c0_i32_0 = arith.constant 0 : i32
    %c0_i32_1 = arith.constant 0 : i32
    return %c0_i32, %c0_i32_0 : i32, i32
  }
  func.func @transform_4(%arg0: i32, %arg1: i32) -> (i32, i32) {
    %c0_i32 = arith.constant 0 : i32
    %c0_i32_0 = arith.constant 0 : i32
    %c0_i32_1 = arith.constant 0 : i32
    return %c0_i32, %c0_i32_0 : i32, i32
  }
  func.func @transform_5(%arg0: i32, %arg1: i32) -> (i32, i32) {
    %c0_i32 = arith.constant 0 : i32
    %c0_i32_0 = arith.constant 0 : i32
    %c0_i32_1 = arith.constant 0 : i32
    return %c0_i32, %c0_i32_0 : i32, i32
  }
  func.func @transform_6(%arg0: i32, %arg1: i32) -> (i32, i32) {
    %c0_i32 = arith.constant 0 : i32
    %c0_i32_0 = arith.constant 0 : i32
    %c0_i32_1 = arith.constant 0 : i32
    return %c0_i32, %c0_i32_0 : i32, i32
  }
  func.func @transform_7(%arg0: i32, %arg1: i32) -> (i32, i32) {
    %c0_i32 = arith.constant 0 : i32
    %c0_i32_0 = arith.constant 0 : i32
    %c0_i32_1 = arith.constant 0 : i32
    return %c0_i32, %c0_i32_0 : i32, i32
  }
  func.func @transform_8(%arg0: i32, %arg1: i32) -> (i32, i32) {
    %c0_i32 = arith.constant 0 : i32
    %c0_i32_0 = arith.constant 0 : i32
    %c0_i32_1 = arith.constant 0 : i32
    return %c0_i32, %c0_i32_0 : i32, i32
  }
  func.func @transform_9(%arg0: i32, %arg1: i32) -> (i32, i32) {
    %c0_i32 = arith.constant 0 : i32
    %c0_i32_0 = arith.constant 0 : i32
    %c0_i32_1 = arith.constant 0 : i32
    return %c0_i32, %c0_i32_0 : i32, i32
  }
  func.func @transform_10(%arg0: i32, %arg1: i32) -> (i32, i32) {
    %c0_i32 = arith.constant 0 : i32
    %c0_i32_0 = arith.constant 0 : i32
    %c0_i32_1 = arith.constant 0 : i32
    return %c0_i32, %c0_i32_0 : i32, i32
  }
  func.func @transform_11(%arg0: i32, %arg1: i32) -> (i32, i32) {
    %c0_i32 = arith.constant 0 : i32
    %c0_i32_0 = arith.constant 0 : i32
    return %arg0, %c0_i32 : i32, i32
  }
}

</mosaic_0001>

<bundles_post_ra>
// kernel: tpu_custom_call.1
= control target key start
LH: loop header
LB: loop body
LE: loop exit
PB: predicated region body
PF: predicated region fallthrough
CT: control target
= control target key end

     0   :  { %s6754_s0 = inlined_call_operand.hbm [shape: f32[8,8,32], index: 0, kind: input, shape index: {}]   ;;  %s6755_s1 = inlined_call_operand.hbm [shape: f32[8,8,32], index: 1, kind: input, shape index: {}]   ;;  %s6756_s2 = inlined_call_operand.vmem [shape: f32[32,512], index: 2, kind: input, shape index: {}]   ;;  %s6757_s3 = inlined_call_operand.hbm [shape: f32[128,512], index: 3, kind: input, shape index: {}]   ;;  %s6758_s4 = inlined_call_operand.vmem [shape: f32[1,512], index: 4, kind: input, shape index: {}]   ;;  %s6759_s5 = inlined_call_operand.vmem [shape: f32[32,512], index: 5, kind: input, shape index: {}]   ;;  %s6760_s6 = inlined_call_operand.hbm [shape: f32[128,512], index: 6, kind: input, shape index: {}]   ;;  %s6761_s7 = inlined_call_operand.vmem [shape: f32[1,512], index: 7, kind: input, shape index: {}]   ;;  %s6762_s8 = inlined_call_operand.vmem [shape: f32[128,1], index: 8, kind: input, shape index: {}]   ;;  %s6763_s9 = inlined_call_operand.vmem [shape: f32[128,1], index: 9, kind: input, shape index: {}]   ;;  %s6764_s10 = inlined_call_operand.<no memory space> [shape: f32[1,1], index: 10, kind: input, shape index: {}]   ;;  %s6765_s11 = inlined_call_operand.vmem [shape: f32[8,1], index: 11, kind: output, shape index: {}]  }
   0x1   :  { %v16_v0 = vstv %s6764_s10 }
   0x2   :  { %17 = vst [vmem:[#allocation6] sm:$0x1] %v16_v0 }
   0x3   :  { %18 = vsyncpa [#allocation8], 0 }
   0x4   :  { %19 = vsyncpa [#allocation10], 0 }
   0x5   :  { %20 = vsyncpa [#allocation13], 0  ;;  %s5530_s19 = smov [#allocation9]   ;;  %s5531_s21 = smov [#allocation7]  }
   0x6   :  { %s42_s20 = sshll.u32 %s5530_s19, 4  ;;  %s26_s22 = sshll.u32 %s5531_s21, 4  ;;  %s43_s20 = int_to_ptr.vmem [resolvable:$true] %s42_s20  ;;  %s5604_s22 = int_to_ptr.vmem [resolvable:$true] %s26_s22 }
   0x7   :  { %s5436_s25 = scalar_lea.hbm %s6755_s1, 1024 }
   0x8   :  { %p5437_p0 = scmp.ne.s32.totalorder %s6755_s1, %s5436_s25  ;;  %p5440_p1 = scmp.lt.u32.totalorder %s5436_s25, %s6755_s1 }
   0xa   :  { %p5442_p2 = pnand %p5440_p1, %p5437_p0 }
   0xc   :  { %5445 = shalt.err (!%p5442_p2)
}
   0xd   :  { %s5446_s29 = scalar_lea.vmem %s43_s20, 1024  ;;  %p5451_p4 = scmp.lt.s32.totalorder %s43_s20, %s43_s20 }
   0xe   :  { %p5447_p3 = scmp.ne.s32.totalorder %s43_s20, %s5446_s29  ;;  %p5452_p5 = scmp.lt.s32.totalorder %s5446_s29, %s5446_s29 }
  0x10   :  { %p5453_p6 = por %p5452_p5, %p5451_p4 }
  0x12   :  { %p5454_p7 = pnand %p5453_p6, %p5447_p3 }
  0x14   :  { %5457 = shalt.err (!%p5454_p7)
}
  0x15   :  { %s5532_s30 = smov 128   ;;  %s5533_s12 = smov 8  }
  0x16   :  { %48 = dma.hbm_to_vmem [thread:$0]  %s6755_s1, 1024, %s43_s20, [#allocation10], %s5532_s30, %s5532_s30, %s5533_s12  }
  0x17   :  { %s5458_s17 = scalar_lea.hbm %s6754_s0, 1024 }
  0x18   :  { %p5459_p8 = scmp.ne.s32.totalorder %s6754_s0, %s5458_s17  ;;  %p5462_p9 = scmp.lt.u32.totalorder %s5458_s17, %s6754_s0 }
  0x1a   :  { %p5464_p10 = pnand %p5462_p9, %p5459_p8 }
  0x1c   :  { %5467 = shalt.err (!%p5464_p10)
}
  0x1d   :  { %s5468_s24 = scalar_lea.vmem %s5604_s22, 1024  ;;  %p5473_p12 = scmp.lt.s32.totalorder %s5604_s22, %s5604_s22 }
  0x1e   :  { %p5469_p11 = scmp.ne.s32.totalorder %s5604_s22, %s5468_s24  ;;  %p5474_p13 = scmp.lt.s32.totalorder %s5468_s24, %s5468_s24 }
  0x20   :  { %p5475_p0 = por %p5474_p13, %p5473_p12 }
  0x22   :  { %p5476_p1 = pnand %p5475_p0, %p5469_p11 }
  0x24   :  { %5479 = shalt.err (!%p5476_p1)
}
  0x25   :  { %32 = dma.hbm_to_vmem [thread:$0]  %s6754_s0, 1024, %s5604_s22, [#allocation8], %s5532_s30, %s5532_s30, %s5533_s12  }
  0x26   :  { %s5534_s25 = smov [#allocation11]   ;;  %s5480_s28 = scalar_lea.hbm %s6757_s3, 8192 }
  0x27   :  { %s56_s26 = sshll.u32 %s5534_s25, 4  ;;  %p5481_p2 = scmp.ne.s32.totalorder %s6757_s3, %s5480_s28  ;;  %s57_s26 = int_to_ptr.vmem [resolvable:$true] %s56_s26 }
  0x28   :  { %p5484_p3 = scmp.lt.u32.totalorder %s5480_s28, %s6757_s3 }
  0x2a   :  { %p5486_p4 = pnand %p5484_p3, %p5481_p2 }
  0x2c   :  { %5489 = shalt.err (!%p5486_p4)
}
  0x2d   :  { %s5490_s16 = scalar_lea.vmem %s57_s26, 8192  ;;  %p5495_p6 = scmp.lt.s32.totalorder %s57_s26, %s57_s26 }
  0x2e   :  { %p5491_p5 = scmp.ne.s32.totalorder %s57_s26, %s5490_s16  ;;  %p5496_p7 = scmp.lt.s32.totalorder %s5490_s16, %s5490_s16 }
  0x30   :  { %p5497_p8 = por %p5496_p7, %p5495_p6 }
  0x32   :  { %p5498_p9 = pnand %p5497_p8, %p5491_p5 }
  0x34   :  { %5501 = shalt.err (!%p5498_p9)
}
  0x35   :  { %s5535_s0 = smov 512   ;;  %s5536_s22 = smov 32  }
  0x36   :  { %62 = dma.hbm_to_vmem [thread:$0]  %s6757_s3, 8192, %s57_s26, [#allocation10], %s5535_s0, %s5535_s0, %s5536_s22  }
  0x37   :  { %s5537_s17 = smov [#allocation12]   ;;  %s5502_s23 = scalar_lea.hbm %s6760_s6, 8192 }
  0x38   :  { %s72_s18 = sshll.u32 %s5537_s17, 4  ;;  %p5503_p10 = scmp.ne.s32.totalorder %s6760_s6, %s5502_s23  ;;  %s73_s18 = int_to_ptr.vmem [resolvable:$true] %s72_s18 }
  0x39   :  { %p5506_p11 = scmp.lt.u32.totalorder %s5502_s23, %s6760_s6 }
  0x3b   :  { %p5508_p12 = pnand %p5506_p11, %p5503_p10 }
  0x3d   :  { %5511 = shalt.err (!%p5508_p12)
}
  0x3e   :  { %s5512_s27 = scalar_lea.vmem %s73_s18, 8192  ;;  %p5517_p0 = scmp.lt.s32.totalorder %s73_s18, %s73_s18 }
  0x3f   :  { %p5513_p13 = scmp.ne.s32.totalorder %s73_s18, %s5512_s27  ;;  %p5518_p1 = scmp.lt.s32.totalorder %s5512_s27, %s5512_s27 }
  0x41   :  { %p5519_p2 = por %p5518_p1, %p5517_p0 }
  0x43   :  { %p5520_p3 = pnand %p5519_p2, %p5513_p13 }
  0x45   :  { %5523 = shalt.err (!%p5520_p3)
}
  0x46   :  { %78 = dma.hbm_to_vmem [thread:$0]  %s6760_s6, 8192, %s73_s18, [#allocation13], %s5535_s0, %s5535_s0, %s5536_s22  }
  0x47   :  { %5524 = dma.done.wait [#allocation8], 1024  }
  0x48   :  { %5525 = vsyncadd [#allocation8], 4294966272 }
  0x49   :  { %5526 = dma.done.wait [#allocation10], 9216  }
  0x4a   :  { %5527 = vsyncadd [#allocation10], 4294958080 }
  0x4b   :  { %5528 = dma.done.wait [#allocation13], 8192  }
  0x4c   :  { %5529 = vsyncadd [#allocation13], 4294959104  ;;  %v6766_v1 = vmov 0.0   ;;  %v126_v2 = vld [vmem:[%s6756_s2 + $0x8] sm:$0xff]  ;;  %v128_v4 = vld [vmem:[%s6756_s2 + $0x18] sm:$0xff]  ;;  %vm163_vm0 = vcmask 261120  }
  0x4d   :  { %252 = vmatprep.mubr.f32.mxu0 %v6766_v1  ;;  %365 = vmatprep.mubr.f32.mxu1 %v6766_v1  ;;  %v130_v3 = vld [vmem:[%s6756_s2 + $0x28] sm:$0xff]  ;;  %v132_v6 = vld [vmem:[%s6756_s2 + $0x38] sm:$0xff]  ;;  %v125_v7 = vld [vmem:[%s6756_s2] sm:$0xff]  ;;  %vm5540_vm1 = vmmov 0   ;;  %vm3741_vm2 = vcmask 7168  }
  0x4e   :  { %v3937_v5 = vpack.c.bf16 %v130_v3, %v126_v2  ;;  %v129_v8 = vld [vmem:[%s6756_s2 + $0x20] sm:$0xff]  ;;  %v3945_v9 = vpack.c.bf16 %v132_v6, %v128_v4  ;;  %v127_v11 = vld [vmem:[%s6756_s2 + $0x10] sm:$0xff]  ;;  %v134_v13 = vld [vmem:[%s6756_s2 + $0x48] sm:$0xff] }
  0x4f   :  { %v3939_v10 = vpack.c.bf16 %v129_v8, %v125_v7  ;;  %v131_v12 = vld [vmem:[%s6756_s2 + $0x30] sm:$0xff]  ;;  %v138_v15 = vld [vmem:[%s6756_s2 + $0x68] sm:$0xff]  ;;  %v136_v16 = vld [vmem:[%s6756_s2 + $0x58] sm:$0xff] }
  0x50   :  { %3938 = vmatprep.subr.bf16.mxu0 %v3937_v5  ;;  %v3947_v14 = vpack.c.bf16 %v131_v12, %v127_v11  ;;  %v140_v17 = vld [vmem:[%s6756_s2 + $0x78] sm:$0xff]  ;;  %3946 = vmatprep.subr.bf16.mxu1 %v3945_v9  ;;  %v3941_v18 = vpack.c.bf16 %v138_v15, %v134_v13  ;;  %v133_v20 = vld [vmem:[%s6756_s2 + $0x40] sm:$0xff]  ;;  %v135_v22 = vld [vmem:[%s6756_s2 + $0x50] sm:$0xff] }
  0x51   :  { %3940 = vmatpush1.bf16.msra.mxu0 %v3939_v10  ;;  %v3949_v19 = vpack.c.bf16 %v140_v17, %v136_v16  ;;  %v137_v21 = vld [vmem:[%s6756_s2 + $0x60] sm:$0xff]  ;;  %v139_v24 = vld [vmem:[%s6756_s2 + $0x70] sm:$0xff]  ;;  %v415_v25 = vld [vmem:[%s6759_s5 + $0x8] sm:$0xff] }
  0x52   :  { %3948 = vmatpush1.bf16.msra.mxu1 %v3947_v14  ;;  %v3943_v23 = vpack.c.bf16 %v137_v21, %v133_v20  ;;  %3942 = vmatprep.subr.bf16.mxu0 %v3941_v18  ;;  %v3951_v26 = vpack.c.bf16 %v139_v24, %v135_v22  ;;  %v419_v27 = vld [vmem:[%s6759_s5 + $0x28] sm:$0xff]  ;;  %v414_v28 = vld [vmem:[%s6759_s5] sm:$0xff]  ;;  %v417_v33 = vld [vmem:[%s6759_s5 + $0x18] sm:$0xff] }
  0x53   :  { %3950 = vmatprep.subr.bf16.mxu1 %v3949_v19  ;;  %v418_v29 = vld [vmem:[%s6759_s5 + $0x20] sm:$0xff]  ;;  %v3953_v30 = vpack.c.bf16 %v419_v27, %v415_v25  ;;  %v421_v34 = vld [vmem:[%s6759_s5 + $0x38] sm:$0xff]  ;;  %v423_v36 = vld [vmem:[%s6759_s5 + $0x48] sm:$0xff] }
  0x54   :  { %v109_v31 = vld [vmem:[#allocation7] sm:$0xff]  ;;  %v3955_v32 = vpack.c.bf16 %v418_v29, %v414_v28  ;;  %v3961_v35 = vpack.c.bf16 %v421_v34, %v417_v33  ;;  %v416_v38 = vld [vmem:[%s6759_s5 + $0x10] sm:$0xff]  ;;  %v425_v44 = vld [vmem:[%s6759_s5 + $0x58] sm:$0xff] }
  0x55   :  { %3944 = vmatpush1.bf16.msra.mxu0 %v3943_v23  ;;  %v427_v37 = vld [vmem:[%s6759_s5 + $0x68] sm:$0xff]  ;;  %v420_v40 = vld [vmem:[%s6759_s5 + $0x30] sm:$0xff]  ;;  %v422_v41 = vld [vmem:[%s6759_s5 + $0x40] sm:$0xff] }
  0x56   :  { %3952 = vmatpush1.bf16.msra.mxu1 %v3951_v26  ;;  %3954 = vmatprep.subr.bf16.mxu0 %v3953_v30  ;;  %v3957_v39 = vpack.c.bf16 %v427_v37, %v423_v36  ;;  %v426_v42 = vld [vmem:[%s6759_s5 + $0x60] sm:$0xff]  ;;  %v3963_v43 = vpack.c.bf16 %v420_v40, %v416_v38  ;;  %v110_v45 = vld [vmem:[#allocation7 + $0x8] sm:$0xff]  ;;  %v429_v46 = vld [vmem:[%s6759_s5 + $0x78] sm:$0xff] }
  0x57   :  { %3962 = vmatprep.subr.bf16.mxu1 %v3961_v35  ;;  %v424_v47 = vld [vmem:[%s6759_s5 + $0x50] sm:$0xff]  ;;  %v3959_v48 = vpack.c.bf16 %v426_v42, %v422_v41  ;;  %v3965_v49 = vpack.c.bf16 %v429_v46, %v425_v44  ;;  %v705_v55 = vld [vmem:[#allocation11 + $0x18] sm:$0xff]  ;;  %v113_v60 = vld [vmem:[#allocation7 + $0x20] sm:$0xff] }
  0x58   :  { %3752 = vmatmul.mubr.msk.f32.vlgmr.msra.gmra.mrb[0].mxu0 %vm163_vm0, %v109_v31  ;;  %v428_v50 = vld [vmem:[%s6759_s5 + $0x70] sm:$0xff]  ;;  %v709_v56 = vld [vmem:[#allocation11 + $0x38] sm:$0xff]  ;;  %v702_v0 = vld [vmem:[#allocation11] sm:$0xff] }
  0x59   :  { %3760 = vmatmul.mubr.msk.f32.vlgmr.msra.gmra.mrb[0].mxu1 %vm163_vm0, %v109_v31  ;;  %3956 = vmatpush1.bf16.msra.mxu0 %v3955_v32  ;;  %v703_v51 = vld [vmem:[#allocation11 + $0x8] sm:$0xff]  ;;  %v3967_v53 = vpack.c.bf16 %v428_v50, %v424_v47  ;;  %v5764_v57 = vpack.c.bf16 %v709_v56, %v705_v55  ;;  %v111_v58 = vld [vmem:[#allocation7 + $0x10] sm:$0xff]  ;;  %v112_v59 = vld [vmem:[#allocation7 + $0x18] sm:$0xff] }
  0x5a   :  { %258 = vmatprep.mubr.f32.mxu0 %v6766_v1  ;;  %371 = vmatprep.mubr.f32.mxu1 %v6766_v1  ;;  %v707_v52 = vld [vmem:[#allocation11 + $0x28] sm:$0xff]  ;;  %v115_v62 = vld [vmem:[#allocation7 + $0x30] sm:$0xff]  ;;  %v116_v63 = vld [vmem:[#allocation7 + $0x38] sm:$0xff] }
  0x5b   :  { %3958 = vmatprep.subr.bf16.mxu0 %v3957_v39  ;;  %3964 = vmatpush1.bf16.msra.mxu1 %v3963_v43  ;;  %v5761_v54 = vpack.c.bf16 %v707_v52, %v703_v51  ;;  %v114_v61 = vld [vmem:[#allocation7 + $0x28] sm:$0xff]  ;;  %v706_v2 = vld [vmem:[#allocation11 + $0x20] sm:$0xff]  ;;  %v704_v3 = vld [vmem:[#allocation11 + $0x10] sm:$0xff] }
  0x5c   :  { %3753 = vmatmul.mubr.msk.f32.gmra.mrb[2].mxu0 %vm163_vm0, %v110_v45  ;;  %3966 = vmatprep.subr.bf16.mxu1 %v3965_v49  ;;  %v708_v4 = vld [vmem:[#allocation11 + $0x30] sm:$0xff]  ;;  %v711_v5 = vld [vmem:[#allocation11 + $0x48] sm:$0xff]  ;;  %v117_v7 = vld [vmem:[#allocation9] sm:$0xff]  ;;  %v5794_v8 = vpack.c.bf16 %v706_v2, %v702_v0 }
  0x5d   :  { %3761 = vmatmul.mubr.msk.f32.gmra.mrb[2].mxu1 %vm163_vm0, %v110_v45  ;;  %264 = vmatprep.mubr.f32.mxu0 %v6766_v1  ;;  %v715_v6 = vld [vmem:[#allocation11 + $0x68] sm:$0xff]  ;;  %v713_v9 = vld [vmem:[#allocation11 + $0x58] sm:$0xff]  ;;  %v5797_v11 = vpack.c.bf16 %v708_v4, %v704_v3  ;;  %v710_v12 = vld [vmem:[#allocation11 + $0x40] sm:$0xff] }
  0x5e   :  { %377 = vmatprep.mubr.f32.mxu1 %v6766_v1  ;;  %3960 = vmatpush1.bf16.msra.mxu0 %v3959_v48  ;;  %v717_v10 = vld [vmem:[#allocation11 + $0x78] sm:$0xff]  ;;  %v714_v13 = vld [vmem:[#allocation11 + $0x60] sm:$0xff]  ;;  %v5799_v14 = vpack.c.bf16 %v715_v6, %v711_v5  ;;  %v712_v15 = vld [vmem:[#allocation11 + $0x50] sm:$0xff] }
  0x5f   :  { %3968 = vmatpush1.bf16.msra.mxu1 %v3967_v53  ;;  %3970 = vmatprep.subr.bf16.mxu0 %v5761_v54  ;;  %v716_v16 = vld [vmem:[#allocation11 + $0x70] sm:$0xff]  ;;  %v5802_v17 = vpack.c.bf16 %v717_v10, %v713_v9  ;;  %v719_v18 = vld [vmem:[#allocation11 + $0x88] sm:$0xff]  ;;  %v5806_v21 = vpack.c.bf16 %v714_v13, %v710_v12  ;;  %v721_v22 = vld [vmem:[#allocation11 + $0x98] sm:$0xff] }
  0x60   :  { %3754 = vmatmul.mubr.msk.f32.gmra.mrb[4].mxu0 %vm163_vm0, %v111_v58  ;;  %4002 = vmatprep.subr.bf16.mxu1 %v5764_v57  ;;  %v723_v19 = vld [vmem:[#allocation11 + $0xa8] sm:$0xff]  ;;  %v725_v23 = vld [vmem:[#allocation11 + $0xb8] sm:$0xff]  ;;  %v5810_v24 = vpack.c.bf16 %v716_v16, %v712_v15  ;;  %v718_v25 = vld [vmem:[#allocation11 + $0x80] sm:$0xff] }
  0x61   :  { %3762 = vmatmul.mubr.msk.f32.gmra.mrb[4].mxu1 %vm163_vm0, %v111_v58  ;;  %270 = vmatprep.mubr.f32.mxu0 %v6766_v1  ;;  %v118_v20 = vld [vmem:[#allocation9 + $0x8] sm:$0xff]  ;;  %v722_v26 = vld [vmem:[#allocation11 + $0xa0] sm:$0xff]  ;;  %v5814_v27 = vpack.c.bf16 %v723_v19, %v719_v18  ;;  %v720_v28 = vld [vmem:[#allocation11 + $0x90] sm:$0xff]  ;;  %v5818_v30 = vpack.c.bf16 %v725_v23, %v721_v22 }
  0x62   :  { %383 = vmatprep.mubr.f32.mxu1 %v6766_v1  ;;  %v724_v29 = vld [vmem:[#allocation11 + $0xb0] sm:$0xff]  ;;  %v727_v31 = vld [vmem:[#allocation11 + $0xc8] sm:$0xff]  ;;  %v5822_v34 = vpack.c.bf16 %v722_v26, %v718_v25  ;;  %v729_v35 = vld [vmem:[#allocation11 + $0xd8] sm:$0xff] }
  0x63   :  { %6848 = vst [vmem:[#allocation17_spill] sm:$0xff] %v5814_v27  ;;  %6849 = vst [vmem:[#allocation18_spill] sm:$0xff] %v5818_v30  ;;  %v731_v32 = vld [vmem:[#allocation11 + $0xe8] sm:$0xff]  ;;  %v119_v33 = vld [vmem:[#allocation9 + $0x10] sm:$0xff]  ;;  %v5826_v37 = vpack.c.bf16 %v724_v29, %v720_v28 }
  0x64   :  { %3755 = vmatmul.mubr.msk.f32.gmra.mrb[6].mxu0 %vm163_vm0, %v112_v59  ;;  %6850 = vst [vmem:[#allocation19_spill] sm:$0xff] %v5822_v34  ;;  %v733_v36 = vld [vmem:[#allocation11 + $0xf8] sm:$0xff]  ;;  %v726_v38 = vld [vmem:[#allocation11 + $0xc0] sm:$0xff]  ;;  %v5830_v40 = vpack.c.bf16 %v731_v32, %v727_v31  ;;  %v728_v41 = vld [vmem:[#allocation11 + $0xd0] sm:$0xff] }
  0x65   :  { %3763 = vmatmul.mubr.msk.f32.gmra.mrb[6].mxu1 %vm163_vm0, %v112_v59  ;;  %276 = vmatprep.mubr.f32.mxu0 %v6766_v1  ;;  %6851 = vst [vmem:[#allocation20_spill] sm:$0xff] %v5826_v37  ;;  %v730_v39 = vld [vmem:[#allocation11 + $0xe0] sm:$0xff]  ;;  %v732_v42 = vld [vmem:[#allocation11 + $0xf0] sm:$0xff]  ;;  %v5834_v43 = vpack.c.bf16 %v733_v36, %v729_v35  ;;  %v735_v44 = vld [vmem:[#allocation11 + $0x108] sm:$0xff] }
  0x66   :  { %389 = vmatprep.mubr.f32.mxu1 %v6766_v1  ;;  %6852 = vst [vmem:[#allocation21_spill] sm:$0xff] %v5830_v40  ;;  %v739_v45 = vld [vmem:[#allocation11 + $0x128] sm:$0xff]  ;;  %v120_v46 = vld [vmem:[#allocation9 + $0x18] sm:$0xff]  ;;  %v5838_v47 = vpack.c.bf16 %v730_v39, %v726_v38  ;;  %v5842_v50 = vpack.c.bf16 %v732_v42, %v728_v41  ;;  %v734_v51 = vld [vmem:[#allocation11 + $0x100] sm:$0xff] }
  0x67   :  { %6853 = vst [vmem:[#allocation22_spill] sm:$0xff] %v5834_v43  ;;  %v737_v48 = vld [vmem:[#allocation11 + $0x118] sm:$0xff]  ;;  %v738_v52 = vld [vmem:[#allocation11 + $0x120] sm:$0xff]  ;;  %v5846_v53 = vpack.c.bf16 %v739_v45, %v735_v44  ;;  %v736_v55 = vld [vmem:[#allocation11 + $0x110] sm:$0xff] }
  0x68   :  { %3756 = vmatmul.mubr.msk.f32.gmra.mrb[8].mxu0 %vm163_vm0, %v113_v60  ;;  %6854 = vst [vmem:[#allocation23_spill] sm:$0xff] %v5838_v47  ;;  %v741_v49 = vld [vmem:[#allocation11 + $0x138] sm:$0xff]  ;;  %6855 = vst [vmem:[#allocation24_spill] sm:$0xff] %v5842_v50  ;;  %v740_v56 = vld [vmem:[#allocation11 + $0x130] sm:$0xff] }
  0x69   :  { %3764 = vmatmul.mubr.msk.f32.gmra.mrb[8].mxu1 %vm163_vm0, %v113_v60  ;;  %282 = vmatprep.mubr.f32.mxu0 %v6766_v1  ;;  %6856 = vst [vmem:[#allocation25_spill] sm:$0xff] %v5846_v53  ;;  %v5850_v58 = vpack.c.bf16 %v741_v49, %v737_v48  ;;  %v743_v59 = vld [vmem:[#allocation11 + $0x148] sm:$0xff]  ;;  %v749_v0 = vld [vmem:[#allocation11 + $0x178] sm:$0xff]  ;;  %v5858_v2 = vpack.c.bf16 %v740_v56, %v736_v55  ;;  %v742_v3 = vld [vmem:[#allocation11 + $0x140] sm:$0xff] }
  0x6a   :  { %395 = vmatprep.mubr.f32.mxu1 %v6766_v1  ;;  %v747_v60 = vld [vmem:[#allocation11 + $0x168] sm:$0xff]  ;;  %v746_v4 = vld [vmem:[#allocation11 + $0x160] sm:$0xff]  ;;  %v744_v6 = vld [vmem:[#allocation11 + $0x150] sm:$0xff] }
  0x6b   :  { %6857 = vst [vmem:[#allocation26_spill] sm:$0xff] %v5850_v58  ;;  %6859 = vst [vmem:[#allocation28_spill] sm:$0xff] %v5858_v2  ;;  %v5862_v5 = vpack.c.bf16 %v747_v60, %v743_v59  ;;  %v751_v10 = vld [vmem:[#allocation11 + $0x188] sm:$0xff]  ;;  %v5870_v15 = vpack.c.bf16 %v746_v4, %v742_v3  ;;  %v753_v16 = vld [vmem:[#allocation11 + $0x198] sm:$0xff] }
  0x6c   :  { %3757 = vmatmul.mubr.msk.f32.gmra.mrb[10].mxu0 %vm163_vm0, %v114_v61  ;;  %v755_v12 = vld [vmem:[#allocation11 + $0x1a8] sm:$0xff]  ;;  %v757_v18 = vld [vmem:[#allocation11 + $0x1b8] sm:$0xff]  ;;  %v754_v22 = vld [vmem:[#allocation11 + $0x1a0] sm:$0xff] }
  0x6d   :  { %3765 = vmatmul.mubr.msk.f32.gmra.mrb[10].mxu1 %vm163_vm0, %v114_v61  ;;  %288 = vmatprep.mubr.f32.mxu0 %v6766_v1  ;;  %v121_v61 = vld [vmem:[#allocation9 + $0x20] sm:$0xff]  ;;  %6860 = vst [vmem:[#allocation29_spill] sm:$0xff] %v5862_v5  ;;  %v122_v13 = vld [vmem:[#allocation9 + $0x28] sm:$0xff]  ;;  %6862 = vst [vmem:[#allocation31_spill] sm:$0xff] %v5870_v15  ;;  %v5878_v23 = vpack.c.bf16 %v755_v12, %v751_v10  ;;  %v5882_v28 = vpack.c.bf16 %v757_v18, %v753_v16 }
  0x6e   :  { %401 = vmatprep.mubr.f32.mxu1 %v6766_v1  ;;  %v752_v25 = vld [vmem:[#allocation11 + $0x190] sm:$0xff]  ;;  %v759_v29 = vld [vmem:[#allocation11 + $0x1c8] sm:$0xff]  ;;  %v761_v35 = vld [vmem:[#allocation11 + $0x1d8] sm:$0xff] }
  0x6f   :  { %6864 = vst [vmem:[#allocation33_spill] sm:$0xff] %v5878_v23  ;;  %v756_v26 = vld [vmem:[#allocation11 + $0x1b0] sm:$0xff]  ;;  %6865 = vst [vmem:[#allocation34_spill] sm:$0xff] %v5882_v28  ;;  %v763_v31 = vld [vmem:[#allocation11 + $0x1e8] sm:$0xff] }
  0x70   :  { %3758 = vmatmul.mubr.msk.f32.gmra.mrb[12].mxu0 %vm163_vm0, %v115_v62  ;;  %v123_v32 = vld [vmem:[#allocation9 + $0x30] sm:$0xff]  ;;  %v765_v36 = vld [vmem:[#allocation11 + $0x1f8] sm:$0xff]  ;;  %v5890_v38 = vpack.c.bf16 %v756_v26, %v752_v25  ;;  %v758_v39 = vld [vmem:[#allocation11 + $0x1c0] sm:$0xff]  ;;  %v5894_v42 = vpack.c.bf16 %v763_v31, %v759_v29 }
  0x71   :  { %3766 = vmatmul.mubr.msk.f32.gmra.mrb[12].mxu1 %vm163_vm0, %v115_v62  ;;  %294 = vmatprep.mubr.f32.mxu0 %v6766_v1  ;;  %v5854_v62 = vpack.c.bf16 %v738_v52, %v734_v51  ;;  %v762_v41 = vld [vmem:[#allocation11 + $0x1e0] sm:$0xff]  ;;  %v760_v44 = vld [vmem:[#allocation11 + $0x1d0] sm:$0xff]  ;;  %v767_v48 = vld [vmem:[#allocation12 + $0x8] sm:$0xff] }
  0x72   :  { %407 = vmatprep.mubr.f32.mxu1 %v6766_v1  ;;  %6867 = vst [vmem:[#allocation36_spill] sm:$0xff] %v5890_v38  ;;  %6868 = vst [vmem:[#allocation37_spill] sm:$0xff] %v5894_v42  ;;  %v764_v45 = vld [vmem:[#allocation11 + $0x1f0] sm:$0xff]  ;;  %v771_v49 = vld [vmem:[#allocation12 + $0x28] sm:$0xff]  ;;  %v5902_v52 = vpack.c.bf16 %v762_v41, %v758_v39 }
  0x73   :  { %6858 = vst [vmem:[#allocation27_spill] sm:$0xff] %v5854_v62  ;;  %v124_v51 = vld [vmem:[#allocation9 + $0x38] sm:$0xff]  ;;  %v5906_v59 = vpack.c.bf16 %v764_v45, %v760_v44  ;;  %v766_v60 = vld [vmem:[#allocation12] sm:$0xff]  ;;  %v772_v3 = vld [vmem:[#allocation12 + $0x30] sm:$0xff] }
  0x74   :  { %3759 = vmatmul.mubr.msk.f32.gmra.mrb[14].mxu0 %vm163_vm0, %v116_v63  ;;  %6870 = vst [vmem:[#allocation39_spill] sm:$0xff] %v5902_v52  ;;  %v769_v55 = vld [vmem:[#allocation12 + $0x18] sm:$0xff]  ;;  %v775_v4 = vld [vmem:[#allocation12 + $0x48] sm:$0xff]  ;;  %v776_v25 = vld [vmem:[#allocation12 + $0x50] sm:$0xff] }
  0x75   :  { %3767 = vmatmul.mubr.msk.f32.gmra.mrb[14].mxu1 %vm163_vm0, %v116_v63  ;;  %540 = vmatprep.mubr.f32.mxu0 %v6766_v1  ;;  %v745_v63 = vld [vmem:[#allocation11 + $0x158] sm:$0xff]  ;;  %6871 = vst [vmem:[#allocation40_spill] sm:$0xff] %v5906_v59  ;;  %v780_v29 = vld [vmem:[#allocation12 + $0x70] sm:$0xff]  ;;  %v783_v31 = vld [vmem:[#allocation12 + $0x88] sm:$0xff] }
  0x76   :  { %653 = vmatprep.mubr.f32.mxu1 %v6766_v1  ;;  %v5866_v9 = vpack.c.bf16 %v749_v0, %v745_v63  ;;  %v773_v56 = vld [vmem:[#allocation12 + $0x38] sm:$0xff]  ;;  %v768_v63 = vld [vmem:[#allocation12 + $0x10] sm:$0xff]  ;;  %v5910_v0 = vpack.c.bf16 %v771_v49, %v767_v48  ;;  %v5938_v41 = vpack.c.bf16 %v780_v29, %v776_v25  ;;  %v782_v45 = vld [vmem:[#allocation12 + $0x80] sm:$0xff] }
  0x77   :  { %v777_v10 = vld [vmem:[#allocation12 + $0x58] sm:$0xff]  ;;  %v5922_v16 = vpack.c.bf16 %v772_v3, %v768_v63  ;;  %v786_v48 = vld [vmem:[#allocation12 + $0xa0] sm:$0xff]  ;;  %v784_v49 = vld [vmem:[#allocation12 + $0x90] sm:$0xff] }
  0x78   :  { %3768 = vmatmul.mubr.msk.f32.vlgmr.msra.gmra.mrb[16].mxu0 %vm163_vm0, %v117_v7  ;;  %6861 = vst [vmem:[#allocation30_spill] sm:$0xff] %v5866_v9  ;;  %6872 = vst [vmem:[#allocation41_spill] sm:$0xff] %v5910_v0  ;;  %v781_v12 = vld [vmem:[#allocation12 + $0x78] sm:$0xff]  ;;  %v5948_v3 = vpack.c.bf16 %v786_v48, %v782_v45  ;;  %v796_v25 = vld [vmem:[#allocation12 + $0xf0] sm:$0xff] }
  0x79   :  { %3776 = vmatmul.mubr.msk.f32.vlgmr.msra.gmra.mrb[16].mxu1 %vm163_vm0, %v117_v7  ;;  %3972 = vmatpush1.bf16.msra.mxu0 %v5794_v8  ;;  %v748_v7 = vld [vmem:[#allocation11 + $0x170] sm:$0xff]  ;;  %v5928_v26 = vpack.c.bf16 %v781_v12, %v777_v10  ;;  %v797_v63 = vld [vmem:[#allocation12 + $0xf8] sm:$0xff]  ;;  %v790_v10 = vld [vmem:[#allocation12 + $0xc0] sm:$0xff] }
  0x7a   :  { %4004 = vmatpush1.bf16.msra.mxu1 %v5797_v11  ;;  %546 = vmatprep.mubr.f32.mxu0 %v6766_v1  ;;  %v5874_v19 = vpack.c.bf16 %v748_v7, %v744_v6  ;;  %v779_v6 = vld [vmem:[#allocation12 + $0x68] sm:$0xff]  ;;  %v5914_v7 = vpack.c.bf16 %v773_v56, %v769_v55  ;;  %v788_v55 = vld [vmem:[#allocation12 + $0xb0] sm:$0xff]  ;;  %v794_v12 = vld [vmem:[#allocation12 + $0xe0] sm:$0xff] }
  0x7b   :  { %659 = vmatprep.mubr.f32.mxu1 %v6766_v1  ;;  %3974 = vmatprep.subr.bf16.mxu0 %v5799_v14  ;;  %v5924_v18 = vpack.c.bf16 %v779_v6, %v775_v4  ;;  %v791_v56 = vld [vmem:[#allocation12 + $0xc8] sm:$0xff]  ;;  %v5952_v4 = vpack.c.bf16 %v788_v55, %v784_v49  ;;  %v798_v49 = vld [vmem:[#allocation12 + $0x100] sm:$0xff] }
  0x7c   :  { %4006 = vmatprep.subr.bf16.mxu1 %v5802_v17  ;;  %3769 = vmatmul.mubr.msk.f32.gmra.mrb[18].mxu0 %vm163_vm0, %v118_v20  ;;  %6863 = vst [vmem:[#allocation32_spill] sm:$0xff] %v5874_v19  ;;  %6873 = vst [vmem:[#allocation42_spill] sm:$0xff] %v5914_v7  ;;  %v799_v29 = vld [vmem:[#allocation12 + $0x108] sm:$0xff]  ;;  %v802_v55 = vld [vmem:[#allocation12 + $0x120] sm:$0xff] }
  0x7d   :  { %3777 = vmatmul.mubr.msk.f32.gmra.mrb[18].mxu1 %vm163_vm0, %v118_v20  ;;  %3976 = vmatpush1.bf16.msra.mxu0 %v5806_v21  ;;  %v750_v20 = vld [vmem:[#allocation11 + $0x180] sm:$0xff]  ;;  %6874 = vst [vmem:[#allocation43_spill] sm:$0xff] %v5952_v4 }
  0x7e   :  { %4008 = vmatpush1.bf16.msra.mxu1 %v5810_v24  ;;  %552 = vmatprep.mubr.f32.mxu0 %v6766_v1 }
  0x7f   :  { %665 = vmatprep.mubr.f32.mxu1 %v6766_v1  ;;  %3978 = vmatprep.subr.bf16.mxu0 %v5814_v27 }
  0x80   :  { %4010 = vmatprep.subr.bf16.mxu1 %v5818_v30  ;;  %3770 = vmatmul.mubr.msk.f32.gmra.mrb[20].mxu0 %vm163_vm0, %v119_v33 }
  0x81   :  { %3778 = vmatmul.mubr.msk.f32.gmra.mrb[20].mxu1 %vm163_vm0, %v119_v33  ;;  %3980 = vmatpush1.bf16.msra.mxu0 %v5822_v34  ;;  %v5886_v33 = vpack.c.bf16 %v754_v22, %v750_v20  ;;  %v774_v20 = vld [vmem:[#allocation12 + $0x40] sm:$0xff] }
  0x82   :  { %4012 = vmatpush1.bf16.msra.mxu1 %v5826_v37  ;;  %558 = vmatprep.mubr.f32.mxu0 %v6766_v1  ;;  %v778_v22 = vld [vmem:[#allocation12 + $0x60] sm:$0xff] }
  0x83   :  { %671 = vmatprep.mubr.f32.mxu1 %v6766_v1  ;;  %3982 = vmatprep.subr.bf16.mxu0 %v5830_v40  ;;  %6866 = vst [vmem:[#allocation35_spill] sm:$0xff] %v5886_v33  ;;  %v5934_v39 = vpack.c.bf16 %v778_v22, %v774_v20  ;;  %v792_v20 = vld [vmem:[#allocation12 + $0xd0] sm:$0xff] }
  0x84   :  { %4014 = vmatprep.subr.bf16.mxu1 %v5834_v43  ;;  %3771 = vmatmul.mubr.msk.f32.gmra.mrb[22].mxu0 %vm163_vm0, %v120_v46  ;;  %v5964_v45 = vpack.c.bf16 %v796_v25, %v792_v20 }
  0x85   :  { %3779 = vmatmul.mubr.msk.f32.gmra.mrb[22].mxu1 %vm163_vm0, %v120_v46  ;;  %3984 = vmatpush1.bf16.msra.mxu0 %v5838_v47  ;;  %v5898_v46 = vpack.c.bf16 %v765_v36, %v761_v35  ;;  %v785_v35 = vld [vmem:[#allocation12 + $0x98] sm:$0xff] }
  0x86   :  { %4016 = vmatpush1.bf16.msra.mxu1 %v5842_v50  ;;  %564 = vmatprep.mubr.f32.mxu0 %v6766_v1  ;;  %v789_v36 = vld [vmem:[#allocation12 + $0xb8] sm:$0xff]  ;;  %6878 = vst [vmem:[#allocation47_spill] sm:$0xff] %v5964_v45 }
  0x87   :  { %677 = vmatprep.mubr.f32.mxu1 %v6766_v1  ;;  %3986 = vmatprep.subr.bf16.mxu0 %v5846_v53  ;;  %6869 = vst [vmem:[#allocation38_spill] sm:$0xff] %v5898_v46 }
  0x88   :  { %4018 = vmatprep.subr.bf16.mxu1 %v5850_v58  ;;  %3772 = vmatmul.mubr.msk.f32.gmra.mrb[24].mxu0 %vm163_vm0, %v121_v61 }
  0x89   :  { %3780 = vmatmul.mubr.msk.f32.gmra.mrb[24].mxu1 %vm163_vm0, %v121_v61  ;;  %3988 = vmatpush1.bf16.msra.mxu0 %v5854_v62  ;;  %v770_v61 = vld [vmem:[#allocation12 + $0x20] sm:$0xff] }
  0x8a   :  { %4020 = vmatpush1.bf16.msra.mxu1 %v5858_v2  ;;  %570 = vmatprep.mubr.f32.mxu0 %v6766_v1 }
  0x8b   :  { %683 = vmatprep.mubr.f32.mxu1 %v6766_v1  ;;  %3990 = vmatprep.subr.bf16.mxu0 %v5862_v5 }
  0x8c   :  { %4022 = vmatprep.subr.bf16.mxu1 %v5866_v9  ;;  %3773 = vmatmul.mubr.msk.f32.gmra.mrb[26].mxu0 %vm163_vm0, %v122_v13 }
  0x8d   :  { %3781 = vmatmul.mubr.msk.f32.gmra.mrb[26].mxu1 %vm163_vm0, %v122_v13  ;;  %3992 = vmatpush1.bf16.msra.mxu0 %v5870_v15  ;;  %v5918_v13 = vpack.c.bf16 %v770_v61, %v766_v60  ;;  %v795_v60 = vld [vmem:[#allocation12 + $0xe8] sm:$0xff]  ;;  %v793_v61 = vld [vmem:[#allocation12 + $0xd8] sm:$0xff] }
  0x8e   :  { %4024 = vmatpush1.bf16.msra.mxu1 %v5874_v19  ;;  %576 = vmatprep.mubr.f32.mxu0 %v6766_v1  ;;  %v5954_v6 = vpack.c.bf16 %v795_v60, %v791_v56  ;;  %v5957_v22 = vpack.c.bf16 %v797_v63, %v793_v61  ;;  %v800_v56 = vld [vmem:[#allocation12 + $0x110] sm:$0xff]  ;;  %v807_v63 = vld [vmem:[#allocation12 + $0x148] sm:$0xff] }
  0x8f   :  { %689 = vmatprep.mubr.f32.mxu1 %v6766_v1  ;;  %3994 = vmatprep.subr.bf16.mxu0 %v5878_v23  ;;  %v804_v61 = vld [vmem:[#allocation12 + $0x130] sm:$0xff] }
  0x90   :  { %4026 = vmatprep.subr.bf16.mxu1 %v5882_v28  ;;  %3774 = vmatmul.mubr.msk.f32.gmra.mrb[28].mxu0 %vm163_vm0, %v123_v32  ;;  %6875 = vst [vmem:[#allocation44_spill] sm:$0xff] %v5954_v6  ;;  %6876 = vst [vmem:[#allocation45_spill] sm:$0xff] %v5957_v22  ;;  %v5976_v20 = vpack.c.bf16 %v804_v61, %v800_v56  ;;  %v814_v61 = vld [vmem:[#allocation12 + $0x180] sm:$0xff] }
  0x91   :  { %3782 = vmatmul.mubr.msk.f32.gmra.mrb[28].mxu1 %vm163_vm0, %v123_v32  ;;  %3996 = vmatpush1.bf16.msra.mxu0 %v5886_v33  ;;  %v787_v32 = vld [vmem:[#allocation12 + $0xa8] sm:$0xff] }
  0x92   :  { %4028 = vmatpush1.bf16.msra.mxu1 %v5890_v38  ;;  %582 = vmatprep.mubr.f32.mxu0 %v6766_v1  ;;  %v5940_v44 = vpack.c.bf16 %v787_v32, %v783_v31  ;;  %v803_v31 = vld [vmem:[#allocation12 + $0x128] sm:$0xff]  ;;  %v801_v32 = vld [vmem:[#allocation12 + $0x118] sm:$0xff]  ;;  %6882 = vst [vmem:[#allocation51_spill] sm:$0xff] %v5976_v20 }
  0x93   :  { %695 = vmatprep.mubr.f32.mxu1 %v6766_v1  ;;  %3998 = vmatprep.subr.bf16.mxu0 %v5894_v42  ;;  %v5966_v48 = vpack.c.bf16 %v803_v31, %v799_v29  ;;  %v806_v29 = vld [vmem:[#allocation12 + $0x140] sm:$0xff] }
  0x94   :  { %4030 = vmatprep.subr.bf16.mxu1 %v5898_v46  ;;  %3775 = vmatmul.mubr.msk.f32.gmra.mrb[30].mxu0 %vm163_vm0, %v124_v51  ;;  %v810_v31 = vld [vmem:[#allocation12 + $0x160] sm:$0xff] }
  0x95   :  { %3783 = vmatmul.mubr.msk.f32.gmra.mrb[30].mxu1 %vm163_vm0, %v124_v51  ;;  %4000 = vmatpush1.bf16.msra.mxu0 %v5902_v52  ;;  %v5943_v51 = vpack.c.bf16 %v789_v36, %v785_v35  ;;  %v805_v35 = vld [vmem:[#allocation12 + $0x138] sm:$0xff]  ;;  %v5960_v36 = vpack.c.bf16 %v794_v12, %v790_v10  ;;  %6879 = vst [vmem:[#allocation48_spill] sm:$0xff] %v5966_v48 }
  0x96   :  { %4032 = vmatpush1.bf16.msra.mxu1 %v5906_v59  ;;  %898 = vmatprep.mubr.f32.mxu0 %v6766_v1  ;;  %v5969_v60 = vpack.c.bf16 %v805_v35, %v801_v32  ;;  %v809_v10 = vld [vmem:[#allocation12 + $0x158] sm:$0xff]  ;;  %v808_v32 = vld [vmem:[#allocation12 + $0x150] sm:$0xff] }
  0x97   :  { %969 = vmatprep.mubr.f32.mxu1 %v6766_v1  ;;  %4034 = vmatprep.subr.bf16.mxu0 %v5910_v0  ;;  %6877 = vst [vmem:[#allocation46_spill] sm:$0xff] %v5960_v36  ;;  %v813_v12 = vld [vmem:[#allocation12 + $0x178] sm:$0xff] }
  0x98   :  { %4066 = vmatprep.subr.bf16.mxu1 %v5914_v7  ;;  %899 = vmatmul.mubr.f32.vlgmr.msra.gmra.mrb[0].mxu0 %v6766_v1  ;;  %6880 = vst [vmem:[#allocation49_spill] sm:$0xff] %v5969_v60  ;;  %v5981_v35 = vpack.c.bf16 %v813_v12, %v809_v10  ;;  %v816_v10 = vld [vmem:[#allocation12 + $0x190] sm:$0xff] }
  0x99   :  { %970 = vmatmul.mubr.f32.vlgmr.msra.gmra.mrb[0].mxu1 %v6766_v1  ;;  %4036 = vmatpush1.bf16.msra.mxu0 %v5918_v13 }
  0x9a   :  { %4068 = vmatpush1.bf16.msra.mxu1 %v5922_v16  ;;  %4038 = vmatprep.subr.bf16.mxu0 %v5924_v18  ;;  %6883 = vst [vmem:[#allocation52_spill] sm:$0xff] %v5981_v35 }
  0x9b   :  { %4070 = vmatprep.subr.bf16.mxu1 %v5928_v26  ;;  %1044 = vmatprep.mubr.f32.mxu0 %v6766_v1 }
  0x9c   :  { %1115 = vmatprep.mubr.f32.mxu1 %v6766_v1  ;;  %v811_v1 = vld [vmem:[#allocation12 + $0x168] sm:$0xff] }
  0x9d   :  { %4040 = vmatpush1.bf16.msra.mxu0 %v5934_v39  ;;  %v5978_v25 = vpack.c.bf16 %v811_v1, %v807_v63  ;;  %v818_v63 = vld [vmem:[#allocation12 + $0x1a0] sm:$0xff] }
  0x9e   :  { %4072 = vmatpush1.bf16.msra.mxu1 %v5938_v41  ;;  %4042 = vmatprep.subr.bf16.mxu0 %v5940_v44 }
  0x9f   :  { %4074 = vmatprep.subr.bf16.mxu1 %v5943_v51 }
  0xa1   :  { %4044 = vmatpush1.bf16.msra.mxu0 %v5948_v3 }
  0xa2   :  { %4076 = vmatpush1.bf16.msra.mxu1 %v5952_v4  ;;  %4046 = vmatprep.subr.bf16.mxu0 %v5954_v6  ;;  %v5972_v4 = vpack.c.bf16 %v802_v55, %v798_v49  ;;  %v815_v6 = vld [vmem:[#allocation12 + $0x188] sm:$0xff]  ;;  %v817_v49 = vld [vmem:[#allocation12 + $0x198] sm:$0xff] }
  0xa3   :  { %4078 = vmatprep.subr.bf16.mxu1 %v5957_v22  ;;  %v812_v22 = vld [vmem:[#allocation12 + $0x170] sm:$0xff]  ;;  %v821_v55 = vld [vmem:[#allocation12 + $0x1b8] sm:$0xff] }
  0xa4   :  { %6881 = vst [vmem:[#allocation50_spill] sm:$0xff] %v5972_v4  ;;  %v5988_v1 = vpack.c.bf16 %v812_v22, %v808_v32  ;;  %v5993_v12 = vpack.c.bf16 %v821_v55, %v817_v49  ;;  %v826_v32 = vld [vmem:[#allocation12 + $0x1e0] sm:$0xff]  ;;  %v824_v55 = vld [vmem:[#allocation12 + $0x1d0] sm:$0xff] }
  0xa5   :  { %4048 = vmatpush1.bf16.msra.mxu0 %v5960_v36  ;;  %v819_v36 = vld [vmem:[#allocation12 + $0x1a8] sm:$0xff] }
  0xa6   :  { %4080 = vmatpush1.bf16.msra.mxu1 %v5964_v45  ;;  %4050 = vmatprep.subr.bf16.mxu0 %v5966_v48  ;;  %v5984_v45 = vpack.c.bf16 %v810_v31, %v806_v29  ;;  %v5990_v56 = vpack.c.bf16 %v819_v36, %v815_v6  ;;  %v823_v48 = vld [vmem:[#allocation12 + $0x1c8] sm:$0xff]  ;;  %v825_v29 = vld [vmem:[#allocation12 + $0x1d8] sm:$0xff]  ;;  %v822_v36 = vld [vmem:[#allocation12 + $0x1c0] sm:$0xff] }
  0xa7   :  { %4082 = vmatprep.subr.bf16.mxu1 %v5969_v60  ;;  %v820_v60 = vld [vmem:[#allocation12 + $0x1b0] sm:$0xff]  ;;  %v829_v31 = vld [vmem:[#allocation12 + $0x1f8] sm:$0xff] }
  0xa8   :  { %v6000_v6 = vpack.c.bf16 %v820_v60, %v816_v10  ;;  %v6005_v49 = vpack.c.bf16 %v829_v31, %v825_v29  ;;  %v141_v10 = vld [vmem:[%s6758_s4] sm:$0xf] }
  0xa9   :  { %4052 = vmatpush1.bf16.msra.mxu0 %v5972_v4  ;;  %v827_v4 = vld [vmem:[#allocation12 + $0x1e8] sm:$0xff] }
  0xaa   :  { %4084 = vmatpush1.bf16.msra.mxu1 %v5976_v20  ;;  %4054 = vmatprep.subr.bf16.mxu0 %v5978_v25  ;;  %v5996_v20 = vpack.c.bf16 %v818_v63, %v814_v61  ;;  %v6002_v22 = vpack.c.bf16 %v827_v4, %v823_v48  ;;  %v6008_v61 = vpack.c.bf16 %v826_v32, %v822_v36  ;;  %v6884_v4 = vmov 0.0  }
  0xab   :  { %4086 = vmatprep.subr.bf16.mxu1 %v5981_v35  ;;  %v828_v35 = vld [vmem:[#allocation12 + $0x1f0] sm:$0xff]  ;;  %v143_v48 = vlaneseq }
  0xac   :  { %v6012_v60 = vpack.c.bf16 %v828_v35, %v824_v55 }
  0xad   :  { %4056 = vmatpush1.bf16.msra.mxu0 %v5984_v45  ;;  %v144_v35 = vshrl.u32 %v143_v48, 7 }
  0xae   :  { %4088 = vmatpush1.bf16.msra.mxu1 %v5988_v1  ;;  %4058 = vmatprep.subr.bf16.mxu0 %v5990_v56 }
  0xaf   :  { %4090 = vmatprep.subr.bf16.mxu1 %v5993_v12  ;;  %v145_v63 = vsub.s32 0, %v144_v35  ;;  %v149_v29 = vsub.s32 1, %v144_v35  ;;  %v157_v55 = vsub.s32 3, %v144_v35 }
  0xb1   :  { %4060 = vmatpush1.bf16.msra.mxu0 %v5996_v20  ;;  %v6058_v31 = vrot.slane %v141_v10, %v145_v63  ;;  %v6060_v36 = vrot.slane %v141_v10, %v149_v29 }
  0xb2   :  { %4092 = vmatpush1.bf16.msra.mxu1 %v6000_v6  ;;  %4062 = vmatprep.subr.bf16.mxu0 %v6002_v22 }
  0xb3   :  { %4094 = vmatprep.subr.bf16.mxu1 %v6005_v49  ;;  %6885 = vst [vmem:[#allocation53_spill] sm:$0xff] %v6058_v31 }
  0xb5   :  { %4064 = vmatpush1.bf16.msra.mxu0 %v6008_v61 }
  0xb6   :  { %4096 = vmatpush1.bf16.msra.mxu1 %v6012_v60  ;;  %4098 = vmatprep.subr.bf16.mxu0 %v5761_v54 }
  0xb7   :  { %4130 = vmatprep.subr.bf16.mxu1 %v5764_v57 }
  0xb8   :  { %1045 = vmatmul.mubr.f32.vlgmr.msra.gmra.mrb[30].mxu0 %v6884_v4 }
  0xb9   :  { %1116 = vmatmul.mubr.f32.vlgmr.msra.gmra.mrb[30].mxu1 %v6884_v4  ;;  %4100 = vmatpush1.bf16.msra.mxu0 %v5794_v8 }
  0xba   :  { %4132 = vmatpush1.bf16.msra.mxu1 %v5797_v11  ;;  %4102 = vmatprep.subr.bf16.mxu0 %v5799_v14 }
  0xbb   :  { %4134 = vmatprep.subr.bf16.mxu1 %v5802_v17  ;;  %1238 = vmatprep.mubr.f32.mxu0 %v6884_v4 }
  0xbc   :  { %1309 = vmatprep.mubr.f32.mxu1 %v6884_v4 }
  0xbd   :  { %4104 = vmatpush1.bf16.msra.mxu0 %v5806_v21 }
  0xbe   :  { %4136 = vmatpush1.bf16.msra.mxu1 %v5810_v24  ;;  %4106 = vmatprep.subr.bf16.mxu0 %v5814_v27 }
  0xbf   :  { %4138 = vmatprep.subr.bf16.mxu1 %v5818_v30 }
  0xc1   :  { %4108 = vmatpush1.bf16.msra.mxu0 %v5822_v34 }
  0xc2   :  { %4140 = vmatpush1.bf16.msra.mxu1 %v5826_v37  ;;  %4110 = vmatprep.subr.bf16.mxu0 %v5830_v40 }
  0xc3   :  { %4142 = vmatprep.subr.bf16.mxu1 %v5834_v43 }
  0xc5   :  { %4112 = vmatpush1.bf16.msra.mxu0 %v5838_v47 }
  0xc6   :  { %4144 = vmatpush1.bf16.msra.mxu1 %v5842_v50  ;;  %4114 = vmatprep.subr.bf16.mxu0 %v5846_v53 }
  0xc7   :  { %4146 = vmatprep.subr.bf16.mxu1 %v5850_v58 }
  0xc9   :  { %4116 = vmatpush1.bf16.msra.mxu0 %v5854_v62 }
  0xca   :  { %4148 = vmatpush1.bf16.msra.mxu1 %v5858_v2  ;;  %4118 = vmatprep.subr.bf16.mxu0 %v5862_v5 }
  0xcb   :  { %4150 = vmatprep.subr.bf16.mxu1 %v5866_v9 }
  0xcd   :  { %4120 = vmatpush1.bf16.msra.mxu0 %v5870_v15 }
  0xce   :  { %4152 = vmatpush1.bf16.msra.mxu1 %v5874_v19  ;;  %4122 = vmatprep.subr.bf16.mxu0 %v5878_v23 }
  0xcf   :  { %4154 = vmatprep.subr.bf16.mxu1 %v5882_v28 }
  0xd1   :  { %4124 = vmatpush1.bf16.msra.mxu0 %v5886_v33  ;;  %v153_v33 = vsub.s32 2, %v144_v35 }
  0xd2   :  { %4156 = vmatpush1.bf16.msra.mxu1 %v5890_v38  ;;  %4126 = vmatprep.subr.bf16.mxu0 %v5894_v42  ;;  %v6064_v38 = vrot.slane %v141_v10, %v157_v55 }
  0xd3   :  { %4158 = vmatprep.subr.bf16.mxu1 %v5898_v46  ;;  %v6067_v23 = vrot.slane %v141_v10, %v153_v33 }
  0xd4   :  { %6886 = vst [vmem:[#allocation54_spill] sm:$0xff] %v6064_v38 }
  0xd5   :  { %4128 = vmatpush1.bf16.msra.mxu0 %v5902_v52  ;;  %6887 = vst [vmem:[#allocation55_spill] sm:$0xff] %v6067_v23 }
  0xd6   :  { %4160 = vmatpush1.bf16.msra.mxu1 %v5906_v59  ;;  %4162 = vmatprep.subr.bf16.mxu0 %v5910_v0 }
  0xd7   :  { %4194 = vmatprep.subr.bf16.mxu1 %v5914_v7 }
 0x16b   :  { %v900_v32 = vpop.f32.mrb[0].mxu0 }
 0x16c   :  { %v5041_v59 = vadd.f32 %v900_v32, %v6058_v31  ;;  %v971_v52 = vpop.f32.mrb[0].mxu1  ;;  %v902_v0 = vpop.f32.mrb[1].mxu0 }
 0x16d   :  { %v5042_v7 = vadd.f32 %v902_v0, %v6060_v36  ;;  %v973_v46 = vpop.f32.mrb[1].mxu1  ;;  %v5057_v15 = vadd.f32 %v971_v52, %v6067_v23 }
 0x16e   :  { %v3784_v48 = vmul.f32 -1.442695, %v5041_v59  ;;  %v5058_v28 = vadd.f32 %v973_v46, %v6064_v38 }
 0x16f   :  { %v3785_v42 = vmul.f32 -1.442695, %v5042_v7 }
 0x170   :  { %5180 = vpow2.f32 %v3784_v48  ;;  %v3786_v19 = vmul.f32 -1.442695, %v5058_v28 }
 0x171   :  { %5182 = vpow2.f32 %v3785_v42  ;;  %v430_v42 = vld [vmem:[%s6761_s7] sm:$0xf] }
 0x172   :  { %5184 = vpow2.f32 %v3786_v19  ;;  %v6073_v48 = vrot.slane %v430_v42, %v145_v63  ;;  %v6075_v23 = vrot.slane %v430_v42, %v149_v29  ;;  %v6082_v63 = vrot.slane %v430_v42, %v157_v55  ;;  %v6890_v55 = vld [vmem:[#allocation44_spill] sm:$0xff] }
 0x173   :  { %5186 = vtanh.f32 %v5057_v15 }
 0x174   :  { %6888 = vst [vmem:[#allocation56_spill] sm:$0xff] %v6073_v48 }
 0x17a   :  { %v5181_v32 = vpop.eup %5180 }
 0x17b   :  { %v5183_v31 = vpop.eup %5182  ;;  %v1129_v9 = vadd.f32 1.0, %v5181_v32 }
 0x17c   :  { %v1135_v0 = vadd.f32 1.0, %v5183_v31  ;;  %v5185_v59 = vpop.eup %5184 }
 0x17d   :  { %5188 = vrcp.f32 %v1129_v9  ;;  %v5187_v7 = vpop.eup %5186  ;;  %v1142_v28 = vadd.f32 1.0, %v5185_v59 }
 0x17e   :  { %5190 = vrcp.f32 %v1135_v0 }
 0x17f   :  { %5192 = vrcp.f32 %v1142_v28 }
 0x187   :  { %v5189_v46 = vpop.eup %5188 }
 0x188   :  { %v5191_v35 = vpop.eup %5190  ;;  %v1146_v10 = vmul.f32 %v5189_v46, %v5187_v7  ;;  %v6085_v46 = vrot.slane %v430_v42, %v153_v33  ;;  %v6889_v33 = vld [vmem:[#allocation43_spill] sm:$0xff]  ;;  %v6891_v42 = vld [vmem:[#allocation45_spill] sm:$0xff] }
 0x189   :  { %v1145_v52 = vmul.f32 0.0, %v5191_v35  ;;  %v5193_v35 = vpop.eup %5192 }
 0x18b   :  { %v6077_v19 = vadd.f32 %v1146_v10, %v1145_v52  ;;  %v1046_v15 = vpop.f32.mrb[30].mxu0 }
 0x18c   :  { %v5087_v9 = vadd.f32 %v1046_v15, %v6073_v48  ;;  %v1117_v31 = vpop.f32.mrb[30].mxu1  ;;  %v1048_v32 = vpop.f32.mrb[31].mxu0 }
 0x18d   :  { %5194 = vtanh.f32 %v6077_v19  ;;  %v5088_v0 = vadd.f32 %v1048_v32, %v6075_v23  ;;  %v1119_v38 = vpop.f32.mrb[31].mxu1  ;;  %v5103_v52 = vadd.f32 %v1117_v31, %v6085_v46 }
 0x18e   :  { %v3787_v7 = vmul.f32 -1.442695, %v5087_v9  ;;  %v5104_v29 = vadd.f32 %v1119_v38, %v6082_v63 }
 0x18f   :  { %v3788_v59 = vmul.f32 -1.442695, %v5088_v0 }
 0x190   :  { %5196 = vpow2.f32 %v3787_v7  ;;  %v3789_v28 = vmul.f32 -1.442695, %v5104_v29  ;;  %v6892_v7 = vld [vmem:[#allocation46_spill] sm:$0xff] }
 0x191   :  { %5198 = vpow2.f32 %v3788_v59  ;;  %v6893_v59 = vld [vmem:[#allocation47_spill] sm:$0xff] }
 0x192   :  { %5200 = vpow2.f32 %v3789_v28  ;;  %v6894_v28 = vld [vmem:[#allocation48_spill] sm:$0xff] }
 0x193   :  { %5202 = vtanh.f32 %v5103_v52  ;;  %v6895_v52 = vld [vmem:[#allocation49_spill] sm:$0xff] }
 0x197   :  { %v5195_v10 = vpop.eup %5194 }
 0x198   :  { %v1149_v15 = vmul.f32 %v5195_v10, %v5193_v35 }
 0x19a   :  { %v5197_v48 = vpop.eup %5196  ;;  %1239 = vmatmul.mubr.f32.vlgmr.msra.gmra.mrb[2].mxu0 %v1149_v15  ;;  %1310 = vmatmul.mubr.f32.vlgmr.msra.gmra.mrb[2].mxu1 %v1149_v15 }
 0x19b   :  { %v5199_v32 = vpop.eup %5198  ;;  %v1153_v9 = vadd.f32 1.0, %v5197_v48  ;;  %4164 = vmatpush1.bf16.msra.mxu0 %v5918_v13  ;;  %4196 = vmatpush1.bf16.msra.mxu1 %v5922_v16 }
 0x19c   :  { %v1159_v38 = vadd.f32 1.0, %v5199_v32  ;;  %4166 = vmatprep.subr.bf16.mxu0 %v5924_v18  ;;  %4198 = vmatprep.subr.bf16.mxu1 %v5928_v26  ;;  %v5201_v48 = vpop.eup %5200 }
 0x19d   :  { %5204 = vrcp.f32 %v1153_v9  ;;  %1384 = vmatprep.mubr.f32.mxu0 %v6884_v4  ;;  %1455 = vmatprep.mubr.f32.mxu1 %v6884_v4  ;;  %v5203_v31 = vpop.eup %5202  ;;  %v1166_v10 = vadd.f32 1.0, %v5201_v48  ;;  %v6896_v9 = vld [vmem:[#allocation50_spill] sm:$0xff] }
 0x19e   :  { %5206 = vrcp.f32 %v1159_v38  ;;  %v6897_v38 = vld [vmem:[#allocation51_spill] sm:$0xff] }
 0x19f   :  { %4168 = vmatpush1.bf16.msra.mxu0 %v5934_v39  ;;  %4200 = vmatpush1.bf16.msra.mxu1 %v5938_v41  ;;  %5208 = vrcp.f32 %v1166_v10  ;;  %v6901_v10 = vld [vmem:[#allocation32_spill] sm:$0xff] }
 0x1a0   :  { %4170 = vmatprep.subr.bf16.mxu0 %v5940_v44  ;;  %4202 = vmatprep.subr.bf16.mxu1 %v5943_v51 }
 0x1a3   :  { %4172 = vmatpush1.bf16.msra.mxu0 %v5948_v3  ;;  %4204 = vmatpush1.bf16.msra.mxu1 %v6889_v33 }
 0x1a4   :  { %4174 = vmatprep.subr.bf16.mxu0 %v6890_v55  ;;  %4206 = vmatprep.subr.bf16.mxu1 %v6891_v42 }
 0x1a7   :  { %v5205_v0 = vpop.eup %5204  ;;  %4176 = vmatpush1.bf16.msra.mxu0 %v6892_v7  ;;  %4208 = vmatpush1.bf16.msra.mxu1 %v6893_v59  ;;  %v6898_v7 = vld [vmem:[#allocation52_spill] sm:$0xff] }
 0x1a8   :  { %v5207_v29 = vpop.eup %5206  ;;  %v1170_v35 = vmul.f32 %v5205_v0, %v5203_v31  ;;  %4178 = vmatprep.subr.bf16.mxu0 %v6894_v28  ;;  %4210 = vmatprep.subr.bf16.mxu1 %v6895_v52 }
 0x1a9   :  { %v1169_v15 = vmul.f32 0.0, %v5207_v29  ;;  %v5209_v48 = vpop.eup %5208  ;;  %v6899_v29 = vld [vmem:[#allocation30_spill] sm:$0xff] }
 0x1ab   :  { %v6106_v32 = vadd.f32 %v1170_v35, %v1169_v15  ;;  %4180 = vmatpush1.bf16.msra.mxu0 %v6896_v9  ;;  %4212 = vmatpush1.bf16.msra.mxu1 %v6897_v38  ;;  %v6900_v35 = vld [vmem:[#allocation31_spill] sm:$0xff]  ;;  %v6902_v15 = vld [vmem:[#allocation33_spill] sm:$0xff] }
 0x1ac   :  { %4182 = vmatprep.subr.bf16.mxu0 %v5978_v25  ;;  %4214 = vmatprep.subr.bf16.mxu1 %v6898_v7 }
 0x1ad   :  { %5210 = vtanh.f32 %v6106_v32 }
 0x1af   :  { %4184 = vmatpush1.bf16.msra.mxu0 %v5984_v45  ;;  %4216 = vmatpush1.bf16.msra.mxu1 %v5988_v1 }
 0x1b0   :  { %4186 = vmatprep.subr.bf16.mxu0 %v5990_v56  ;;  %4218 = vmatprep.subr.bf16.mxu1 %v5993_v12 }
 0x1b3   :  { %4188 = vmatpush1.bf16.msra.mxu0 %v5996_v20  ;;  %4220 = vmatpush1.bf16.msra.mxu1 %v6000_v6 }
 0x1b4   :  { %4190 = vmatprep.subr.bf16.mxu0 %v6002_v22  ;;  %4222 = vmatprep.subr.bf16.mxu1 %v6005_v49 }
 0x1b7   :  { %v5211_v31 = vpop.eup %5210  ;;  %4192 = vmatpush1.bf16.msra.mxu0 %v6008_v61  ;;  %4224 = vmatpush1.bf16.msra.mxu1 %v6012_v60 }
 0x1b8   :  { %v1173_v0 = vmul.f32 %v5211_v31, %v5209_v48  ;;  %4226 = vmatprep.subr.bf16.mxu0 %v5761_v54  ;;  %4258 = vmatprep.subr.bf16.mxu1 %v5764_v57  ;;  %v6903_v48 = vld [vmem:[#allocation34_spill] sm:$0xff]  ;;  %v6904_v31 = vld [vmem:[#allocation35_spill] sm:$0xff] }
 0x1ba   :  { %1385 = vmatmul.mubr.f32.vlgmr.msra.gmra.mrb[28].mxu0 %v1173_v0  ;;  %1456 = vmatmul.mubr.f32.vlgmr.msra.gmra.mrb[28].mxu1 %v1173_v0  ;;  %v6905_v0 = vld [vmem:[#allocation36_spill] sm:$0xff] }
 0x1bb   :  { %4228 = vmatpush1.bf16.msra.mxu0 %v5794_v8  ;;  %4260 = vmatpush1.bf16.msra.mxu1 %v5797_v11 }
 0x1bc   :  { %4230 = vmatprep.subr.bf16.mxu0 %v5799_v14  ;;  %4262 = vmatprep.subr.bf16.mxu1 %v5802_v17 }
 0x1bd   :  { %1578 = vmatprep.mubr.f32.mxu0 %v6884_v4  ;;  %1649 = vmatprep.mubr.f32.mxu1 %v6884_v4 }
 0x1bf   :  { %4232 = vmatpush1.bf16.msra.mxu0 %v5806_v21  ;;  %4264 = vmatpush1.bf16.msra.mxu1 %v5810_v24 }
 0x1c0   :  { %4234 = vmatprep.subr.bf16.mxu0 %v5814_v27  ;;  %4266 = vmatprep.subr.bf16.mxu1 %v5818_v30 }
 0x1c3   :  { %4236 = vmatpush1.bf16.msra.mxu0 %v5822_v34  ;;  %4268 = vmatpush1.bf16.msra.mxu1 %v5826_v37 }
 0x1c4   :  { %4238 = vmatprep.subr.bf16.mxu0 %v5830_v40  ;;  %4270 = vmatprep.subr.bf16.mxu1 %v5834_v43 }
 0x1c7   :  { %4240 = vmatpush1.bf16.msra.mxu0 %v5838_v47  ;;  %4272 = vmatpush1.bf16.msra.mxu1 %v5842_v50 }
 0x1c8   :  { %4242 = vmatprep.subr.bf16.mxu0 %v5846_v53  ;;  %4274 = vmatprep.subr.bf16.mxu1 %v5850_v58  ;;  %v6906_v58 = vld [vmem:[#allocation37_spill] sm:$0xff] }
 0x1c9   :  { %v6912_v53 = vld [vmem:[#allocation53_spill] sm:$0xff] }
 0x1cb   :  { %4244 = vmatpush1.bf16.msra.mxu0 %v5854_v62  ;;  %4276 = vmatpush1.bf16.msra.mxu1 %v5858_v2  ;;  %v6907_v62 = vld [vmem:[#allocation38_spill] sm:$0xff]  ;;  %v6908_v2 = vld [vmem:[#allocation39_spill] sm:$0xff] }
 0x1cc   :  { %4246 = vmatprep.subr.bf16.mxu0 %v5862_v5  ;;  %4278 = vmatprep.subr.bf16.mxu1 %v6899_v29  ;;  %v6909_v5 = vld [vmem:[#allocation40_spill] sm:$0xff]  ;;  %v6910_v29 = vld [vmem:[#allocation41_spill] sm:$0xff] }
 0x1cf   :  { %4248 = vmatpush1.bf16.msra.mxu0 %v6900_v35  ;;  %4280 = vmatpush1.bf16.msra.mxu1 %v6901_v10  ;;  %v6911_v35 = vld [vmem:[#allocation42_spill] sm:$0xff] }
 0x1d0   :  { %4250 = vmatprep.subr.bf16.mxu0 %v6902_v15  ;;  %4282 = vmatprep.subr.bf16.mxu1 %v6903_v48 }
 0x1d3   :  { %4252 = vmatpush1.bf16.msra.mxu0 %v6904_v31  ;;  %4284 = vmatpush1.bf16.msra.mxu1 %v6905_v0 }
 0x1d4   :  { %4254 = vmatprep.subr.bf16.mxu0 %v6906_v58  ;;  %4286 = vmatprep.subr.bf16.mxu1 %v6907_v62  ;;  %v6913_v62 = vld [vmem:[#allocation54_spill] sm:$0xff] }
 0x1d7   :  { %4256 = vmatpush1.bf16.msra.mxu0 %v6908_v2  ;;  %4288 = vmatpush1.bf16.msra.mxu1 %v6909_v5  ;;  %v6914_v5 = vld [vmem:[#allocation55_spill] sm:$0xff] }
 0x1d8   :  { %4290 = vmatprep.subr.bf16.mxu0 %v6910_v29  ;;  %4322 = vmatprep.subr.bf16.mxu1 %v6911_v35 }
 0x26d   :  { %v1240_v10 = vpop.f32.mrb[2].mxu0  ;;  %v1311_v15 = vpop.f32.mrb[2].mxu1 }
 0x26e   :  { %v5043_v48 = vadd.f32 %v1240_v10, %v6912_v53  ;;  %v1242_v50 = vpop.f32.mrb[3].mxu0  ;;  %v1313_v31 = vpop.f32.mrb[3].mxu1  ;;  %v5059_v40 = vadd.f32 %v1311_v15, %v6914_v5  ;;  %v6915_v5 = vld [vmem:[#allocation56_spill] sm:$0xff] }
 0x26f   :  { %v5044_v0 = vadd.f32 %v1242_v50, %v6060_v36  ;;  %v5060_v2 = vadd.f32 %v1313_v31, %v6913_v62 }
 0x270   :  { %v3790_v47 = vmul.f32 -1.442695, %v5043_v48 }
 0x271   :  { %v3791_v58 = vmul.f32 -1.442695, %v5044_v0  ;;  %v3792_v43 = vmul.f32 -1.442695, %v5060_v2 }
 0x272   :  { %5212 = vpow2.f32 %v3790_v47 }
 0x273   :  { %5214 = vpow2.f32 %v3791_v58 }
 0x274   :  { %5216 = vpow2.f32 %v3792_v43 }
 0x275   :  { %5218 = vtanh.f32 %v5059_v40 }
 0x27c   :  { %v5213_v29 = vpop.eup %5212 }
 0x27d   :  { %v5215_v37 = vpop.eup %5214  ;;  %v1469_v35 = vadd.f32 1.0, %v5213_v29 }
 0x27e   :  { %v1475_v34 = vadd.f32 1.0, %v5215_v37  ;;  %v5217_v10 = vpop.eup %5216 }
 0x27f   :  { %5220 = vrcp.f32 %v1469_v35  ;;  %v5219_v53 = vpop.eup %5218  ;;  %v1482_v47 = vadd.f32 1.0, %v5217_v10 }
 0x280   :  { %5222 = vrcp.f32 %v1475_v34 }
 0x281   :  { %5224 = vrcp.f32 %v1482_v47 }
 0x289   :  { %v5221_v50 = vpop.eup %5220 }
 0x28a   :  { %v5223_v48 = vpop.eup %5222  ;;  %v1486_v0 = vmul.f32 %v5221_v50, %v5219_v53 }
 0x28b   :  { %v1485_v58 = vmul.f32 %v5223_v48, %v6077_v19  ;;  %v5225_v19 = vpop.eup %5224 }
 0x28d   :  { %v6164_v31 = vadd.f32 %v1486_v0, %v1485_v58  ;;  %v1386_v2 = vpop.f32.mrb[28].mxu0  ;;  %v1457_v15 = vpop.f32.mrb[28].mxu1 }
 0x28e   :  { %v5085_v29 = vadd.f32 %v1386_v2, %v6915_v5  ;;  %v1388_v43 = vpop.f32.mrb[29].mxu0  ;;  %v1459_v40 = vpop.f32.mrb[29].mxu1  ;;  %v5101_v48 = vadd.f32 %v1457_v15, %v6085_v46 }
 0x28f   :  { %v5086_v37 = vadd.f32 %v1388_v43, %v6075_v23  ;;  %5226 = vtanh.f32 %v6164_v31  ;;  %v5102_v53 = vadd.f32 %v1459_v40, %v6082_v63 }
 0x290   :  { %v3793_v34 = vmul.f32 -1.442695, %v5085_v29 }
 0x291   :  { %v3794_v35 = vmul.f32 -1.442695, %v5086_v37  ;;  %v3795_v50 = vmul.f32 -1.442695, %v5102_v53  ;;  %v6916_v37 = vld [vmem:[#allocation46_spill] sm:$0xff] }
 0x292   :  { %5228 = vpow2.f32 %v3793_v34 }
 0x293   :  { %5230 = vpow2.f32 %v3794_v35 }
 0x294   :  { %5232 = vpow2.f32 %v3795_v50 }
 0x295   :  { %5234 = vtanh.f32 %v5101_v48 }
 0x299   :  { %v5227_v10 = vpop.eup %5226 }
 0x29a   :  { %v1489_v0 = vmul.f32 %v5227_v10, %v5225_v19 }
 0x29c   :  { %v5229_v47 = vpop.eup %5228  ;;  %1579 = vmatmul.mubr.f32.vlgmr.msra.gmra.mrb[4].mxu0 %v1489_v0  ;;  %1650 = vmatmul.mubr.f32.vlgmr.msra.gmra.mrb[4].mxu1 %v1489_v0  ;;  %v6917_v0 = vld [vmem:[#allocation19_spill] sm:$0xff] }
 0x29d   :  { %v5231_v58 = vpop.eup %5230  ;;  %v1493_v2 = vadd.f32 1.0, %v5229_v47  ;;  %4292 = vmatpush1.bf16.msra.mxu0 %v5918_v13  ;;  %4324 = vmatpush1.bf16.msra.mxu1 %v5922_v16  ;;  %v6918_v47 = vld [vmem:[#allocation20_spill] sm:$0xff] }
 0x29e   :  { %v1499_v29 = vadd.f32 1.0, %v5231_v58  ;;  %4294 = vmatprep.subr.bf16.mxu0 %v5924_v18  ;;  %4326 = vmatprep.subr.bf16.mxu1 %v5928_v26  ;;  %v5233_v15 = vpop.eup %5232  ;;  %v6919_v58 = vld [vmem:[#allocation21_spill] sm:$0xff] }
 0x29f   :  { %5236 = vrcp.f32 %v1493_v2  ;;  %1724 = vmatprep.mubr.f32.mxu0 %v6884_v4  ;;  %1795 = vmatprep.mubr.f32.mxu1 %v6884_v4  ;;  %v5235_v43 = vpop.eup %5234  ;;  %v1506_v53 = vadd.f32 1.0, %v5233_v15  ;;  %v6920_v2 = vld [vmem:[#allocation22_spill] sm:$0xff]  ;;  %v6922_v15 = vld [vmem:[#allocation24_spill] sm:$0xff] }
 0x2a0   :  { %5238 = vrcp.f32 %v1499_v29  ;;  %v6921_v29 = vld [vmem:[#allocation23_spill] sm:$0xff] }
 0x2a1   :  { %4296 = vmatpush1.bf16.msra.mxu0 %v5934_v39  ;;  %4328 = vmatpush1.bf16.msra.mxu1 %v5938_v41  ;;  %5240 = vrcp.f32 %v1506_v53  ;;  %v6927_v53 = vld [vmem:[#allocation29_spill] sm:$0xff] }
 0x2a2   :  { %4298 = vmatprep.subr.bf16.mxu0 %v5940_v44  ;;  %4330 = vmatprep.subr.bf16.mxu1 %v5943_v51 }
 0x2a5   :  { %4300 = vmatpush1.bf16.msra.mxu0 %v5948_v3  ;;  %4332 = vmatpush1.bf16.msra.mxu1 %v6889_v33 }
 0x2a6   :  { %4302 = vmatprep.subr.bf16.mxu0 %v6890_v55  ;;  %4334 = vmatprep.subr.bf16.mxu1 %v6891_v42 }
 0x2a9   :  { %v5237_v40 = vpop.eup %5236  ;;  %4304 = vmatpush1.bf16.msra.mxu0 %v6916_v37  ;;  %4336 = vmatpush1.bf16.msra.mxu1 %v6893_v59 }
 0x2aa   :  { %v5239_v34 = vpop.eup %5238  ;;  %v1510_v35 = vmul.f32 %v5237_v40, %v5235_v43  ;;  %4306 = vmatprep.subr.bf16.mxu0 %v6894_v28  ;;  %4338 = vmatprep.subr.bf16.mxu1 %v6895_v52  ;;  %v6923_v43 = vld [vmem:[#allocation25_spill] sm:$0xff]  ;;  %v6924_v40 = vld [vmem:[#allocation26_spill] sm:$0xff] }
 0x2ab   :  { %v1509_v19 = vmul.f32 %v5239_v34, %v6106_v32  ;;  %v5241_v32 = vpop.eup %5240  ;;  %v6925_v34 = vld [vmem:[#allocation27_spill] sm:$0xff] }
 0x2ad   :  { %v6190_v10 = vadd.f32 %v1510_v35, %v1509_v19  ;;  %4308 = vmatpush1.bf16.msra.mxu0 %v6896_v9  ;;  %4340 = vmatpush1.bf16.msra.mxu1 %v6897_v38  ;;  %v6926_v35 = vld [vmem:[#allocation28_spill] sm:$0xff]  ;;  %v6928_v19 = vld [vmem:[#allocation30_spill] sm:$0xff] }
 0x2ae   :  { %4310 = vmatprep.subr.bf16.mxu0 %v5978_v25  ;;  %4342 = vmatprep.subr.bf16.mxu1 %v6898_v7 }
 0x2af   :  { %5242 = vtanh.f32 %v6190_v10 }
 0x2b1   :  { %4312 = vmatpush1.bf16.msra.mxu0 %v5984_v45  ;;  %4344 = vmatpush1.bf16.msra.mxu1 %v5988_v1 }
 0x2b2   :  { %4314 = vmatprep.subr.bf16.mxu0 %v5990_v56  ;;  %4346 = vmatprep.subr.bf16.mxu1 %v5993_v12 }
 0x2b5   :  { %4316 = vmatpush1.bf16.msra.mxu0 %v5996_v20  ;;  %4348 = vmatpush1.bf16.msra.mxu1 %v6000_v6 }
 0x2b6   :  { %4318 = vmatprep.subr.bf16.mxu0 %v6002_v22  ;;  %4350 = vmatprep.subr.bf16.mxu1 %v6005_v49 }
 0x2b9   :  { %v5243_v50 = vpop.eup %5242  ;;  %4320 = vmatpush1.bf16.msra.mxu0 %v6008_v61  ;;  %4352 = vmatpush1.bf16.msra.mxu1 %v6012_v60 }
 0x2ba   :  { %v1513_v48 = vmul.f32 %v5243_v50, %v5241_v32  ;;  %4354 = vmatprep.subr.bf16.mxu0 %v5761_v54  ;;  %4386 = vmatprep.subr.bf16.mxu1 %v5764_v57  ;;  %v6929_v32 = vld [vmem:[#allocation31_spill] sm:$0xff]  ;;  %v6930_v50 = vld [vmem:[#allocation32_spill] sm:$0xff] }
 0x2bc   :  { %1725 = vmatmul.mubr.f32.vlgmr.msra.gmra.mrb[26].mxu0 %v1513_v48  ;;  %1796 = vmatmul.mubr.f32.vlgmr.msra.gmra.mrb[26].mxu1 %v1513_v48  ;;  %v6931_v48 = vld [vmem:[#allocation33_spill] sm:$0xff] }
 0x2bd   :  { %4356 = vmatpush1.bf16.msra.mxu0 %v5794_v8  ;;  %4388 = vmatpush1.bf16.msra.mxu1 %v5797_v11 }
 0x2be   :  { %4358 = vmatprep.subr.bf16.mxu0 %v5799_v14  ;;  %4390 = vmatprep.subr.bf16.mxu1 %v5802_v17 }
 0x2bf   :  { %1918 = vmatprep.mubr.f32.mxu0 %v6884_v4  ;;  %1989 = vmatprep.mubr.f32.mxu1 %v6884_v4 }
 0x2c1   :  { %4360 = vmatpush1.bf16.msra.mxu0 %v5806_v21  ;;  %4392 = vmatpush1.bf16.msra.mxu1 %v5810_v24 }
 0x2c2   :  { %4362 = vmatprep.subr.bf16.mxu0 %v5814_v27  ;;  %4394 = vmatprep.subr.bf16.mxu1 %v5818_v30 }
 0x2c5   :  { %4364 = vmatpush1.bf16.msra.mxu0 %v6917_v0  ;;  %4396 = vmatpush1.bf16.msra.mxu1 %v6918_v47 }
 0x2c6   :  { %4366 = vmatprep.subr.bf16.mxu0 %v6919_v58  ;;  %4398 = vmatprep.subr.bf16.mxu1 %v6920_v2  ;;  %v6941_v2 = vld [vmem:[#allocation53_spill] sm:$0xff] }
 0x2c9   :  { %4368 = vmatpush1.bf16.msra.mxu0 %v6921_v29  ;;  %4400 = vmatpush1.bf16.msra.mxu1 %v6922_v15  ;;  %v6932_v29 = vld [vmem:[#allocation34_spill] sm:$0xff]  ;;  %v6933_v15 = vld [vmem:[#allocation35_spill] sm:$0xff] }
 0x2ca   :  { %4370 = vmatprep.subr.bf16.mxu0 %v6923_v43  ;;  %4402 = vmatprep.subr.bf16.mxu1 %v6924_v40  ;;  %v6934_v43 = vld [vmem:[#allocation36_spill] sm:$0xff]  ;;  %v6935_v40 = vld [vmem:[#allocation37_spill] sm:$0xff] }
 0x2cd   :  { %4372 = vmatpush1.bf16.msra.mxu0 %v6925_v34  ;;  %4404 = vmatpush1.bf16.msra.mxu1 %v6926_v35  ;;  %v6936_v34 = vld [vmem:[#allocation38_spill] sm:$0xff]  ;;  %v6937_v35 = vld [vmem:[#allocation39_spill] sm:$0xff] }
 0x2ce   :  { %4374 = vmatprep.subr.bf16.mxu0 %v6927_v53  ;;  %4406 = vmatprep.subr.bf16.mxu1 %v6928_v19  ;;  %v6938_v53 = vld [vmem:[#allocation40_spill] sm:$0xff]  ;;  %v6939_v19 = vld [vmem:[#allocation41_spill] sm:$0xff] }
 0x2d1   :  { %4376 = vmatpush1.bf16.msra.mxu0 %v6929_v32  ;;  %4408 = vmatpush1.bf16.msra.mxu1 %v6930_v50  ;;  %v6940_v32 = vld [vmem:[#allocation42_spill] sm:$0xff] }
 0x2d2   :  { %4378 = vmatprep.subr.bf16.mxu0 %v6931_v48  ;;  %4410 = vmatprep.subr.bf16.mxu1 %v6932_v29 }
 0x2d5   :  { %4380 = vmatpush1.bf16.msra.mxu0 %v6933_v15  ;;  %4412 = vmatpush1.bf16.msra.mxu1 %v6934_v43 }
 0x2d6   :  { %4382 = vmatprep.subr.bf16.mxu0 %v6935_v40  ;;  %4414 = vmatprep.subr.bf16.mxu1 %v6936_v34 }
 0x2d9   :  { %4384 = vmatpush1.bf16.msra.mxu0 %v6937_v35  ;;  %4416 = vmatpush1.bf16.msra.mxu1 %v6938_v53  ;;  %v6942_v53 = vld [vmem:[#allocation55_spill] sm:$0xff] }
 0x2da   :  { %4418 = vmatprep.subr.bf16.mxu0 %v6939_v19  ;;  %4450 = vmatprep.subr.bf16.mxu1 %v6940_v32 }
 0x36f   :  { %v1580_v50 = vpop.f32.mrb[4].mxu0  ;;  %v1651_v48 = vpop.f32.mrb[4].mxu1 }
 0x370   :  { %v5045_v29 = vadd.f32 %v1580_v50, %v6941_v2  ;;  %v1582_v58 = vpop.f32.mrb[5].mxu0  ;;  %v1653_v15 = vpop.f32.mrb[5].mxu1  ;;  %v5061_v0 = vadd.f32 %v1651_v48, %v6942_v53 }
 0x371   :  { %v5046_v43 = vadd.f32 %v1582_v58, %v6060_v36  ;;  %v5062_v35 = vadd.f32 %v1653_v15, %v6913_v62 }
 0x372   :  { %v3796_v47 = vmul.f32 -1.442695, %v5045_v29 }
 0x373   :  { %v3797_v40 = vmul.f32 -1.442695, %v5046_v43  ;;  %v3798_v34 = vmul.f32 -1.442695, %v5062_v35 }
 0x374   :  { %5244 = vpow2.f32 %v3796_v47 }
 0x375   :  { %5246 = vpow2.f32 %v3797_v40 }
 0x376   :  { %5248 = vpow2.f32 %v3798_v34 }
 0x377   :  { %5250 = vtanh.f32 %v5061_v0 }
 0x37e   :  { %v5245_v19 = vpop.eup %5244 }
 0x37f   :  { %v5247_v30 = vpop.eup %5246  ;;  %v1809_v32 = vadd.f32 1.0, %v5245_v19 }
 0x380   :  { %v1815_v27 = vadd.f32 1.0, %v5247_v30  ;;  %v5249_v50 = vpop.eup %5248 }
 0x381   :  { %5252 = vrcp.f32 %v1809_v32  ;;  %v5251_v2 = vpop.eup %5250  ;;  %v1822_v47 = vadd.f32 1.0, %v5249_v50 }
 0x382   :  { %5254 = vrcp.f32 %v1815_v27 }
 0x383   :  { %5256 = vrcp.f32 %v1822_v47 }
 0x38b   :  { %v5253_v58 = vpop.eup %5252 }
 0x38c   :  { %v5255_v29 = vpop.eup %5254  ;;  %v1826_v43 = vmul.f32 %v5253_v58, %v5251_v2 }
 0x38d   :  { %v1825_v40 = vmul.f32 %v5255_v29, %v6164_v31  ;;  %v5257_v31 = vpop.eup %5256 }
 0x38f   :  { %v6248_v15 = vadd.f32 %v1826_v43, %v1825_v40  ;;  %v1726_v35 = vpop.f32.mrb[26].mxu0  ;;  %v1797_v48 = vpop.f32.mrb[26].mxu1 }
 0x390   :  { %v5083_v19 = vadd.f32 %v1726_v35, %v6915_v5  ;;  %v1728_v34 = vpop.f32.mrb[27].mxu0  ;;  %v1799_v0 = vpop.f32.mrb[27].mxu1  ;;  %v5099_v29 = vadd.f32 %v1797_v48, %v6085_v46 }
 0x391   :  { %v5084_v30 = vadd.f32 %v1728_v34, %v6075_v23  ;;  %5258 = vtanh.f32 %v6248_v15  ;;  %v5100_v2 = vadd.f32 %v1799_v0, %v6082_v63 }
 0x392   :  { %v3799_v27 = vmul.f32 -1.442695, %v5083_v19 }
 0x393   :  { %v3800_v32 = vmul.f32 -1.442695, %v5084_v30  ;;  %v3801_v58 = vmul.f32 -1.442695, %v5100_v2 }
 0x394   :  { %5260 = vpow2.f32 %v3799_v27 }
 0x395   :  { %5262 = vpow2.f32 %v3800_v32 }
 0x396   :  { %5264 = vpow2.f32 %v3801_v58 }
 0x397   :  { %5266 = vtanh.f32 %v5099_v29  ;;  %v6943_v29 = vld [vmem:[#allocation17_spill] sm:$0xff] }
 0x39b   :  { %v5259_v50 = vpop.eup %5258 }
 0x39c   :  { %v1829_v43 = vmul.f32 %v5259_v50, %v5257_v31 }
 0x39e   :  { %v5261_v47 = vpop.eup %5260  ;;  %1919 = vmatmul.mubr.f32.vlgmr.msra.gmra.mrb[6].mxu0 %v1829_v43  ;;  %1990 = vmatmul.mubr.f32.vlgmr.msra.gmra.mrb[6].mxu1 %v1829_v43  ;;  %v6944_v43 = vld [vmem:[#allocation18_spill] sm:$0xff] }
 0x39f   :  { %v5263_v40 = vpop.eup %5262  ;;  %v1833_v35 = vadd.f32 1.0, %v5261_v47  ;;  %4420 = vmatpush1.bf16.msra.mxu0 %v5918_v13  ;;  %4452 = vmatpush1.bf16.msra.mxu1 %v5922_v16  ;;  %v6945_v47 = vld [vmem:[#allocation19_spill] sm:$0xff] }
 0x3a0   :  { %v1839_v19 = vadd.f32 1.0, %v5263_v40  ;;  %4422 = vmatprep.subr.bf16.mxu0 %v5924_v18  ;;  %4454 = vmatprep.subr.bf16.mxu1 %v5928_v26  ;;  %v5265_v48 = vpop.eup %5264  ;;  %v6946_v40 = vld [vmem:[#allocation20_spill] sm:$0xff] }
 0x3a1   :  { %5268 = vrcp.f32 %v1833_v35  ;;  %2064 = vmatprep.mubr.f32.mxu0 %v6884_v4  ;;  %2135 = vmatprep.mubr.f32.mxu1 %v6884_v4  ;;  %v5267_v34 = vpop.eup %5266  ;;  %v1846_v32 = vadd.f32 1.0, %v5265_v48  ;;  %v6947_v35 = vld [vmem:[#allocation21_spill] sm:$0xff]  ;;  %v6949_v48 = vld [vmem:[#allocation23_spill] sm:$0xff] }
 0x3a2   :  { %5270 = vrcp.f32 %v1839_v19  ;;  %v6948_v19 = vld [vmem:[#allocation22_spill] sm:$0xff] }
 0x3a3   :  { %4424 = vmatpush1.bf16.msra.mxu0 %v5934_v39  ;;  %4456 = vmatpush1.bf16.msra.mxu1 %v5938_v41  ;;  %5272 = vrcp.f32 %v1846_v32  ;;  %v6954_v32 = vld [vmem:[#allocation28_spill] sm:$0xff] }
 0x3a4   :  { %4426 = vmatprep.subr.bf16.mxu0 %v5940_v44  ;;  %4458 = vmatprep.subr.bf16.mxu1 %v5943_v51 }
 0x3a7   :  { %4428 = vmatpush1.bf16.msra.mxu0 %v5948_v3  ;;  %4460 = vmatpush1.bf16.msra.mxu1 %v6889_v33 }
 0x3a8   :  { %4430 = vmatprep.subr.bf16.mxu0 %v6890_v55  ;;  %4462 = vmatprep.subr.bf16.mxu1 %v6891_v42 }
 0x3ab   :  { %v5269_v0 = vpop.eup %5268  ;;  %4432 = vmatpush1.bf16.msra.mxu0 %v6916_v37  ;;  %4464 = vmatpush1.bf16.msra.mxu1 %v6893_v59 }
 0x3ac   :  { %v5271_v30 = vpop.eup %5270  ;;  %v1850_v27 = vmul.f32 %v5269_v0, %v5267_v34  ;;  %4434 = vmatprep.subr.bf16.mxu0 %v6894_v28  ;;  %4466 = vmatprep.subr.bf16.mxu1 %v6895_v52  ;;  %v6950_v34 = vld [vmem:[#allocation24_spill] sm:$0xff]  ;;  %v6951_v0 = vld [vmem:[#allocation25_spill] sm:$0xff] }
 0x3ad   :  { %v1849_v2 = vmul.f32 %v5271_v30, %v6190_v10  ;;  %v5273_v10 = vpop.eup %5272  ;;  %v6952_v30 = vld [vmem:[#allocation26_spill] sm:$0xff] }
 0x3af   :  { %v6274_v31 = vadd.f32 %v1850_v27, %v1849_v2  ;;  %4436 = vmatpush1.bf16.msra.mxu0 %v6896_v9  ;;  %4468 = vmatpush1.bf16.msra.mxu1 %v6897_v38  ;;  %v6953_v27 = vld [vmem:[#allocation27_spill] sm:$0xff]  ;;  %v6955_v2 = vld [vmem:[#allocation29_spill] sm:$0xff] }
 0x3b0   :  { %4438 = vmatprep.subr.bf16.mxu0 %v5978_v25  ;;  %4470 = vmatprep.subr.bf16.mxu1 %v6898_v7 }
 0x3b1   :  { %5274 = vtanh.f32 %v6274_v31 }
 0x3b3   :  { %4440 = vmatpush1.bf16.msra.mxu0 %v5984_v45  ;;  %4472 = vmatpush1.bf16.msra.mxu1 %v5988_v1 }
 0x3b4   :  { %4442 = vmatprep.subr.bf16.mxu0 %v5990_v56  ;;  %4474 = vmatprep.subr.bf16.mxu1 %v5993_v12 }
 0x3b7   :  { %4444 = vmatpush1.bf16.msra.mxu0 %v5996_v20  ;;  %4476 = vmatpush1.bf16.msra.mxu1 %v6000_v6 }
 0x3b8   :  { %4446 = vmatprep.subr.bf16.mxu0 %v6002_v22  ;;  %4478 = vmatprep.subr.bf16.mxu1 %v6005_v49 }
 0x3bb   :  { %v5275_v50 = vpop.eup %5274  ;;  %4448 = vmatpush1.bf16.msra.mxu0 %v6008_v61  ;;  %4480 = vmatpush1.bf16.msra.mxu1 %v6012_v60 }
 0x3bc   :  { %v1853_v58 = vmul.f32 %v5275_v50, %v5273_v10  ;;  %4482 = vmatprep.subr.bf16.mxu0 %v5761_v54  ;;  %4514 = vmatprep.subr.bf16.mxu1 %v5764_v57  ;;  %v6956_v10 = vld [vmem:[#allocation30_spill] sm:$0xff]  ;;  %v6957_v50 = vld [vmem:[#allocation31_spill] sm:$0xff] }
 0x3be   :  { %2065 = vmatmul.mubr.f32.vlgmr.msra.gmra.mrb[24].mxu0 %v1853_v58  ;;  %2136 = vmatmul.mubr.f32.vlgmr.msra.gmra.mrb[24].mxu1 %v1853_v58  ;;  %v6958_v58 = vld [vmem:[#allocation32_spill] sm:$0xff] }
 0x3bf   :  { %4484 = vmatpush1.bf16.msra.mxu0 %v5794_v8  ;;  %4516 = vmatpush1.bf16.msra.mxu1 %v5797_v11 }
 0x3c0   :  { %4486 = vmatprep.subr.bf16.mxu0 %v5799_v14  ;;  %4518 = vmatprep.subr.bf16.mxu1 %v5802_v17 }
 0x3c1   :  { %2258 = vmatprep.mubr.f32.mxu0 %v6884_v4  ;;  %2329 = vmatprep.mubr.f32.mxu1 %v6884_v4 }
 0x3c3   :  { %4488 = vmatpush1.bf16.msra.mxu0 %v5806_v21  ;;  %4520 = vmatpush1.bf16.msra.mxu1 %v5810_v24 }
 0x3c4   :  { %4490 = vmatprep.subr.bf16.mxu0 %v6943_v29  ;;  %4522 = vmatprep.subr.bf16.mxu1 %v6944_v43 }
 0x3c7   :  { %4492 = vmatpush1.bf16.msra.mxu0 %v6945_v47  ;;  %4524 = vmatpush1.bf16.msra.mxu1 %v6946_v40 }
 0x3c8   :  { %4494 = vmatprep.subr.bf16.mxu0 %v6947_v35  ;;  %4526 = vmatprep.subr.bf16.mxu1 %v6948_v19  ;;  %v6959_v19 = vld [vmem:[#allocation33_spill] sm:$0xff] }
 0x3c9   :  { %v6969_v35 = vld [vmem:[#allocation53_spill] sm:$0xff] }
 0x3cb   :  { %4496 = vmatpush1.bf16.msra.mxu0 %v6949_v48  ;;  %4528 = vmatpush1.bf16.msra.mxu1 %v6950_v34  ;;  %v6960_v48 = vld [vmem:[#allocation34_spill] sm:$0xff]  ;;  %v6961_v34 = vld [vmem:[#allocation35_spill] sm:$0xff] }
 0x3cc   :  { %4498 = vmatprep.subr.bf16.mxu0 %v6951_v0  ;;  %4530 = vmatprep.subr.bf16.mxu1 %v6952_v30  ;;  %v6962_v0 = vld [vmem:[#allocation36_spill] sm:$0xff]  ;;  %v6963_v30 = vld [vmem:[#allocation37_spill] sm:$0xff] }
 0x3cf   :  { %4500 = vmatpush1.bf16.msra.mxu0 %v6953_v27  ;;  %4532 = vmatpush1.bf16.msra.mxu1 %v6954_v32  ;;  %v6964_v27 = vld [vmem:[#allocation38_spill] sm:$0xff]  ;;  %v6965_v32 = vld [vmem:[#allocation39_spill] sm:$0xff] }
 0x3d0   :  { %4502 = vmatprep.subr.bf16.mxu0 %v6955_v2  ;;  %4534 = vmatprep.subr.bf16.mxu1 %v6956_v10  ;;  %v6966_v2 = vld [vmem:[#allocation40_spill] sm:$0xff]  ;;  %v6967_v10 = vld [vmem:[#allocation41_spill] sm:$0xff] }
 0x3d3   :  { %4504 = vmatpush1.bf16.msra.mxu0 %v6957_v50  ;;  %4536 = vmatpush1.bf16.msra.mxu1 %v6958_v58  ;;  %v6968_v50 = vld [vmem:[#allocation42_spill] sm:$0xff] }
 0x3d4   :  { %4506 = vmatprep.subr.bf16.mxu0 %v6959_v19  ;;  %4538 = vmatprep.subr.bf16.mxu1 %v6960_v48 }
 0x3d7   :  { %4508 = vmatpush1.bf16.msra.mxu0 %v6961_v34  ;;  %4540 = vmatpush1.bf16.msra.mxu1 %v6962_v0 }
 0x3d8   :  { %4510 = vmatprep.subr.bf16.mxu0 %v6963_v30  ;;  %4542 = vmatprep.subr.bf16.mxu1 %v6964_v27 }
 0x3db   :  { %4512 = vmatpush1.bf16.msra.mxu0 %v6965_v32  ;;  %4544 = vmatpush1.bf16.msra.mxu1 %v6966_v2 }
 0x3dc   :  { %4546 = vmatprep.subr.bf16.mxu0 %v6967_v10  ;;  %4578 = vmatprep.subr.bf16.mxu1 %v6968_v50 }
 0x471   :  { %v1920_v58 = vpop.f32.mrb[6].mxu0  ;;  %v1991_v19 = vpop.f32.mrb[6].mxu1 }
 0x472   :  { %v5047_v48 = vadd.f32 %v1920_v58, %v6969_v35  ;;  %v1922_v40 = vpop.f32.mrb[7].mxu0  ;;  %v1993_v34 = vpop.f32.mrb[7].mxu1  ;;  %v5063_v2 = vadd.f32 %v1991_v19, %v6942_v53 }
 0x473   :  { %v5048_v0 = vadd.f32 %v1922_v40, %v6060_v36  ;;  %v5064_v32 = vadd.f32 %v1993_v34, %v6913_v62 }
 0x474   :  { %v3802_v47 = vmul.f32 -1.442695, %v5047_v48 }
 0x475   :  { %v3803_v30 = vmul.f32 -1.442695, %v5048_v0  ;;  %v3804_v27 = vmul.f32 -1.442695, %v5064_v32 }
 0x476   :  { %5276 = vpow2.f32 %v3802_v47 }
 0x477   :  { %5278 = vpow2.f32 %v3803_v30 }
 0x478   :  { %5280 = vpow2.f32 %v3804_v27 }
 0x479   :  { %5282 = vtanh.f32 %v5063_v2 }
 0x480   :  { %v5277_v10 = vpop.eup %5276 }
 0x481   :  { %v5279_v43 = vpop.eup %5278  ;;  %v2149_v50 = vadd.f32 1.0, %v5277_v10 }
 0x482   :  { %v2155_v29 = vadd.f32 1.0, %v5279_v43  ;;  %v5281_v58 = vpop.eup %5280 }
 0x483   :  { %5284 = vrcp.f32 %v2149_v50  ;;  %v5283_v35 = vpop.eup %5282  ;;  %v2162_v47 = vadd.f32 1.0, %v5281_v58 }
 0x484   :  { %5286 = vrcp.f32 %v2155_v29 }
 0x485   :  { %5288 = vrcp.f32 %v2162_v47 }
 0x48d   :  { %v5285_v40 = vpop.eup %5284 }
 0x48e   :  { %v5287_v48 = vpop.eup %5286  ;;  %v2166_v0 = vmul.f32 %v5285_v40, %v5283_v35 }
 0x48f   :  { %v2165_v30 = vmul.f32 %v5287_v48, %v6248_v15  ;;  %v5289_v15 = vpop.eup %5288 }
 0x491   :  { %v6332_v34 = vadd.f32 %v2166_v0, %v2165_v30  ;;  %v2066_v32 = vpop.f32.mrb[24].mxu0  ;;  %v2137_v19 = vpop.f32.mrb[24].mxu1 }
 0x492   :  { %v5081_v10 = vadd.f32 %v2066_v32, %v6915_v5  ;;  %v2068_v27 = vpop.f32.mrb[25].mxu0  ;;  %v2139_v2 = vpop.f32.mrb[25].mxu1  ;;  %v5097_v48 = vadd.f32 %v2137_v19, %v6085_v46 }
 0x493   :  { %v5082_v43 = vadd.f32 %v2068_v27, %v6075_v23  ;;  %5290 = vtanh.f32 %v6332_v34  ;;  %v5098_v35 = vadd.f32 %v2139_v2, %v6082_v63 }
 0x494   :  { %v3805_v29 = vmul.f32 -1.442695, %v5081_v10 }
 0x495   :  { %v3806_v50 = vmul.f32 -1.442695, %v5082_v43  ;;  %v3807_v40 = vmul.f32 -1.442695, %v5098_v35 }
 0x496   :  { %5292 = vpow2.f32 %v3805_v29 }
 0x497   :  { %5294 = vpow2.f32 %v3806_v50 }
 0x498   :  { %5296 = vpow2.f32 %v3807_v40 }
 0x499   :  { %5298 = vtanh.f32 %v5097_v48  ;;  %v6970_v48 = vld [vmem:[#allocation17_spill] sm:$0xff] }
 0x49d   :  { %v5291_v58 = vpop.eup %5290 }
 0x49e   :  { %v2169_v0 = vmul.f32 %v5291_v58, %v5289_v15 }
 0x4a0   :  { %v5293_v47 = vpop.eup %5292  ;;  %2259 = vmatmul.mubr.f32.vlgmr.msra.gmra.mrb[8].mxu0 %v2169_v0  ;;  %2330 = vmatmul.mubr.f32.vlgmr.msra.gmra.mrb[8].mxu1 %v2169_v0  ;;  %v6971_v0 = vld [vmem:[#allocation18_spill] sm:$0xff] }
 0x4a1   :  { %v5295_v30 = vpop.eup %5294  ;;  %v2173_v32 = vadd.f32 1.0, %v5293_v47  ;;  %4548 = vmatpush1.bf16.msra.mxu0 %v5918_v13  ;;  %4580 = vmatpush1.bf16.msra.mxu1 %v5922_v16  ;;  %v6972_v47 = vld [vmem:[#allocation19_spill] sm:$0xff] }
 0x4a2   :  { %v2179_v10 = vadd.f32 1.0, %v5295_v30  ;;  %4550 = vmatprep.subr.bf16.mxu0 %v5924_v18  ;;  %4582 = vmatprep.subr.bf16.mxu1 %v5928_v26  ;;  %v5297_v19 = vpop.eup %5296  ;;  %v6973_v30 = vld [vmem:[#allocation20_spill] sm:$0xff] }
 0x4a3   :  { %5300 = vrcp.f32 %v2173_v32  ;;  %2404 = vmatprep.mubr.f32.mxu0 %v6884_v4  ;;  %2475 = vmatprep.mubr.f32.mxu1 %v6884_v4  ;;  %v5299_v27 = vpop.eup %5298  ;;  %v2186_v50 = vadd.f32 1.0, %v5297_v19  ;;  %v6974_v32 = vld [vmem:[#allocation21_spill] sm:$0xff]  ;;  %v6976_v19 = vld [vmem:[#allocation23_spill] sm:$0xff] }
 0x4a4   :  { %5302 = vrcp.f32 %v2179_v10  ;;  %v6975_v10 = vld [vmem:[#allocation22_spill] sm:$0xff] }
 0x4a5   :  { %4552 = vmatpush1.bf16.msra.mxu0 %v5934_v39  ;;  %4584 = vmatpush1.bf16.msra.mxu1 %v5938_v41  ;;  %5304 = vrcp.f32 %v2186_v50  ;;  %v6981_v50 = vld [vmem:[#allocation28_spill] sm:$0xff] }
 0x4a6   :  { %4554 = vmatprep.subr.bf16.mxu0 %v5940_v44  ;;  %4586 = vmatprep.subr.bf16.mxu1 %v5943_v51 }
 0x4a9   :  { %4556 = vmatpush1.bf16.msra.mxu0 %v5948_v3  ;;  %4588 = vmatpush1.bf16.msra.mxu1 %v6889_v33 }
 0x4aa   :  { %4558 = vmatprep.subr.bf16.mxu0 %v6890_v55  ;;  %4590 = vmatprep.subr.bf16.mxu1 %v6891_v42 }
 0x4ad   :  { %v5301_v2 = vpop.eup %5300  ;;  %4560 = vmatpush1.bf16.msra.mxu0 %v6916_v37  ;;  %4592 = vmatpush1.bf16.msra.mxu1 %v6893_v59 }
 0x4ae   :  { %v5303_v43 = vpop.eup %5302  ;;  %v2190_v29 = vmul.f32 %v5301_v2, %v5299_v27  ;;  %4562 = vmatprep.subr.bf16.mxu0 %v6894_v28  ;;  %4594 = vmatprep.subr.bf16.mxu1 %v6895_v52  ;;  %v6977_v27 = vld [vmem:[#allocation24_spill] sm:$0xff]  ;;  %v6978_v2 = vld [vmem:[#allocation25_spill] sm:$0xff] }
 0x4af   :  { %v2189_v35 = vmul.f32 %v5303_v43, %v6274_v31  ;;  %v5305_v31 = vpop.eup %5304  ;;  %v6979_v43 = vld [vmem:[#allocation26_spill] sm:$0xff] }
 0x4b1   :  { %v6358_v15 = vadd.f32 %v2190_v29, %v2189_v35  ;;  %4564 = vmatpush1.bf16.msra.mxu0 %v6896_v9  ;;  %4596 = vmatpush1.bf16.msra.mxu1 %v6897_v38  ;;  %v6980_v29 = vld [vmem:[#allocation27_spill] sm:$0xff]  ;;  %v6982_v35 = vld [vmem:[#allocation29_spill] sm:$0xff] }
 0x4b2   :  { %4566 = vmatprep.subr.bf16.mxu0 %v5978_v25  ;;  %4598 = vmatprep.subr.bf16.mxu1 %v6898_v7 }
 0x4b3   :  { %5306 = vtanh.f32 %v6358_v15 }
 0x4b5   :  { %4568 = vmatpush1.bf16.msra.mxu0 %v5984_v45  ;;  %4600 = vmatpush1.bf16.msra.mxu1 %v5988_v1 }
 0x4b6   :  { %4570 = vmatprep.subr.bf16.mxu0 %v5990_v56  ;;  %4602 = vmatprep.subr.bf16.mxu1 %v5993_v12 }
 0x4b9   :  { %4572 = vmatpush1.bf16.msra.mxu0 %v5996_v20  ;;  %4604 = vmatpush1.bf16.msra.mxu1 %v6000_v6 }
 0x4ba   :  { %4574 = vmatprep.subr.bf16.mxu0 %v6002_v22  ;;  %4606 = vmatprep.subr.bf16.mxu1 %v6005_v49 }
 0x4bd   :  { %v5307_v58 = vpop.eup %5306  ;;  %4576 = vmatpush1.bf16.msra.mxu0 %v6008_v61  ;;  %4608 = vmatpush1.bf16.msra.mxu1 %v6012_v60 }
 0x4be   :  { %v2193_v40 = vmul.f32 %v5307_v58, %v5305_v31  ;;  %4610 = vmatprep.subr.bf16.mxu0 %v5761_v54  ;;  %4642 = vmatprep.subr.bf16.mxu1 %v5764_v57  ;;  %v6983_v31 = vld [vmem:[#allocation30_spill] sm:$0xff]  ;;  %v6984_v58 = vld [vmem:[#allocation31_spill] sm:$0xff] }
 0x4c0   :  { %2405 = vmatmul.mubr.f32.vlgmr.msra.gmra.mrb[22].mxu0 %v2193_v40  ;;  %2476 = vmatmul.mubr.f32.vlgmr.msra.gmra.mrb[22].mxu1 %v2193_v40  ;;  %v6985_v40 = vld [vmem:[#allocation32_spill] sm:$0xff] }
 0x4c1   :  { %4612 = vmatpush1.bf16.msra.mxu0 %v5794_v8  ;;  %4644 = vmatpush1.bf16.msra.mxu1 %v5797_v11 }
 0x4c2   :  { %4614 = vmatprep.subr.bf16.mxu0 %v5799_v14  ;;  %4646 = vmatprep.subr.bf16.mxu1 %v5802_v17 }
 0x4c3   :  { %2598 = vmatprep.mubr.f32.mxu0 %v6884_v4  ;;  %2669 = vmatprep.mubr.f32.mxu1 %v6884_v4 }
 0x4c5   :  { %4616 = vmatpush1.bf16.msra.mxu0 %v5806_v21  ;;  %4648 = vmatpush1.bf16.msra.mxu1 %v5810_v24 }
 0x4c6   :  { %4618 = vmatprep.subr.bf16.mxu0 %v6970_v48  ;;  %4650 = vmatprep.subr.bf16.mxu1 %v6971_v0 }
 0x4c9   :  { %4620 = vmatpush1.bf16.msra.mxu0 %v6972_v47  ;;  %4652 = vmatpush1.bf16.msra.mxu1 %v6973_v30 }
 0x4ca   :  { %4622 = vmatprep.subr.bf16.mxu0 %v6974_v32  ;;  %4654 = vmatprep.subr.bf16.mxu1 %v6975_v10  ;;  %v6986_v10 = vld [vmem:[#allocation33_spill] sm:$0xff] }
 0x4cb   :  { %v6996_v32 = vld [vmem:[#allocation53_spill] sm:$0xff] }
 0x4cd   :  { %4624 = vmatpush1.bf16.msra.mxu0 %v6976_v19  ;;  %4656 = vmatpush1.bf16.msra.mxu1 %v6977_v27  ;;  %v6987_v19 = vld [vmem:[#allocation34_spill] sm:$0xff]  ;;  %v6988_v27 = vld [vmem:[#allocation35_spill] sm:$0xff] }
 0x4ce   :  { %4626 = vmatprep.subr.bf16.mxu0 %v6978_v2  ;;  %4658 = vmatprep.subr.bf16.mxu1 %v6979_v43  ;;  %v6989_v2 = vld [vmem:[#allocation36_spill] sm:$0xff]  ;;  %v6990_v43 = vld [vmem:[#allocation37_spill] sm:$0xff] }
 0x4d1   :  { %4628 = vmatpush1.bf16.msra.mxu0 %v6980_v29  ;;  %4660 = vmatpush1.bf16.msra.mxu1 %v6981_v50  ;;  %v6991_v29 = vld [vmem:[#allocation38_spill] sm:$0xff]  ;;  %v6992_v50 = vld [vmem:[#allocation39_spill] sm:$0xff] }
 0x4d2   :  { %4630 = vmatprep.subr.bf16.mxu0 %v6982_v35  ;;  %4662 = vmatprep.subr.bf16.mxu1 %v6983_v31  ;;  %v6993_v35 = vld [vmem:[#allocation40_spill] sm:$0xff]  ;;  %v6994_v31 = vld [vmem:[#allocation41_spill] sm:$0xff] }
 0x4d5   :  { %4632 = vmatpush1.bf16.msra.mxu0 %v6984_v58  ;;  %4664 = vmatpush1.bf16.msra.mxu1 %v6985_v40  ;;  %v6995_v58 = vld [vmem:[#allocation42_spill] sm:$0xff] }
 0x4d6   :  { %4634 = vmatprep.subr.bf16.mxu0 %v6986_v10  ;;  %4666 = vmatprep.subr.bf16.mxu1 %v6987_v19 }
 0x4d9   :  { %4636 = vmatpush1.bf16.msra.mxu0 %v6988_v27  ;;  %4668 = vmatpush1.bf16.msra.mxu1 %v6989_v2 }
 0x4da   :  { %4638 = vmatprep.subr.bf16.mxu0 %v6990_v43  ;;  %4670 = vmatprep.subr.bf16.mxu1 %v6991_v29 }
 0x4dd   :  { %4640 = vmatpush1.bf16.msra.mxu0 %v6992_v50  ;;  %4672 = vmatpush1.bf16.msra.mxu1 %v6993_v35 }
 0x4de   :  { %4674 = vmatprep.subr.bf16.mxu0 %v6994_v31  ;;  %4706 = vmatprep.subr.bf16.mxu1 %v6995_v58 }
 0x573   :  { %v2260_v40 = vpop.f32.mrb[8].mxu0  ;;  %v2331_v10 = vpop.f32.mrb[8].mxu1 }
 0x574   :  { %v5049_v19 = vadd.f32 %v2260_v40, %v6996_v32  ;;  %v2262_v30 = vpop.f32.mrb[9].mxu0  ;;  %v2333_v27 = vpop.f32.mrb[9].mxu1  ;;  %v5065_v35 = vadd.f32 %v2331_v10, %v6942_v53 }
 0x575   :  { %v5050_v2 = vadd.f32 %v2262_v30, %v6060_v36  ;;  %v5066_v50 = vadd.f32 %v2333_v27, %v6913_v62 }
 0x576   :  { %v3808_v47 = vmul.f32 -1.442695, %v5049_v19 }
 0x577   :  { %v3809_v43 = vmul.f32 -1.442695, %v5050_v2  ;;  %v3810_v29 = vmul.f32 -1.442695, %v5066_v50 }
 0x578   :  { %5308 = vpow2.f32 %v3808_v47 }
 0x579   :  { %5310 = vpow2.f32 %v3809_v43 }
 0x57a   :  { %5312 = vpow2.f32 %v3810_v29 }
 0x57b   :  { %5314 = vtanh.f32 %v5065_v35 }
 0x582   :  { %v5309_v31 = vpop.eup %5308 }
 0x583   :  { %v5311_v0 = vpop.eup %5310  ;;  %v2489_v58 = vadd.f32 1.0, %v5309_v31 }
 0x584   :  { %v2495_v48 = vadd.f32 1.0, %v5311_v0  ;;  %v5313_v40 = vpop.eup %5312 }
 0x585   :  { %5316 = vrcp.f32 %v2489_v58  ;;  %v5315_v32 = vpop.eup %5314  ;;  %v2502_v47 = vadd.f32 1.0, %v5313_v40 }
 0x586   :  { %5318 = vrcp.f32 %v2495_v48 }
 0x587   :  { %5320 = vrcp.f32 %v2502_v47 }
 0x58f   :  { %v5317_v30 = vpop.eup %5316 }
 0x590   :  { %v5319_v19 = vpop.eup %5318  ;;  %v2506_v2 = vmul.f32 %v5317_v30, %v5315_v32 }
 0x591   :  { %v2505_v43 = vmul.f32 %v5319_v19, %v6332_v34  ;;  %v5321_v34 = vpop.eup %5320 }
 0x593   :  { %v6416_v27 = vadd.f32 %v2506_v2, %v2505_v43  ;;  %v2406_v50 = vpop.f32.mrb[22].mxu0  ;;  %v2477_v10 = vpop.f32.mrb[22].mxu1 }
 0x594   :  { %v5079_v31 = vadd.f32 %v2406_v50, %v6915_v5  ;;  %v2408_v29 = vpop.f32.mrb[23].mxu0  ;;  %v2479_v35 = vpop.f32.mrb[23].mxu1  ;;  %v5095_v19 = vadd.f32 %v2477_v10, %v6085_v46 }
 0x595   :  { %v5080_v0 = vadd.f32 %v2408_v29, %v6075_v23  ;;  %5322 = vtanh.f32 %v6416_v27  ;;  %v5096_v32 = vadd.f32 %v2479_v35, %v6082_v63 }
 0x596   :  { %v3811_v48 = vmul.f32 -1.442695, %v5079_v31 }
 0x597   :  { %v3812_v58 = vmul.f32 -1.442695, %v5080_v0  ;;  %v3813_v30 = vmul.f32 -1.442695, %v5096_v32 }
 0x598   :  { %5324 = vpow2.f32 %v3811_v48 }
 0x599   :  { %5326 = vpow2.f32 %v3812_v58 }
 0x59a   :  { %5328 = vpow2.f32 %v3813_v30 }
 0x59b   :  { %5330 = vtanh.f32 %v5095_v19  ;;  %v6997_v19 = vld [vmem:[#allocation17_spill] sm:$0xff] }
 0x59f   :  { %v5323_v40 = vpop.eup %5322 }
 0x5a0   :  { %v2509_v2 = vmul.f32 %v5323_v40, %v5321_v34 }
 0x5a2   :  { %v5325_v47 = vpop.eup %5324  ;;  %2599 = vmatmul.mubr.f32.vlgmr.msra.gmra.mrb[10].mxu0 %v2509_v2  ;;  %2670 = vmatmul.mubr.f32.vlgmr.msra.gmra.mrb[10].mxu1 %v2509_v2  ;;  %v6998_v2 = vld [vmem:[#allocation18_spill] sm:$0xff] }
 0x5a3   :  { %v5327_v43 = vpop.eup %5326  ;;  %v2513_v50 = vadd.f32 1.0, %v5325_v47  ;;  %4676 = vmatpush1.bf16.msra.mxu0 %v5918_v13  ;;  %4708 = vmatpush1.bf16.msra.mxu1 %v5922_v16  ;;  %v6999_v47 = vld [vmem:[#allocation19_spill] sm:$0xff] }
 0x5a4   :  { %v2519_v31 = vadd.f32 1.0, %v5327_v43  ;;  %4678 = vmatprep.subr.bf16.mxu0 %v5924_v18  ;;  %4710 = vmatprep.subr.bf16.mxu1 %v5928_v26  ;;  %v5329_v10 = vpop.eup %5328  ;;  %v7000_v43 = vld [vmem:[#allocation20_spill] sm:$0xff] }
 0x5a5   :  { %5332 = vrcp.f32 %v2513_v50  ;;  %2744 = vmatprep.mubr.f32.mxu0 %v6884_v4  ;;  %2815 = vmatprep.mubr.f32.mxu1 %v6884_v4  ;;  %v5331_v29 = vpop.eup %5330  ;;  %v2526_v58 = vadd.f32 1.0, %v5329_v10  ;;  %v7001_v50 = vld [vmem:[#allocation21_spill] sm:$0xff]  ;;  %v7003_v10 = vld [vmem:[#allocation23_spill] sm:$0xff] }
 0x5a6   :  { %5334 = vrcp.f32 %v2519_v31  ;;  %v7002_v31 = vld [vmem:[#allocation22_spill] sm:$0xff] }
 0x5a7   :  { %4680 = vmatpush1.bf16.msra.mxu0 %v5934_v39  ;;  %4712 = vmatpush1.bf16.msra.mxu1 %v5938_v41  ;;  %5336 = vrcp.f32 %v2526_v58  ;;  %v7008_v58 = vld [vmem:[#allocation28_spill] sm:$0xff] }
 0x5a8   :  { %4682 = vmatprep.subr.bf16.mxu0 %v5940_v44  ;;  %4714 = vmatprep.subr.bf16.mxu1 %v5943_v51 }
 0x5ab   :  { %4684 = vmatpush1.bf16.msra.mxu0 %v5948_v3  ;;  %4716 = vmatpush1.bf16.msra.mxu1 %v6889_v33 }
 0x5ac   :  { %4686 = vmatprep.subr.bf16.mxu0 %v6890_v55  ;;  %4718 = vmatprep.subr.bf16.mxu1 %v6891_v42 }
 0x5af   :  { %v5333_v35 = vpop.eup %5332  ;;  %4688 = vmatpush1.bf16.msra.mxu0 %v6916_v37  ;;  %4720 = vmatpush1.bf16.msra.mxu1 %v6893_v59 }
 0x5b0   :  { %v5335_v0 = vpop.eup %5334  ;;  %v2530_v48 = vmul.f32 %v5333_v35, %v5331_v29  ;;  %4690 = vmatprep.subr.bf16.mxu0 %v6894_v28  ;;  %4722 = vmatprep.subr.bf16.mxu1 %v6895_v52  ;;  %v7004_v29 = vld [vmem:[#allocation24_spill] sm:$0xff]  ;;  %v7005_v35 = vld [vmem:[#allocation25_spill] sm:$0xff] }
 0x5b1   :  { %v2529_v32 = vmul.f32 %v5335_v0, %v6358_v15  ;;  %v5337_v15 = vpop.eup %5336  ;;  %v7006_v0 = vld [vmem:[#allocation26_spill] sm:$0xff] }
 0x5b3   :  { %v6442_v34 = vadd.f32 %v2530_v48, %v2529_v32  ;;  %4692 = vmatpush1.bf16.msra.mxu0 %v6896_v9  ;;  %4724 = vmatpush1.bf16.msra.mxu1 %v6897_v38  ;;  %v7007_v48 = vld [vmem:[#allocation27_spill] sm:$0xff]  ;;  %v7009_v32 = vld [vmem:[#allocation29_spill] sm:$0xff] }
 0x5b4   :  { %4694 = vmatprep.subr.bf16.mxu0 %v5978_v25  ;;  %4726 = vmatprep.subr.bf16.mxu1 %v6898_v7 }
 0x5b5   :  { %5338 = vtanh.f32 %v6442_v34 }
 0x5b7   :  { %4696 = vmatpush1.bf16.msra.mxu0 %v5984_v45  ;;  %4728 = vmatpush1.bf16.msra.mxu1 %v5988_v1 }
 0x5b8   :  { %4698 = vmatprep.subr.bf16.mxu0 %v5990_v56  ;;  %4730 = vmatprep.subr.bf16.mxu1 %v5993_v12 }
 0x5bb   :  { %4700 = vmatpush1.bf16.msra.mxu0 %v5996_v20  ;;  %4732 = vmatpush1.bf16.msra.mxu1 %v6000_v6 }
 0x5bc   :  { %4702 = vmatprep.subr.bf16.mxu0 %v6002_v22  ;;  %4734 = vmatprep.subr.bf16.mxu1 %v6005_v49 }
 0x5bf   :  { %v5339_v40 = vpop.eup %5338  ;;  %4704 = vmatpush1.bf16.msra.mxu0 %v6008_v61  ;;  %4736 = vmatpush1.bf16.msra.mxu1 %v6012_v60 }
 0x5c0   :  { %v2533_v30 = vmul.f32 %v5339_v40, %v5337_v15  ;;  %4738 = vmatprep.subr.bf16.mxu0 %v5761_v54  ;;  %4770 = vmatprep.subr.bf16.mxu1 %v5764_v57  ;;  %v7010_v15 = vld [vmem:[#allocation30_spill] sm:$0xff]  ;;  %v7011_v40 = vld [vmem:[#allocation31_spill] sm:$0xff] }
 0x5c2   :  { %2745 = vmatmul.mubr.f32.vlgmr.msra.gmra.mrb[20].mxu0 %v2533_v30  ;;  %2816 = vmatmul.mubr.f32.vlgmr.msra.gmra.mrb[20].mxu1 %v2533_v30  ;;  %v7012_v30 = vld [vmem:[#allocation32_spill] sm:$0xff] }
 0x5c3   :  { %4740 = vmatpush1.bf16.msra.mxu0 %v5794_v8  ;;  %4772 = vmatpush1.bf16.msra.mxu1 %v5797_v11 }
 0x5c4   :  { %4742 = vmatprep.subr.bf16.mxu0 %v5799_v14  ;;  %4774 = vmatprep.subr.bf16.mxu1 %v5802_v17 }
 0x5c5   :  { %2938 = vmatprep.mubr.f32.mxu0 %v6884_v4  ;;  %3009 = vmatprep.mubr.f32.mxu1 %v6884_v4 }
 0x5c7   :  { %4744 = vmatpush1.bf16.msra.mxu0 %v5806_v21  ;;  %4776 = vmatpush1.bf16.msra.mxu1 %v5810_v24 }
 0x5c8   :  { %4746 = vmatprep.subr.bf16.mxu0 %v6997_v19  ;;  %4778 = vmatprep.subr.bf16.mxu1 %v6998_v2 }
 0x5cb   :  { %4748 = vmatpush1.bf16.msra.mxu0 %v6999_v47  ;;  %4780 = vmatpush1.bf16.msra.mxu1 %v7000_v43 }
 0x5cc   :  { %4750 = vmatprep.subr.bf16.mxu0 %v7001_v50  ;;  %4782 = vmatprep.subr.bf16.mxu1 %v7002_v31  ;;  %v7013_v31 = vld [vmem:[#allocation33_spill] sm:$0xff] }
 0x5cd   :  { %v7023_v50 = vld [vmem:[#allocation53_spill] sm:$0xff] }
 0x5cf   :  { %4752 = vmatpush1.bf16.msra.mxu0 %v7003_v10  ;;  %4784 = vmatpush1.bf16.msra.mxu1 %v7004_v29  ;;  %v7014_v10 = vld [vmem:[#allocation34_spill] sm:$0xff]  ;;  %v7015_v29 = vld [vmem:[#allocation35_spill] sm:$0xff] }
 0x5d0   :  { %4754 = vmatprep.subr.bf16.mxu0 %v7005_v35  ;;  %4786 = vmatprep.subr.bf16.mxu1 %v7006_v0  ;;  %v7016_v35 = vld [vmem:[#allocation36_spill] sm:$0xff]  ;;  %v7017_v0 = vld [vmem:[#allocation37_spill] sm:$0xff] }
 0x5d3   :  { %4756 = vmatpush1.bf16.msra.mxu0 %v7007_v48  ;;  %4788 = vmatpush1.bf16.msra.mxu1 %v7008_v58  ;;  %v7018_v48 = vld [vmem:[#allocation38_spill] sm:$0xff]  ;;  %v7019_v58 = vld [vmem:[#allocation39_spill] sm:$0xff] }
 0x5d4   :  { %4758 = vmatprep.subr.bf16.mxu0 %v7009_v32  ;;  %4790 = vmatprep.subr.bf16.mxu1 %v7010_v15  ;;  %v7020_v32 = vld [vmem:[#allocation40_spill] sm:$0xff]  ;;  %v7021_v15 = vld [vmem:[#allocation41_spill] sm:$0xff] }
 0x5d7   :  { %4760 = vmatpush1.bf16.msra.mxu0 %v7011_v40  ;;  %4792 = vmatpush1.bf16.msra.mxu1 %v7012_v30  ;;  %v7022_v40 = vld [vmem:[#allocation42_spill] sm:$0xff] }
 0x5d8   :  { %4762 = vmatprep.subr.bf16.mxu0 %v7013_v31  ;;  %4794 = vmatprep.subr.bf16.mxu1 %v7014_v10 }
 0x5db   :  { %4764 = vmatpush1.bf16.msra.mxu0 %v7015_v29  ;;  %4796 = vmatpush1.bf16.msra.mxu1 %v7016_v35 }
 0x5dc   :  { %4766 = vmatprep.subr.bf16.mxu0 %v7017_v0  ;;  %4798 = vmatprep.subr.bf16.mxu1 %v7018_v48 }
 0x5df   :  { %4768 = vmatpush1.bf16.msra.mxu0 %v7019_v58  ;;  %4800 = vmatpush1.bf16.msra.mxu1 %v7020_v32 }
 0x5e0   :  { %4802 = vmatprep.subr.bf16.mxu0 %v7021_v15  ;;  %4834 = vmatprep.subr.bf16.mxu1 %v7022_v40 }
 0x675   :  { %v2600_v30 = vpop.f32.mrb[10].mxu0  ;;  %v2671_v31 = vpop.f32.mrb[10].mxu1 }
 0x676   :  { %v5051_v10 = vadd.f32 %v2600_v30, %v7023_v50  ;;  %v2602_v43 = vpop.f32.mrb[11].mxu0  ;;  %v2673_v29 = vpop.f32.mrb[11].mxu1  ;;  %v5067_v32 = vadd.f32 %v2671_v31, %v6942_v53 }
 0x677   :  { %v5052_v35 = vadd.f32 %v2602_v43, %v6060_v36  ;;  %v5068_v58 = vadd.f32 %v2673_v29, %v6913_v62 }
 0x678   :  { %v3814_v47 = vmul.f32 -1.442695, %v5051_v10 }
 0x679   :  { %v3815_v0 = vmul.f32 -1.442695, %v5052_v35  ;;  %v3816_v48 = vmul.f32 -1.442695, %v5068_v58 }
 0x67a   :  { %5340 = vpow2.f32 %v3814_v47 }
 0x67b   :  { %5342 = vpow2.f32 %v3815_v0 }
 0x67c   :  { %5344 = vpow2.f32 %v3816_v48 }
 0x67d   :  { %5346 = vtanh.f32 %v5067_v32 }
 0x684   :  { %v5341_v15 = vpop.eup %5340 }
 0x685   :  { %v5343_v2 = vpop.eup %5342  ;;  %v2829_v40 = vadd.f32 1.0, %v5341_v15 }
 0x686   :  { %v2835_v19 = vadd.f32 1.0, %v5343_v2  ;;  %v5345_v30 = vpop.eup %5344 }
 0x687   :  { %5348 = vrcp.f32 %v2829_v40  ;;  %v5347_v50 = vpop.eup %5346  ;;  %v2842_v47 = vadd.f32 1.0, %v5345_v30 }
 0x688   :  { %5350 = vrcp.f32 %v2835_v19 }
 0x689   :  { %5352 = vrcp.f32 %v2842_v47 }
 0x691   :  { %v5349_v43 = vpop.eup %5348 }
 0x692   :  { %v5351_v10 = vpop.eup %5350  ;;  %v2846_v35 = vmul.f32 %v5349_v43, %v5347_v50 }
 0x693   :  { %v2845_v0 = vmul.f32 %v5351_v10, %v6416_v27  ;;  %v5353_v27 = vpop.eup %5352 }
 0x695   :  { %v6500_v29 = vadd.f32 %v2846_v35, %v2845_v0  ;;  %v2746_v58 = vpop.f32.mrb[20].mxu0  ;;  %v2817_v31 = vpop.f32.mrb[20].mxu1 }
 0x696   :  { %v5077_v15 = vadd.f32 %v2746_v58, %v6915_v5  ;;  %v2748_v48 = vpop.f32.mrb[21].mxu0  ;;  %v2819_v32 = vpop.f32.mrb[21].mxu1  ;;  %v5093_v10 = vadd.f32 %v2817_v31, %v6085_v46 }
 0x697   :  { %v5078_v2 = vadd.f32 %v2748_v48, %v6075_v23  ;;  %5354 = vtanh.f32 %v6500_v29  ;;  %v5094_v50 = vadd.f32 %v2819_v32, %v6082_v63 }
 0x698   :  { %v3817_v19 = vmul.f32 -1.442695, %v5077_v15 }
 0x699   :  { %v3818_v40 = vmul.f32 -1.442695, %v5078_v2  ;;  %v3819_v43 = vmul.f32 -1.442695, %v5094_v50 }
 0x69a   :  { %5356 = vpow2.f32 %v3817_v19 }
 0x69b   :  { %5358 = vpow2.f32 %v3818_v40 }
 0x69c   :  { %5360 = vpow2.f32 %v3819_v43 }
 0x69d   :  { %5362 = vtanh.f32 %v5093_v10  ;;  %v7026_v10 = vld [vmem:[#allocation19_spill] sm:$0xff] }
 0x6a1   :  { %v5355_v30 = vpop.eup %5354 }
 0x6a2   :  { %v2849_v35 = vmul.f32 %v5355_v30, %v5353_v27 }
 0x6a4   :  { %v5357_v47 = vpop.eup %5356  ;;  %2939 = vmatmul.mubr.f32.vlgmr.msra.gmra.mrb[12].mxu0 %v2849_v35  ;;  %3010 = vmatmul.mubr.f32.vlgmr.msra.gmra.mrb[12].mxu1 %v2849_v35  ;;  %v7031_v35 = vld [vmem:[#allocation24_spill] sm:$0xff] }
 0x6a5   :  { %v5359_v0 = vpop.eup %5358  ;;  %v2853_v58 = vadd.f32 1.0, %v5357_v47  ;;  %4804 = vmatpush1.bf16.msra.mxu0 %v5918_v13  ;;  %4836 = vmatpush1.bf16.msra.mxu1 %v5922_v16  ;;  %v7032_v47 = vld [vmem:[#allocation25_spill] sm:$0xff] }
 0x6a6   :  { %v2859_v15 = vadd.f32 1.0, %v5359_v0  ;;  %4806 = vmatprep.subr.bf16.mxu0 %v5924_v18  ;;  %4838 = vmatprep.subr.bf16.mxu1 %v5928_v26  ;;  %v5361_v31 = vpop.eup %5360  ;;  %v7035_v0 = vld [vmem:[#allocation28_spill] sm:$0xff] }
 0x6a7   :  { %5364 = vrcp.f32 %v2853_v58  ;;  %3084 = vmatprep.mubr.f32.mxu0 %v6884_v4  ;;  %3155 = vmatprep.mubr.f32.mxu1 %v6884_v4  ;;  %v5363_v48 = vpop.eup %5362  ;;  %v2866_v40 = vadd.f32 1.0, %v5361_v31  ;;  %v7036_v58 = vld [vmem:[#allocation29_spill] sm:$0xff]  ;;  %v7038_v31 = vld [vmem:[#allocation31_spill] sm:$0xff] }
 0x6a8   :  { %5366 = vrcp.f32 %v2859_v15  ;;  %v7037_v15 = vld [vmem:[#allocation30_spill] sm:$0xff] }
 0x6a9   :  { %4808 = vmatpush1.bf16.msra.mxu0 %v5934_v39  ;;  %4840 = vmatpush1.bf16.msra.mxu1 %v5938_v41  ;;  %5368 = vrcp.f32 %v2866_v40  ;;  %v7043_v40 = vld [vmem:[#allocation36_spill] sm:$0xff] }
 0x6aa   :  { %4810 = vmatprep.subr.bf16.mxu0 %v5940_v44  ;;  %4842 = vmatprep.subr.bf16.mxu1 %v5943_v51 }
 0x6ad   :  { %4812 = vmatpush1.bf16.msra.mxu0 %v5948_v3  ;;  %4844 = vmatpush1.bf16.msra.mxu1 %v6889_v33 }
 0x6ae   :  { %4814 = vmatprep.subr.bf16.mxu0 %v6890_v55  ;;  %4846 = vmatprep.subr.bf16.mxu1 %v6891_v42 }
 0x6b1   :  { %v5365_v32 = vpop.eup %5364  ;;  %4816 = vmatpush1.bf16.msra.mxu0 %v6916_v37  ;;  %4848 = vmatpush1.bf16.msra.mxu1 %v6893_v59 }
 0x6b2   :  { %v5367_v2 = vpop.eup %5366  ;;  %v2870_v19 = vmul.f32 %v5365_v32, %v5363_v48  ;;  %4818 = vmatprep.subr.bf16.mxu0 %v6894_v28  ;;  %4850 = vmatprep.subr.bf16.mxu1 %v6895_v52  ;;  %v7039_v48 = vld [vmem:[#allocation32_spill] sm:$0xff]  ;;  %v7040_v32 = vld [vmem:[#allocation33_spill] sm:$0xff] }
 0x6b3   :  { %v2869_v50 = vmul.f32 %v5367_v2, %v6442_v34  ;;  %v5369_v34 = vpop.eup %5368  ;;  %v7041_v2 = vld [vmem:[#allocation34_spill] sm:$0xff] }
 0x6b5   :  { %v6526_v27 = vadd.f32 %v2870_v19, %v2869_v50  ;;  %4820 = vmatpush1.bf16.msra.mxu0 %v6896_v9  ;;  %4852 = vmatpush1.bf16.msra.mxu1 %v6897_v38  ;;  %v7042_v19 = vld [vmem:[#allocation35_spill] sm:$0xff]  ;;  %v7044_v50 = vld [vmem:[#allocation37_spill] sm:$0xff] }
 0x6b6   :  { %4822 = vmatprep.subr.bf16.mxu0 %v5978_v25  ;;  %4854 = vmatprep.subr.bf16.mxu1 %v6898_v7 }
 0x6b7   :  { %5370 = vtanh.f32 %v6526_v27 }
 0x6b9   :  { %4824 = vmatpush1.bf16.msra.mxu0 %v5984_v45  ;;  %4856 = vmatpush1.bf16.msra.mxu1 %v5988_v1 }
 0x6ba   :  { %4826 = vmatprep.subr.bf16.mxu0 %v5990_v56  ;;  %4858 = vmatprep.subr.bf16.mxu1 %v5993_v12 }
 0x6bd   :  { %4828 = vmatpush1.bf16.msra.mxu0 %v5996_v20  ;;  %4860 = vmatpush1.bf16.msra.mxu1 %v6000_v6 }
 0x6be   :  { %4830 = vmatprep.subr.bf16.mxu0 %v6002_v22  ;;  %4862 = vmatprep.subr.bf16.mxu1 %v6005_v49 }
 0x6c1   :  { %v5371_v30 = vpop.eup %5370  ;;  %4832 = vmatpush1.bf16.msra.mxu0 %v6008_v61  ;;  %4864 = vmatpush1.bf16.msra.mxu1 %v6012_v60 }
 0x6c2   :  { %v2873_v43 = vmul.f32 %v5371_v30, %v5369_v34  ;;  %4866 = vmatprep.subr.bf16.mxu0 %v5761_v54  ;;  %4898 = vmatprep.subr.bf16.mxu1 %v5764_v57  ;;  %v7024_v54 = vld [vmem:[#allocation17_spill] sm:$0xff]  ;;  %v7025_v57 = vld [vmem:[#allocation18_spill] sm:$0xff]  ;;  %v7046_v30 = vld [vmem:[#allocation39_spill] sm:$0xff] }
 0x6c3   :  { %v7045_v34 = vld [vmem:[#allocation38_spill] sm:$0xff] }
 0x6c4   :  { %3085 = vmatmul.mubr.f32.vlgmr.msra.gmra.mrb[18].mxu0 %v2873_v43  ;;  %3156 = vmatmul.mubr.f32.vlgmr.msra.gmra.mrb[18].mxu1 %v2873_v43  ;;  %v7047_v43 = vld [vmem:[#allocation40_spill] sm:$0xff] }
 0x6c5   :  { %4868 = vmatpush1.bf16.msra.mxu0 %v5794_v8  ;;  %4900 = vmatpush1.bf16.msra.mxu1 %v5797_v11  ;;  %v7027_v8 = vld [vmem:[#allocation20_spill] sm:$0xff]  ;;  %v7028_v11 = vld [vmem:[#allocation21_spill] sm:$0xff] }
 0x6c6   :  { %4870 = vmatprep.subr.bf16.mxu0 %v5799_v14  ;;  %4902 = vmatprep.subr.bf16.mxu1 %v5802_v17  ;;  %v7029_v14 = vld [vmem:[#allocation22_spill] sm:$0xff]  ;;  %v7030_v17 = vld [vmem:[#allocation23_spill] sm:$0xff] }
 0x6c7   :  { %3278 = vmatprep.mubr.f32.mxu0 %v6884_v4  ;;  %3349 = vmatprep.mubr.f32.mxu1 %v6884_v4 }
 0x6c9   :  { %4872 = vmatpush1.bf16.msra.mxu0 %v5806_v21  ;;  %4904 = vmatpush1.bf16.msra.mxu1 %v5810_v24  ;;  %v7033_v21 = vld [vmem:[#allocation26_spill] sm:$0xff]  ;;  %v7034_v24 = vld [vmem:[#allocation27_spill] sm:$0xff] }
 0x6ca   :  { %4874 = vmatprep.subr.bf16.mxu0 %v7024_v54  ;;  %4906 = vmatprep.subr.bf16.mxu1 %v7025_v57  ;;  %v7048_v54 = vld [vmem:[#allocation41_spill] sm:$0xff]  ;;  %v7049_v57 = vld [vmem:[#allocation42_spill] sm:$0xff] }
 0x6cd   :  { %4876 = vmatpush1.bf16.msra.mxu0 %v7026_v10  ;;  %4908 = vmatpush1.bf16.msra.mxu1 %v7027_v8 }
 0x6ce   :  { %4878 = vmatprep.subr.bf16.mxu0 %v7028_v11  ;;  %4910 = vmatprep.subr.bf16.mxu1 %v7029_v14  ;;  %v7050_v11 = vld [vmem:[#allocation53_spill] sm:$0xff] }
 0x6d1   :  { %4880 = vmatpush1.bf16.msra.mxu0 %v7030_v17  ;;  %4912 = vmatpush1.bf16.msra.mxu1 %v7031_v35 }
 0x6d2   :  { %4882 = vmatprep.subr.bf16.mxu0 %v7032_v47  ;;  %4914 = vmatprep.subr.bf16.mxu1 %v7033_v21 }
 0x6d5   :  { %4884 = vmatpush1.bf16.msra.mxu0 %v7034_v24  ;;  %4916 = vmatpush1.bf16.msra.mxu1 %v7035_v0 }
 0x6d6   :  { %4886 = vmatprep.subr.bf16.mxu0 %v7036_v58  ;;  %4918 = vmatprep.subr.bf16.mxu1 %v7037_v15 }
 0x6d9   :  { %4888 = vmatpush1.bf16.msra.mxu0 %v7038_v31  ;;  %4920 = vmatpush1.bf16.msra.mxu1 %v7039_v48 }
 0x6da   :  { %4890 = vmatprep.subr.bf16.mxu0 %v7040_v32  ;;  %4922 = vmatprep.subr.bf16.mxu1 %v7041_v2 }
 0x6dd   :  { %4892 = vmatpush1.bf16.msra.mxu0 %v7042_v19  ;;  %4924 = vmatpush1.bf16.msra.mxu1 %v7043_v40 }
 0x6de   :  { %4894 = vmatprep.subr.bf16.mxu0 %v7044_v50  ;;  %4926 = vmatprep.subr.bf16.mxu1 %v7045_v34 }
 0x6e1   :  { %4896 = vmatpush1.bf16.msra.mxu0 %v7046_v30  ;;  %4928 = vmatpush1.bf16.msra.mxu1 %v7047_v43 }
 0x6e2   :  { %4930 = vmatprep.subr.bf16.mxu0 %v7048_v54  ;;  %4962 = vmatprep.subr.bf16.mxu1 %v7049_v57 }
 0x777   :  { %v2940_v10 = vpop.f32.mrb[12].mxu0  ;;  %v3011_v8 = vpop.f32.mrb[12].mxu1 }
 0x778   :  { %v5053_v14 = vadd.f32 %v2940_v10, %v7050_v11  ;;  %v2942_v17 = vpop.f32.mrb[13].mxu0  ;;  %v3013_v35 = vpop.f32.mrb[13].mxu1  ;;  %v5069_v15 = vadd.f32 %v3011_v8, %v6942_v53 }
 0x779   :  { %v5054_v47 = vadd.f32 %v2942_v17, %v6060_v36  ;;  %v5070_v0 = vadd.f32 %v3013_v35, %v6913_v62 }
 0x77a   :  { %v3820_v21 = vmul.f32 -1.442695, %v5053_v14 }
 0x77b   :  { %v3821_v24 = vmul.f32 -1.442695, %v5054_v47  ;;  %v3822_v58 = vmul.f32 -1.442695, %v5070_v0 }
 0x77c   :  { %5372 = vpow2.f32 %v3820_v21 }
 0x77d   :  { %5374 = vpow2.f32 %v3821_v24 }
 0x77e   :  { %5376 = vpow2.f32 %v3822_v58 }
 0x77f   :  { %5378 = vtanh.f32 %v5069_v15 }
 0x786   :  { %v5373_v31 = vpop.eup %5372 }
 0x787   :  { %v5375_v48 = vpop.eup %5374  ;;  %v3169_v32 = vadd.f32 1.0, %v5373_v31 }
 0x788   :  { %v3175_v2 = vadd.f32 1.0, %v5375_v48  ;;  %v5377_v19 = vpop.eup %5376 }
 0x789   :  { %5380 = vrcp.f32 %v3169_v32  ;;  %v5379_v40 = vpop.eup %5378  ;;  %v3182_v43 = vadd.f32 1.0, %v5377_v19 }
 0x78a   :  { %5382 = vrcp.f32 %v3175_v2 }
 0x78b   :  { %5384 = vrcp.f32 %v3182_v43  ;;  %v3576_v43 = vld [vmem:[%s6762_s8 + $0x78] sm:$0xff] }
 0x793   :  { %v5381_v50 = vpop.eup %5380 }
 0x794   :  { %v5383_v34 = vpop.eup %5382  ;;  %v3186_v30 = vmul.f32 %v5381_v50, %v5379_v40  ;;  %v3574_v50 = vld [vmem:[%s6762_s8 + $0x68] sm:$0xff] }
 0x795   :  { %v3185_v54 = vmul.f32 %v5383_v34, %v6500_v29  ;;  %v5385_v29 = vpop.eup %5384 }
 0x797   :  { %v6584_v57 = vadd.f32 %v3186_v30, %v3185_v54  ;;  %v3086_v10 = vpop.f32.mrb[18].mxu0  ;;  %v3157_v8 = vpop.f32.mrb[18].mxu1  ;;  %v3575_v30 = vld [vmem:[%s6762_s8 + $0x70] sm:$0xff] }
 0x798   :  { %v5075_v14 = vadd.f32 %v3086_v10, %v6915_v5  ;;  %v3088_v17 = vpop.f32.mrb[19].mxu0  ;;  %v3159_v35 = vpop.f32.mrb[19].mxu1  ;;  %v5091_v31 = vadd.f32 %v3157_v8, %v6085_v46  ;;  %v5039_v54 = vpack.c.bf16 %v3576_v43, %v3575_v30  ;;  %v3577_v10 = vld [vmem:[%s6763_s9] sm:$0xff]  ;;  %v3578_v8 = vld [vmem:[%s6763_s9 + $0x8] sm:$0xff] }
 0x799   :  { %v5076_v47 = vadd.f32 %v3088_v17, %v6075_v23  ;;  %5386 = vtanh.f32 %v6584_v57  ;;  %v5092_v0 = vadd.f32 %v3159_v35, %v6082_v63  ;;  %v3579_v17 = vld [vmem:[%s6763_s9 + $0x10] sm:$0xff]  ;;  %v3580_v35 = vld [vmem:[%s6763_s9 + $0x18] sm:$0xff] }
 0x79a   :  { %v3823_v21 = vmul.f32 -1.442695, %v5075_v14  ;;  %v4994_v14 = vpack.c.bf16 %v3578_v8, %v3577_v10 }
 0x79b   :  { %v3824_v24 = vmul.f32 -1.442695, %v5076_v47  ;;  %v3825_v15 = vmul.f32 -1.442695, %v5092_v0  ;;  %v4997_v47 = vpack.c.bf16 %v3580_v35, %v3579_v17  ;;  %v3583_v0 = vld [vmem:[%s6763_s9 + $0x30] sm:$0xff] }
 0x79c   :  { %5388 = vpow2.f32 %v3823_v21  ;;  %v3581_v21 = vld [vmem:[%s6763_s9 + $0x20] sm:$0xff] }
 0x79d   :  { %5390 = vpow2.f32 %v3824_v24 }
 0x79e   :  { %5392 = vpow2.f32 %v3825_v15  ;;  %v3585_v15 = vld [vmem:[%s6763_s9 + $0x40] sm:$0xff] }
 0x79f   :  { %5394 = vtanh.f32 %v5091_v31  ;;  %v3586_v31 = vld [vmem:[%s6763_s9 + $0x48] sm:$0xff] }
 0x7a3   :  { %v5387_v58 = vpop.eup %5386 }
 0x7a4   :  { %v3189_v48 = vmul.f32 %v5387_v58, %v5385_v29  ;;  %v3584_v29 = vld [vmem:[%s6763_s9 + $0x38] sm:$0xff] }
 0x7a5   :  { %v5003_v58 = vpack.c.bf16 %v3584_v29, %v3583_v0 }
 0x7a6   :  { %v5389_v32 = vpop.eup %5388  ;;  %3279 = vmatmul.mubr.f32.vlgmr.msra.gmra.mrb[14].mxu0 %v3189_v48  ;;  %3350 = vmatmul.mubr.f32.vlgmr.msra.gmra.mrb[14].mxu1 %v3189_v48  ;;  %v5006_v48 = vpack.c.bf16 %v3586_v31, %v3585_v15 }
 0x7a7   :  { %v5391_v2 = vpop.eup %5390  ;;  %v3193_v19 = vadd.f32 1.0, %v5389_v32  ;;  %4932 = vmatpush1.bf16.msra.mxu0 %v5918_v13  ;;  %4964 = vmatpush1.bf16.msra.mxu1 %v5922_v16  ;;  %v3587_v32 = vld [vmem:[%s6763_s9 + $0x50] sm:$0xff] }
 0x7a8   :  { %v3199_v40 = vadd.f32 1.0, %v5391_v2  ;;  %4934 = vmatprep.subr.bf16.mxu0 %v5924_v18  ;;  %4966 = vmatprep.subr.bf16.mxu1 %v5928_v26  ;;  %v5393_v13 = vpop.eup %5392  ;;  %v3588_v2 = vld [vmem:[%s6763_s9 + $0x58] sm:$0xff] }
 0x7a9   :  { %5396 = vrcp.f32 %v3193_v19  ;;  %3424 = vmatprep.mubr.f32.mxu0 %v6884_v4  ;;  %3495 = vmatprep.mubr.f32.mxu1 %v6884_v4  ;;  %v5395_v16 = vpop.eup %5394  ;;  %v3589_v19 = vld [vmem:[%s6763_s9 + $0x60] sm:$0xff] }
 0x7aa   :  { %5398 = vrcp.f32 %v3199_v40  ;;  %v5009_v40 = vpack.c.bf16 %v3588_v2, %v3587_v32  ;;  %v3832_v2 = vld [vmem:[#allocation6] ss:$0 sm:$0xff] }
 0x7ab   :  { %4936 = vmatpush1.bf16.msra.mxu0 %v5934_v39  ;;  %4968 = vmatpush1.bf16.msra.mxu1 %v5938_v41  ;;  %v3206_v41 = vadd.f32 1.0, %v5393_v13  ;;  %v3590_v13 = vld [vmem:[%s6763_s9 + $0x68] sm:$0xff] }
 0x7ac   :  { %4938 = vmatprep.subr.bf16.mxu0 %v5940_v44  ;;  %4970 = vmatprep.subr.bf16.mxu1 %v5943_v51 }
 0x7ad   :  { %5400 = vrcp.f32 %v3206_v41 }
 0x7af   :  { %4940 = vmatpush1.bf16.msra.mxu0 %v5948_v3  ;;  %4972 = vmatpush1.bf16.msra.mxu1 %v6889_v33 }
 0x7b0   :  { %4942 = vmatprep.subr.bf16.mxu0 %v6890_v55  ;;  %4974 = vmatprep.subr.bf16.mxu1 %v6891_v42  ;;  %v3567_v55 = vld [vmem:[%s6762_s8 + $0x30] sm:$0xff]  ;;  %v3568_v42 = vld [vmem:[%s6762_s8 + $0x38] sm:$0xff] }
 0x7b3   :  { %v5397_v18 = vpop.eup %5396  ;;  %4944 = vmatpush1.bf16.msra.mxu0 %v6916_v37  ;;  %4976 = vmatpush1.bf16.msra.mxu1 %v6893_v59  ;;  %v3569_v59 = vld [vmem:[%s6762_s8 + $0x40] sm:$0xff] }
 0x7b4   :  { %v5399_v26 = vpop.eup %5398  ;;  %v3210_v39 = vmul.f32 %v5397_v18, %v5395_v16  ;;  %4946 = vmatprep.subr.bf16.mxu0 %v6894_v28  ;;  %4978 = vmatprep.subr.bf16.mxu1 %v6895_v52  ;;  %v3570_v28 = vld [vmem:[%s6762_s8 + $0x48] sm:$0xff]  ;;  %v5012_v16 = vpack.c.bf16 %v3590_v13, %v3589_v19  ;;  %v3591_v18 = vld [vmem:[%s6763_s9 + $0x70] sm:$0xff] }
 0x7b5   :  { %v3209_v44 = vmul.f32 %v5399_v26, %v6526_v27  ;;  %v5030_v52 = vpack.c.bf16 %v3570_v28, %v3569_v59  ;;  %v3573_v27 = vld [vmem:[%s6762_s8 + $0x60] sm:$0xff]  ;;  %v3592_v26 = vld [vmem:[%s6763_s9 + $0x78] sm:$0xff] }
 0x7b6   :  { %v5036_v34 = vpack.c.bf16 %v3574_v50, %v3573_v27 }
 0x7b7   :  { %v6610_v51 = vadd.f32 %v3210_v39, %v3209_v44  ;;  %4948 = vmatpush1.bf16.msra.mxu0 %v6896_v9  ;;  %4980 = vmatpush1.bf16.msra.mxu1 %v6897_v38  ;;  %v5401_v3 = vpop.eup %5400  ;;  %v3571_v9 = vld [vmem:[%s6762_s8 + $0x50] sm:$0xff]  ;;  %v3572_v38 = vld [vmem:[%s6762_s8 + $0x58] sm:$0xff]  ;;  %v5015_v39 = vpack.c.bf16 %v3592_v26, %v3591_v18 }
 0x7b8   :  { %4950 = vmatprep.subr.bf16.mxu0 %v5978_v25  ;;  %4982 = vmatprep.subr.bf16.mxu1 %v6898_v7  ;;  %v5027_v7 = vpack.c.bf16 %v3568_v42, %v3567_v55  ;;  %v5033_v37 = vpack.c.bf16 %v3572_v38, %v3571_v9 }
 0x7b9   :  { %5402 = vtanh.f32 %v6610_v51 }
 0x7bb   :  { %4952 = vmatpush1.bf16.msra.mxu0 %v5984_v45  ;;  %4984 = vmatpush1.bf16.msra.mxu1 %v5988_v1  ;;  %v3561_v1 = vld [vmem:[%s6762_s8] sm:$0xff] }
 0x7bc   :  { %4954 = vmatprep.subr.bf16.mxu0 %v5990_v56  ;;  %4986 = vmatprep.subr.bf16.mxu1 %v5993_v12  ;;  %v5539_v12 = vmov 0.0|0.0  }
 0x7bf   :  { %4956 = vmatpush1.bf16.msra.mxu0 %v5996_v20  ;;  %4988 = vmatpush1.bf16.msra.mxu1 %v6000_v6  ;;  %v3562_v20 = vld [vmem:[%s6762_s8 + $0x8] sm:$0xff]  ;;  %v3563_v6 = vld [vmem:[%s6762_s8 + $0x10] sm:$0xff] }
 0x7c0   :  { %4958 = vmatprep.subr.bf16.mxu0 %v6002_v22  ;;  %4990 = vmatprep.subr.bf16.mxu1 %v6005_v49  ;;  %v5018_v56 = vpack.c.bf16 %v3562_v20, %v3561_v1  ;;  %v3564_v22 = vld [vmem:[%s6762_s8 + $0x18] sm:$0xff] }
 0x7c1   :  { %v5021_v49 = vpack.c.bf16 %v3564_v22, %v3563_v6 }
 0x7c3   :  { %v5403_v25 = vpop.eup %5402  ;;  %4960 = vmatpush1.bf16.msra.mxu0 %v6008_v61  ;;  %4992 = vmatpush1.bf16.msra.mxu1 %v6012_v60  ;;  %v3565_v61 = vld [vmem:[%s6762_s8 + $0x20] sm:$0xff]  ;;  %v3566_v60 = vld [vmem:[%s6762_s8 + $0x28] sm:$0xff] }
 0x7c4   :  { %v3213_v45 = vmul.f32 %v5403_v25, %v5401_v3  ;;  %5017 = vmatprep.subr.bf16.mxu1 %v5539_v12  ;;  %4993 = vmatprep.subr.bf16.mxu0 %v5539_v12  ;;  %v5024_v33 = vpack.c.bf16 %v3566_v60, %v3565_v61 }
 0x7c6   :  { %3425 = vmatmul.mubr.f32.vlgmr.msra.gmra.mrb[16].mxu0 %v3213_v45  ;;  %3496 = vmatmul.mubr.f32.vlgmr.msra.gmra.mrb[16].mxu1 %v3213_v45 }
 0x7c7   :  { %5019 = vmatpush3.bf16.msra.mxu1 %v5018_v56  ;;  %3934 = vmatprep.mubr.msk.f32.mxu1 %vm5540_vm1, %v6884_v4 }
 0x7c8   :  { %5020 = vmatprep.subr.bf16.mxu1 %v5539_v12  ;;  %3899 = vmatprep.mubr.msk.f32.mxu0 %vm5540_vm1, %v6884_v4  ;;  %v3582_v4 = vld [vmem:[%s6763_s9 + $0x28] sm:$0xff] }
 0x7c9   :  { %4995 = vmatpush3.bf16.msra.mxu0 %v4994_v14  ;;  %v5000_v24 = vpack.c.bf16 %v3582_v4, %v3581_v21 }
 0x7ca   :  { %4996 = vmatprep.subr.bf16.mxu0 %v5539_v12 }
 0x7cb   :  { %5022 = vmatpush3.bf16.msra.mxu1 %v5021_v49 }
 0x7cc   :  { %5023 = vmatprep.subr.bf16.mxu1 %v5539_v12 }
 0x7cd   :  { %4998 = vmatpush3.bf16.msra.mxu0 %v4997_v47 }
 0x7ce   :  { %4999 = vmatprep.subr.bf16.mxu0 %v5539_v12 }
 0x7cf   :  { %5025 = vmatpush3.bf16.msra.mxu1 %v5024_v33 }
 0x7d0   :  { %5026 = vmatprep.subr.bf16.mxu1 %v5539_v12 }
 0x7d1   :  { %5001 = vmatpush3.bf16.msra.mxu0 %v5000_v24 }
 0x7d2   :  { %5002 = vmatprep.subr.bf16.mxu0 %v5539_v12 }
 0x7d3   :  { %5028 = vmatpush3.bf16.msra.mxu1 %v5027_v7 }
 0x7d4   :  { %5029 = vmatprep.subr.bf16.mxu1 %v5539_v12 }
 0x7d5   :  { %5004 = vmatpush3.bf16.msra.mxu0 %v5003_v58 }
 0x7d6   :  { %5005 = vmatprep.subr.bf16.mxu0 %v5539_v12 }
 0x7d7   :  { %5031 = vmatpush3.bf16.msra.mxu1 %v5030_v52 }
 0x7d8   :  { %5032 = vmatprep.subr.bf16.mxu1 %v5539_v12 }
 0x7d9   :  { %5007 = vmatpush3.bf16.msra.mxu0 %v5006_v48 }
 0x7da   :  { %5008 = vmatprep.subr.bf16.mxu0 %v5539_v12 }
 0x7db   :  { %5034 = vmatpush3.bf16.msra.mxu1 %v5033_v37 }
 0x7dc   :  { %5035 = vmatprep.subr.bf16.mxu1 %v5539_v12 }
 0x7dd   :  { %5010 = vmatpush3.bf16.msra.mxu0 %v5009_v40 }
 0x7de   :  { %5011 = vmatprep.subr.bf16.mxu0 %v5539_v12 }
 0x7df   :  { %5037 = vmatpush3.bf16.msra.mxu1 %v5036_v34 }
 0x7e0   :  { %5038 = vmatprep.subr.bf16.mxu1 %v5539_v12 }
 0x7e1   :  { %5013 = vmatpush3.bf16.msra.mxu0 %v5012_v16 }
 0x7e2   :  { %5014 = vmatprep.subr.bf16.mxu0 %v5539_v12 }
 0x7e3   :  { %5040 = vmatpush3.bf16.msra.mxu1 %v5039_v54 }
 0x7e5   :  { %5016 = vmatpush3.bf16.msra.mxu0 %v5015_v39 }
 0x879   :  { %v3280_v41 = vpop.f32.mrb[14].mxu0  ;;  %v3351_v44 = vpop.f32.mrb[14].mxu1 }
 0x87a   :  { %v5055_v3 = vadd.f32 %v3280_v41, %v7050_v11  ;;  %v3282_v25 = vpop.f32.mrb[15].mxu0  ;;  %v3353_v45 = vpop.f32.mrb[15].mxu1  ;;  %v5071_v49 = vadd.f32 %v3351_v44, %v6942_v53 }
 0x87b   :  { %v5056_v1 = vadd.f32 %v3282_v25, %v6060_v36  ;;  %v5072_v6 = vadd.f32 %v3353_v45, %v6913_v62 }
 0x87c   :  { %v3826_v20 = vmul.f32 -1.442695, %v5055_v3 }
 0x87d   :  { %v3827_v56 = vmul.f32 -1.442695, %v5056_v1  ;;  %v3828_v22 = vmul.f32 -1.442695, %v5072_v6 }
 0x87e   :  { %5404 = vpow2.f32 %v3826_v20 }
 0x87f   :  { %5406 = vpow2.f32 %v3827_v56 }
 0x880   :  { %5408 = vpow2.f32 %v3828_v22 }
 0x881   :  { %5410 = vtanh.f32 %v5071_v49 }
 0x888   :  { %v5405_v61 = vpop.eup %5404 }
 0x889   :  { %v5407_v12 = vpop.eup %5406  ;;  %v3509_v60 = vadd.f32 1.0, %v5405_v61 }
 0x88a   :  { %v3515_v33 = vadd.f32 1.0, %v5407_v12  ;;  %v5409_v11 = vpop.eup %5408 }
 0x88b   :  { %5412 = vrcp.f32 %v3509_v60  ;;  %v5411_v55 = vpop.eup %5410  ;;  %v3522_v59 = vadd.f32 1.0, %v5409_v11 }
 0x88c   :  { %5414 = vrcp.f32 %v3515_v33 }
 0x88d   :  { %5416 = vrcp.f32 %v3522_v59 }
 0x895   :  { %v5413_v36 = vpop.eup %5412 }
 0x896   :  { %v5415_v42 = vpop.eup %5414  ;;  %v3526_v7 = vmul.f32 %v5413_v36, %v5411_v55 }
 0x897   :  { %v3525_v28 = vmul.f32 %v5415_v42, %v6584_v57  ;;  %v5417_v43 = vpop.eup %5416 }
 0x899   :  { %v3527_v62 = vadd.f32 %v3526_v7, %v3525_v28  ;;  %v3426_v52 = vpop.f32.mrb[16].mxu0  ;;  %v3497_v9 = vpop.f32.mrb[16].mxu1 }
 0x89a   :  { %v5073_v53 = vadd.f32 %v3426_v52, %v6915_v5  ;;  %v3428_v38 = vpop.f32.mrb[17].mxu0  ;;  %v3499_v37 = vpop.f32.mrb[17].mxu1  ;;  %v5089_v10 = vadd.f32 %v3497_v9, %v6085_v46 }
 0x89b   :  { %5418 = vtanh.f32 %v3527_v62  ;;  %v5074_v27 = vadd.f32 %v3428_v38, %v6075_v23  ;;  %v5090_v30 = vadd.f32 %v3499_v37, %v6082_v63 }
 0x89c   :  { %v3829_v50 = vmul.f32 -1.442695, %v5073_v53 }
 0x89d   :  { %v3830_v34 = vmul.f32 -1.442695, %v5074_v27  ;;  %v3831_v57 = vmul.f32 -1.442695, %v5090_v30 }
 0x89e   :  { %5420 = vpow2.f32 %v3829_v50 }
 0x89f   :  { %5422 = vpow2.f32 %v3830_v34 }
 0x8a0   :  { %5424 = vpow2.f32 %v3831_v57 }
 0x8a1   :  { %5426 = vtanh.f32 %v5089_v10 }
 0x8a5   :  { %v5419_v54 = vpop.eup %5418 }
 0x8a6   :  { %v3529_v8 = vmul.f32 %v5419_v54, %v5417_v43 }
 0x8a8   :  { %v5421_v14 = vpop.eup %5420  ;;  %3935 = vmatmul.mubr.f32.vlgmr.msra.gmra.mrb[32].mxu1 %v3529_v8 }
 0x8a9   :  { %v5423_v5 = vpop.eup %5422  ;;  %v3533_v17 = vadd.f32 1.0, %v5421_v14 }
 0x8aa   :  { %v3539_v35 = vadd.f32 1.0, %v5423_v5  ;;  %v5425_v23 = vpop.eup %5424 }
 0x8ab   :  { %5428 = vrcp.f32 %v3533_v17  ;;  %v5427_v47 = vpop.eup %5426  ;;  %v3546_v24 = vadd.f32 1.0, %v5425_v23 }
 0x8ac   :  { %5430 = vrcp.f32 %v3539_v35 }
 0x8ad   :  { %5432 = vrcp.f32 %v3546_v24 }
 0x8b5   :  { %v5429_v21 = vpop.eup %5428 }
 0x8b6   :  { %v5431_v4 = vpop.eup %5430  ;;  %v3550_v63 = vmul.f32 %v5429_v21, %v5427_v47 }
 0x8b7   :  { %v3549_v0 = vmul.f32 %v5431_v4, %v6610_v51  ;;  %v5433_v46 = vpop.eup %5432 }
 0x8b9   :  { %v3551_v29 = vadd.f32 %v3550_v63, %v3549_v0 }
 0x8bb   :  { %5434 = vtanh.f32 %v3551_v29 }
 0x8c5   :  { %v5435_v58 = vpop.eup %5434 }
 0x8c6   :  { %v3553_v15 = vmul.f32 %v5435_v58, %v5433_v46 }
 0x8c8   :  { %3900 = vmatmul.mubr.f32.vlgmr.msra.gmra.mrb[32].mxu0 %v3553_v15 }
 0x97b   :  { %v3729_v31 = vpop.f32.mrb[32].mxu1 }
 0x97c   :  { %v3936_v48 = vpop.f32.mrb[33].mxu1 }
 0x99b   :  { %v3659_v32 = vpop.f32.mrb[32].mxu0 }
 0x99c   :  { %v3730_v19 = vadd.f32 %v3729_v31, %v3659_v32  ;;  %v3901_v40 = vpop.f32.mrb[33].mxu0 }
 0x99e   :  { %v3740_v13 = vadd.f32 %v3832_v2, %v3730_v19 }
 0x9a0   :  { %3742 = vst.msk [vmem:[%s6765_s11] sm:$0xff] %vm3741_vm2, %v3740_v13 }
 0x9a1   :  { %3747 = vsyncpa [#allocation8], 1 }
 0x9a2   :  { %3748 = vsyncpa [#allocation10], 1 }
 0x9a3   :  { %3749 = vsyncpa [#allocation13], 1 }

</bundles_post_ra>
